<compile_context>
chip_gen: v7x
topology: tpu7x:2x2x1
jax: 0.10.0
libtpu: 0.0.40
codegen_flags: <defaults>
</compile_context>

<pallas_src>
import jax
import jax.numpy as jnp
from jax import lax
from jax.experimental import pallas as pl
from jax.experimental.pallas import tpu as pltpu

BN_EPS = 1e-4      # norm_fn = BatchNorm1d(eps=0.0001, momentum=0.1)
LANE = 128
TILE_N = 128       # points per grid step (output rows per tile)


# ---------------------------------------------------------------------------
# Fused kernel:  BN(64, eps=1e-4) + ReLU  ->  Linear(64, C+1 padded to 128)  ->  per-point row gather
#   idx_ref : SMEM (N_pad,) int32  — scalar-prefetched input_map
#   x_ref   : VMEM (NVOX, C) f32   — voxel features, resident across the whole grid (index -> (0,0))
#   z_ref   : VMEM scratch (NVOX, 128) f32 — per-voxel class scores (lane-dense), gather source
#   o_ref   : VMEM (TILE_N, 128) f32 — this tile's per-point scores
# ---------------------------------------------------------------------------
def fused_semantic_kernel(idx_ref, x_ref, gamma_ref, beta_ref, w_ref, b_ref, o_ref, z_ref):
    # ---- BatchNorm1d (train-mode batch stats, biased variance) + ReLU ----
    # Centered two-pass variance (avoids E[x^2]-mean^2 cancellation). Exact f32 reductions on the
    # VPU/XLU; a default-precision MXU ones-matmul would bf16-truncate the stats.
    x = x_ref[...]
    nvox = x.shape[0]
    inv_n = 1.0 / nvox
    mean = jnp.sum(x, axis=0, keepdims=True) * inv_n            # (1, C)
    xc = x - mean
    var = jnp.sum(xc * xc, axis=0, keepdims=True) * inv_n       # (1, C)
    y = xc * lax.rsqrt(var + BN_EPS)                            # EUP rsqrt
    y = y * gamma_ref[...] + beta_ref[...]
    y = jnp.maximum(y, 0.0)                                     # (NVOX, C) = relu(bn(x))

    # ---- Linear BEFORE the gather (they commute): per-voxel class scores, 128-lane dense ----
    # Default f32 matmul path, matched with the reference (explicit choice — see header note).
    z_ref[...] = (jnp.dot(y, w_ref[...], preferred_element_type=jnp.float32)
                  + b_ref[...])                                  # (NVOX, 128)

    # ---- per-point row gather: out[i] = z[input_map[base + i]] ----
    tile = pl.program_id(0)
    tn = o_ref.shape[0]
    base = tile * tn
    # Static unroll over the tile's rows; the row index is a dynamic SMEM scalar, the copy is a
    # single-sublane VMEM load + store (no O(N*NVOX) one-hot, no extra MXU passes).
    for i in range(tn):
        row = idx_ref[base + i]
        o_ref[pl.ds(i, 1), :] = z_ref[pl.ds(row, 1), :]


# ---------------------------------------------------------------------------
# One-time parameter prep (kept out of the per-call path): BN affine as (1, C); Linear weight/bias
# zero-padded to 128 output lanes so the output stores are lane-dense.
# ---------------------------------------------------------------------------
def prepare_params(params, c_in):
    cout = params["lin_w"].shape[1]
    cout_pad = ((cout + LANE - 1) // LANE) * LANE
    return {
        "bn_gamma": params["bn_gamma"].reshape(1, c_in).astype(jnp.float32),
        "bn_beta": params["bn_beta"].reshape(1, c_in).astype(jnp.float32),
        "lin_w_pad": jnp.zeros((c_in, cout_pad), jnp.float32).at[:, :cout].set(
            params["lin_w"].astype(jnp.float32)),
        "lin_b_pad": jnp.zeros((1, cout_pad), jnp.float32).at[0, :cout].set(
            params["lin_b"].astype(jnp.float32)),
        "cout": cout,
    }


# ---------------------------------------------------------------------------
# Forward wrapper (semantic branch of PointGroup.forward) — single pallas_call.
# ---------------------------------------------------------------------------
def pointgroup_forward(semantic_voxel_feats, input_map, prepped, tile_n=TILE_N):
    nvox, c = semantic_voxel_feats.shape
    n = input_map.shape[0]
    cout_pad = prepped["lin_w_pad"].shape[1]

    num_tiles = (n + tile_n - 1) // tile_n
    n_pad = num_tiles * tile_n

    # Clamp (no hardware bounds check on the in-VMEM gather) and pad to the grid; padded rows read
    # voxel 0 and are sliced away below.
    idx = jnp.clip(input_map.astype(jnp.int32), 0, nvox - 1)
    idx = jnp.pad(idx, (0, n_pad - n))

    # VMEM budget from the actual footprint (double-buffering headroom), capped below v7x's 64 MiB.
    footprint = (
        2 * nvox * c * 4                 # voxel feats (resident, assume 2 buffers)
        + 2 * 2 * c * 4                  # bn gamma/beta
        + 2 * (c * cout_pad + cout_pad) * 4   # linear weight + bias (padded)
        + 2 * tile_n * cout_pad * 4      # output tile (double-buffered)
        + nvox * cout_pad * 4            # z scratch
    )
    vmem_limit = int(min(max(4 * footprint, 8 * 1024 * 1024), 48 * 1024 * 1024))

    grid_spec = pltpu.PrefetchScalarGridSpec(
        num_scalar_prefetch=1,                      # input_map lives in SMEM
        grid=(num_tiles,),
        in_specs=[
            pl.BlockSpec((nvox, c), lambda i, idx_ref: (0, 0)),      # voxel feats (resident)
            pl.BlockSpec((1, c), lambda i, idx_ref: (0, 0)),         # bn gamma
            pl.BlockSpec((1, c), lambda i, idx_ref: (0, 0)),         # bn beta
            pl.BlockSpec((c, cout_pad), lambda i, idx_ref: (0, 0)),  # linear weight (padded)
            pl.BlockSpec((1, cout_pad), lambda i, idx_ref: (0, 0)),  # linear bias (padded)
        ],
        out_specs=pl.BlockSpec((tile_n, cout_pad), lambda i, idx_ref: (i, 0)),
        scratch_shapes=[pltpu.VMEM((nvox, cout_pad), jnp.float32)],  # per-voxel scores z
    )

    scores_pad = pl.pallas_call(
        fused_semantic_kernel,
        out_shape=jax.ShapeDtypeStruct((n_pad, cout_pad), jnp.float32),
        grid_spec=grid_spec,
        compiler_params=pltpu.CompilerParams(
            dimension_semantics=("parallel",),      # point tiles are independent (megacore-safe)
            vmem_limit_bytes=vmem_limit,
        ),
    )(idx, semantic_voxel_feats, prepped["bn_gamma"], prepped["bn_beta"],
      prepped["lin_w_pad"], prepped["lin_b_pad"])

    # rpn_outs not produced: see TODO(synk) at top. Single slice at the final consumer.
    return scores_pad[:n, :prepped["cout"]]


# Pure-JAX reference for correctness checking (same math, original gather-then-linear order).
def reference_forward(x, input_map, params):
    mean = jnp.mean(x, axis=0, keepdims=True)
    var = jnp.mean(jnp.square(x - mean), axis=0, keepdims=True)
    y = (x - mean) / jnp.sqrt(var + BN_EPS)
    y = y * params["bn_gamma"][None, :] + params["bn_beta"][None, :]
    y = jnp.maximum(y, 0.0)
    g = y[input_map]
    return jnp.dot(g, params["lin_w"], preferred_element_type=jnp.float32) + params["lin_b"][None, :]


if __name__ == "__main__":
    key = jax.random.PRNGKey(0)
    k1, k2, k3, k4, k5, k6 = jax.random.split(key, 6)

    NVOX = 512        # sparse voxels coming out of the FPN semantic head
    C = 64            # output_layer / linear input channels
    N = 384           # number of points (len(input_map))
    CLASSES = 18      # cfg.classes -> Linear(64, classes + 1) = Linear(64, 19)

    semantic_voxel_feats = jax.random.normal(k1, (NVOX, C), dtype=jnp.float32)
    input_map = jax.random.randint(k2, (N,), 0, NVOX, dtype=jnp.int32)

    params = {
        # PyTorch BatchNorm1d init is weight=1 / bias=0; perturbed here to exercise the affine path.
        "bn_gamma": 1.0 + 0.1 * jax.random.normal(k5, (C,), dtype=jnp.float32),
        "bn_beta": 0.05 * jax.random.normal(k6, (C,), dtype=jnp.float32),
        # Deterministic synthetic Linear(64, classes + 1) params
        "lin_w": 0.05 * jax.random.normal(k3, (C, CLASSES + 1), dtype=jnp.float32),
        "lin_b": 0.01 * jax.random.normal(k4, (CLASSES + 1,), dtype=jnp.float32),
    }
    prepped = prepare_params(params, C)

    scores = pointgroup_forward(semantic_voxel_feats, input_map, prepped)
    scores = jax.block_until_ready(scores)

    ref = reference_forward(semantic_voxel_feats, input_map, params)
    assert scores.shape == (N, CLASSES + 1)
    assert jnp.allclose(scores, ref, rtol=1e-5, atol=1e-5), float(jnp.max(jnp.abs(scores - ref)))

    print("KERNEL_OK")
</pallas_src>

<mosaic_0001>
module attributes {stable_mosaic.version = 11 : i64} {
  func.func @fused_semantic_kernel(%arg0: i32, %arg1: memref<384xi32, #tpu.memory_space<smem>>, %arg2: memref<512x64xf32, #tpu.memory_space<vmem>>, %arg3: memref<1x64xf32, #tpu.memory_space<vmem>>, %arg4: memref<1x64xf32, #tpu.memory_space<vmem>>, %arg5: memref<64x128xf32, #tpu.memory_space<vmem>>, %arg6: memref<1x128xf32, #tpu.memory_space<vmem>>, %arg7: memref<128x128xf32, #tpu.memory_space<vmem>>, %arg8: memref<512x128xf32, #tpu.memory_space<vmem>>) attributes {dimension_semantics = [#tpu.dimension_semantics<parallel>], iteration_bounds = array<i64: 3>, scalar_prefetch = 1 : i64, scratch_operands = 1 : i64, tpu.core_type = #tpu.core_type<tc>, window_params = [{pipeline_mode = #tpu.pipeline_mode<synchronous>, transform_indices = @transform_0, window_bounds = array<i64: 512, 64>}, {pipeline_mode = #tpu.pipeline_mode<synchronous>, transform_indices = @transform_1, window_bounds = array<i64: 1, 64>}, {pipeline_mode = #tpu.pipeline_mode<synchronous>, transform_indices = @transform_2, window_bounds = array<i64: 1, 64>}, {pipeline_mode = #tpu.pipeline_mode<synchronous>, transform_indices = @transform_3, window_bounds = array<i64: 64, 128>}, {pipeline_mode = #tpu.pipeline_mode<synchronous>, transform_indices = @transform_4, window_bounds = array<i64: 1, 128>}, {transform_indices = @transform_5, window_bounds = array<i64: 128, 128>}]} {
    %c0 = arith.constant 0 : index
    %c0_0 = arith.constant 0 : index
    %0 = vector.load %arg2[%c0, %c0_0] : memref<512x64xf32, #tpu.memory_space<vmem>>, vector<512x64xf32>
    %cst = arith.constant dense<0.000000e+00> : vector<64xf32>
    %1 = vector.multi_reduction <add>, %0, %cst [0] : vector<512x64xf32> to vector<64xf32>
    %2 = vector.shape_cast %1 : vector<64xf32> to vector<1x64xf32>
    %cst_1 = arith.constant 0.001953125 : f32
    %3 = vector.broadcast %cst_1 : f32 to vector<1x64xf32>
    %4 = arith.mulf %2, %3 : vector<1x64xf32>
    %5 = vector.broadcast %4 : vector<1x64xf32> to vector<512x64xf32>
    %6 = arith.subf %0, %5 : vector<512x64xf32>
    %7 = arith.mulf %6, %6 : vector<512x64xf32>
    %cst_2 = arith.constant dense<0.000000e+00> : vector<64xf32>
    %8 = vector.multi_reduction <add>, %7, %cst_2 [0] : vector<512x64xf32> to vector<64xf32>
    %9 = vector.shape_cast %8 : vector<64xf32> to vector<1x64xf32>
    %cst_3 = arith.constant 0.001953125 : f32
    %10 = vector.broadcast %cst_3 : f32 to vector<1x64xf32>
    %11 = arith.mulf %9, %10 : vector<1x64xf32>
    %cst_4 = arith.constant 9.99999974E-5 : f32
    %12 = vector.broadcast %cst_4 : f32 to vector<1x64xf32>
    %13 = arith.addf %11, %12 : vector<1x64xf32>
    %14 = math.rsqrt %13 : vector<1x64xf32>
    %15 = vector.broadcast %14 : vector<1x64xf32> to vector<512x64xf32>
    %16 = arith.mulf %6, %15 : vector<512x64xf32>
    %c0_5 = arith.constant 0 : index
    %c0_6 = arith.constant 0 : index
    %17 = vector.load %arg3[%c0_5, %c0_6] : memref<1x64xf32, #tpu.memory_space<vmem>>, vector<1x64xf32>
    %18 = vector.broadcast %17 : vector<1x64xf32> to vector<512x64xf32>
    %19 = arith.mulf %16, %18 : vector<512x64xf32>
    %c0_7 = arith.constant 0 : index
    %c0_8 = arith.constant 0 : index
    %20 = vector.load %arg4[%c0_7, %c0_8] : memref<1x64xf32, #tpu.memory_space<vmem>>, vector<1x64xf32>
    %21 = vector.broadcast %20 : vector<1x64xf32> to vector<512x64xf32>
    %22 = arith.addf %19, %21 : vector<512x64xf32>
    %cst_9 = arith.constant 0.000000e+00 : f32
    %23 = vector.broadcast %cst_9 : f32 to vector<512x64xf32>
    %24 = arith.maximumf %22, %23 : vector<512x64xf32>
    %c0_10 = arith.constant 0 : index
    %c0_11 = arith.constant 0 : index
    %25 = vector.load %arg5[%c0_10, %c0_11] : memref<64x128xf32, #tpu.memory_space<vmem>>, vector<64x128xf32>
    %cst_12 = arith.constant dense<0.000000e+00> : vector<512x128xf32>
    %26 = tpu.matmul %24, %25, %cst_12 {dimension_numbers = #tpu.dot_dimension_numbers<[1], [0], [0], [1], [0, 0, 1, 1], [], []>} : vector<512x64xf32>, vector<64x128xf32>, vector<512x128xf32> -> vector<512x128xf32>
    %c0_13 = arith.constant 0 : index
    %c0_14 = arith.constant 0 : index
    %27 = vector.load %arg6[%c0_13, %c0_14] : memref<1x128xf32, #tpu.memory_space<vmem>>, vector<1x128xf32>
    %28 = vector.broadcast %27 : vector<1x128xf32> to vector<512x128xf32>
    %29 = arith.addf %26, %28 : vector<512x128xf32>
    %c0_15 = arith.constant 0 : index
    %c0_16 = arith.constant 0 : index
    %30 = vector.load %arg8[%c0_15, %c0_16] : memref<512x128xf32, #tpu.memory_space<vmem>>, vector<512x128xf32>
    tpu.vector_store %arg8[%c0_15, %c0_16], %29 {strides = array<i32>} : memref<512x128xf32, #tpu.memory_space<vmem>>, vector<512x128xf32>,
    %c128_i32 = arith.constant 128 : i32
    %31 = arith.muli %arg0, %c128_i32 : i32
    %c0_i32 = arith.constant 0 : i32
    %32 = arith.addi %31, %c0_i32 : i32
    %33 = arith.index_cast %32 : i32 to index
    %34 = memref.load %arg1[%33] : memref<384xi32, #tpu.memory_space<smem>>
    %35 = arith.index_cast %34 : i32 to index
    %c0_17 = arith.constant 0 : index
    %36 = vector.load %arg8[%35, %c0_17] : memref<512x128xf32, #tpu.memory_space<vmem>>, vector<1x128xf32>
    %c0_18 = arith.constant 0 : index
    %c0_19 = arith.constant 0 : index
    %37 = vector.load %arg7[%c0_18, %c0_19] : memref<128x128xf32, #tpu.memory_space<vmem>>, vector<1x128xf32>
    tpu.vector_store %arg7[%c0_18, %c0_19], %36 {strides = array<i32>} : memref<128x128xf32, #tpu.memory_space<vmem>>, vector<1x128xf32>,
    %c1_i32 = arith.constant 1 : i32
    %38 = arith.addi %31, %c1_i32 : i32
    %39 = arith.index_cast %38 : i32 to index
    %40 = memref.load %arg1[%39] : memref<384xi32, #tpu.memory_space<smem>>
    %41 = arith.index_cast %40 : i32 to index
    %c0_20 = arith.constant 0 : index
    %42 = vector.load %arg8[%41, %c0_20] : memref<512x128xf32, #tpu.memory_space<vmem>>, vector<1x128xf32>
    %c1 = arith.constant 1 : index
    %c0_21 = arith.constant 0 : index
    %43 = vector.load %arg7[%c1, %c0_21] : memref<128x128xf32, #tpu.memory_space<vmem>>, vector<1x128xf32>
    tpu.vector_store %arg7[%c1, %c0_21], %42 {strides = array<i32>} : memref<128x128xf32, #tpu.memory_space<vmem>>, vector<1x128xf32>,
    %c2_i32 = arith.constant 2 : i32
    %44 = arith.addi %31, %c2_i32 : i32
    %45 = arith.index_cast %44 : i32 to index
    %46 = memref.load %arg1[%45] : memref<384xi32, #tpu.memory_space<smem>>
    %47 = arith.index_cast %46 : i32 to index
    %c0_22 = arith.constant 0 : index
    %48 = vector.load %arg8[%47, %c0_22] : memref<512x128xf32, #tpu.memory_space<vmem>>, vector<1x128xf32>
    %c2 = arith.constant 2 : index
    %c0_23 = arith.constant 0 : index
    %49 = vector.load %arg7[%c2, %c0_23] : memref<128x128xf32, #tpu.memory_space<vmem>>, vector<1x128xf32>
    tpu.vector_store %arg7[%c2, %c0_23], %48 {strides = array<i32>} : memref<128x128xf32, #tpu.memory_space<vmem>>, vector<1x128xf32>,
    %c3_i32 = arith.constant 3 : i32
    %50 = arith.addi %31, %c3_i32 : i32
    %51 = arith.index_cast %50 : i32 to index
    %52 = memref.load %arg1[%51] : memref<384xi32, #tpu.memory_space<smem>>
    %53 = arith.index_cast %52 : i32 to index
    %c0_24 = arith.constant 0 : index
    %54 = vector.load %arg8[%53, %c0_24] : memref<512x128xf32, #tpu.memory_space<vmem>>, vector<1x128xf32>
    %c3 = arith.constant 3 : index
    %c0_25 = arith.constant 0 : index
    %55 = vector.load %arg7[%c3, %c0_25] : memref<128x128xf32, #tpu.memory_space<vmem>>, vector<1x128xf32>
    tpu.vector_store %arg7[%c3, %c0_25], %54 {strides = array<i32>} : memref<128x128xf32, #tpu.memory_space<vmem>>, vector<1x128xf32>,
    %c4_i32 = arith.constant 4 : i32
    %56 = arith.addi %31, %c4_i32 : i32
    %57 = arith.index_cast %56 : i32 to index
    %58 = memref.load %arg1[%57] : memref<384xi32, #tpu.memory_space<smem>>
    %59 = arith.index_cast %58 : i32 to index
    %c0_26 = arith.constant 0 : index
    %60 = vector.load %arg8[%59, %c0_26] : memref<512x128xf32, #tpu.memory_space<vmem>>, vector<1x128xf32>
    %c4 = arith.constant 4 : index
    %c0_27 = arith.constant 0 : index
    %61 = vector.load %arg7[%c4, %c0_27] : memref<128x128xf32, #tpu.memory_space<vmem>>, vector<1x128xf32>
    tpu.vector_store %arg7[%c4, %c0_27], %60 {strides = array<i32>} : memref<128x128xf32, #tpu.memory_space<vmem>>, vector<1x128xf32>,
    %c5_i32 = arith.constant 5 : i32
    %62 = arith.addi %31, %c5_i32 : i32
    %63 = arith.index_cast %62 : i32 to index
    %64 = memref.load %arg1[%63] : memref<384xi32, #tpu.memory_space<smem>>
    %65 = arith.index_cast %64 : i32 to index
    %c0_28 = arith.constant 0 : index
    %66 = vector.load %arg8[%65, %c0_28] : memref<512x128xf32, #tpu.memory_space<vmem>>, vector<1x128xf32>
    %c5 = arith.constant 5 : index
    %c0_29 = arith.constant 0 : index
    %67 = vector.load %arg7[%c5, %c0_29] : memref<128x128xf32, #tpu.memory_space<vmem>>, vector<1x128xf32>
    tpu.vector_store %arg7[%c5, %c0_29], %66 {strides = array<i32>} : memref<128x128xf32, #tpu.memory_space<vmem>>, vector<1x128xf32>,
    %c6_i32 = arith.constant 6 : i32
    %68 = arith.addi %31, %c6_i32 : i32
    %69 = arith.index_cast %68 : i32 to index
    %70 = memref.load %arg1[%69] : memref<384xi32, #tpu.memory_space<smem>>
    %71 = arith.index_cast %70 : i32 to index
    %c0_30 = arith.constant 0 : index
    %72 = vector.load %arg8[%71, %c0_30] : memref<512x128xf32, #tpu.memory_space<vmem>>, vector<1x128xf32>
    %c6 = arith.constant 6 : index
    %c0_31 = arith.constant 0 : index
    %73 = vector.load %arg7[%c6, %c0_31] : memref<128x128xf32, #tpu.memory_space<vmem>>, vector<1x128xf32>
    tpu.vector_store %arg7[%c6, %c0_31], %72 {strides = array<i32>} : memref<128x128xf32, #tpu.memory_space<vmem>>, vector<1x128xf32>,
    %c7_i32 = arith.constant 7 : i32
    %74 = arith.addi %31, %c7_i32 : i32
    %75 = arith.index_cast %74 : i32 to index
    %76 = memref.load %arg1[%75] : memref<384xi32, #tpu.memory_space<smem>>
    %77 = arith.index_cast %76 : i32 to index
    %c0_32 = arith.constant 0 : index
    %78 = vector.load %arg8[%77, %c0_32] : memref<512x128xf32, #tpu.memory_space<vmem>>, vector<1x128xf32>
    %c7 = arith.constant 7 : index
    %c0_33 = arith.constant 0 : index
    %79 = vector.load %arg7[%c7, %c0_33] : memref<128x128xf32, #tpu.memory_space<vmem>>, vector<1x128xf32>
    tpu.vector_store %arg7[%c7, %c0_33], %78 {strides = array<i32>} : memref<128x128xf32, #tpu.memory_space<vmem>>, vector<1x128xf32>,
    %c8_i32 = arith.constant 8 : i32
    %80 = arith.addi %31, %c8_i32 : i32
    %81 = arith.index_cast %80 : i32 to index
    %82 = memref.load %arg1[%81] : memref<384xi32, #tpu.memory_space<smem>>
    %83 = arith.index_cast %82 : i32 to index
    %c0_34 = arith.constant 0 : index
    %84 = vector.load %arg8[%83, %c0_34] : memref<512x128xf32, #tpu.memory_space<vmem>>, vector<1x128xf32>
    %c8 = arith.constant 8 : index
    %c0_35 = arith.constant 0 : index
    %85 = vector.load %arg7[%c8, %c0_35] : memref<128x128xf32, #tpu.memory_space<vmem>>, vector<1x128xf32>
    tpu.vector_store %arg7[%c8, %c0_35], %84 {strides = array<i32>} : memref<128x128xf32, #tpu.memory_space<vmem>>, vector<1x128xf32>,
    %c9_i32 = arith.constant 9 : i32
    %86 = arith.addi %31, %c9_i32 : i32
    %87 = arith.index_cast %86 : i32 to index
    %88 = memref.load %arg1[%87] : memref<384xi32, #tpu.memory_space<smem>>
    %89 = arith.index_cast %88 : i32 to index
    %c0_36 = arith.constant 0 : index
    %90 = vector.load %arg8[%89, %c0_36] : memref<512x128xf32, #tpu.memory_space<vmem>>, vector<1x128xf32>
    %c9 = arith.constant 9 : index
    %c0_37 = arith.constant 0 : index
    %91 = vector.load %arg7[%c9, %c0_37] : memref<128x128xf32, #tpu.memory_space<vmem>>, vector<1x128xf32>
    tpu.vector_store %arg7[%c9, %c0_37], %90 {strides = array<i32>} : memref<128x128xf32, #tpu.memory_space<vmem>>, vector<1x128xf32>,
    %c10_i32 = arith.constant 10 : i32
    %92 = arith.addi %31, %c10_i32 : i32
    %93 = arith.index_cast %92 : i32 to index
    %94 = memref.load %arg1[%93] : memref<384xi32, #tpu.memory_space<smem>>
    %95 = arith.index_cast %94 : i32 to index
    %c0_38 = arith.constant 0 : index
    %96 = vector.load %arg8[%95, %c0_38] : memref<512x128xf32, #tpu.memory_space<vmem>>, vector<1x128xf32>
    %c10 = arith.constant 10 : index
    %c0_39 = arith.constant 0 : index
    %97 = vector.load %arg7[%c10, %c0_39] : memref<128x128xf32, #tpu.memory_space<vmem>>, vector<1x128xf32>
    tpu.vector_store %arg7[%c10, %c0_39], %96 {strides = array<i32>} : memref<128x128xf32, #tpu.memory_space<vmem>>, vector<1x128xf32>,
    %c11_i32 = arith.constant 11 : i32
    %98 = arith.addi %31, %c11_i32 : i32
    %99 = arith.index_cast %98 : i32 to index
    %100 = memref.load %arg1[%99] : memref<384xi32, #tpu.memory_space<smem>>
    %101 = arith.index_cast %100 : i32 to index
    %c0_40 = arith.constant 0 : index
    %102 = vector.load %arg8[%101, %c0_40] : memref<512x128xf32, #tpu.memory_space<vmem>>, vector<1x128xf32>
    %c11 = arith.constant 11 : index
    %c0_41 = arith.constant 0 : index
    %103 = vector.load %arg7[%c11, %c0_41] : memref<128x128xf32, #tpu.memory_space<vmem>>, vector<1x128xf32>
    tpu.vector_store %arg7[%c11, %c0_41], %102 {strides = array<i32>} : memref<128x128xf32, #tpu.memory_space<vmem>>, vector<1x128xf32>,
    %c12_i32 = arith.constant 12 : i32
    %104 = arith.addi %31, %c12_i32 : i32
    %105 = arith.index_cast %104 : i32 to index
    %106 = memref.load %arg1[%105] : memref<384xi32, #tpu.memory_space<smem>>
    %107 = arith.index_cast %106 : i32 to index
    %c0_42 = arith.constant 0 : index
    %108 = vector.load %arg8[%107, %c0_42] : memref<512x128xf32, #tpu.memory_space<vmem>>, vector<1x128xf32>
    %c12 = arith.constant 12 : index
    %c0_43 = arith.constant 0 : index
    %109 = vector.load %arg7[%c12, %c0_43] : memref<128x128xf32, #tpu.memory_space<vmem>>, vector<1x128xf32>
    tpu.vector_store %arg7[%c12, %c0_43], %108 {strides = array<i32>} : memref<128x128xf32, #tpu.memory_space<vmem>>, vector<1x128xf32>,
    %c13_i32 = arith.constant 13 : i32
    %110 = arith.addi %31, %c13_i32 : i32
    %111 = arith.index_cast %110 : i32 to index
    %112 = memref.load %arg1[%111] : memref<384xi32, #tpu.memory_space<smem>>
    %113 = arith.index_cast %112 : i32 to index
    %c0_44 = arith.constant 0 : index
    %114 = vector.load %arg8[%113, %c0_44] : memref<512x128xf32, #tpu.memory_space<vmem>>, vector<1x128xf32>
    %c13 = arith.constant 13 : index
    %c0_45 = arith.constant 0 : index
    %115 = vector.load %arg7[%c13, %c0_45] : memref<128x128xf32, #tpu.memory_space<vmem>>, vector<1x128xf32>
    tpu.vector_store %arg7[%c13, %c0_45], %114 {strides = array<i32>} : memref<128x128xf32, #tpu.memory_space<vmem>>, vector<1x128xf32>,
    %c14_i32 = arith.constant 14 : i32
    %116 = arith.addi %31, %c14_i32 : i32
    %117 = arith.index_cast %116 : i32 to index
    %118 = memref.load %arg1[%117] : memref<384xi32, #tpu.memory_space<smem>>
    %119 = arith.index_cast %118 : i32 to index
    %c0_46 = arith.constant 0 : index
    %120 = vector.load %arg8[%119, %c0_46] : memref<512x128xf32, #tpu.memory_space<vmem>>, vector<1x128xf32>
    %c14 = arith.constant 14 : index
    %c0_47 = arith.constant 0 : index
    %121 = vector.load %arg7[%c14, %c0_47] : memref<128x128xf32, #tpu.memory_space<vmem>>, vector<1x128xf32>
    tpu.vector_store %arg7[%c14, %c0_47], %120 {strides = array<i32>} : memref<128x128xf32, #tpu.memory_space<vmem>>, vector<1x128xf32>,
    %c15_i32 = arith.constant 15 : i32
    %122 = arith.addi %31, %c15_i32 : i32
    %123 = arith.index_cast %122 : i32 to index
    %124 = memref.load %arg1[%123] : memref<384xi32, #tpu.memory_space<smem>>
    %125 = arith.index_cast %124 : i32 to index
    %c0_48 = arith.constant 0 : index
    %126 = vector.load %arg8[%125, %c0_48] : memref<512x128xf32, #tpu.memory_space<vmem>>, vector<1x128xf32>
    %c15 = arith.constant 15 : index
    %c0_49 = arith.constant 0 : index
    %127 = vector.load %arg7[%c15, %c0_49] : memref<128x128xf32, #tpu.memory_space<vmem>>, vector<1x128xf32>
    tpu.vector_store %arg7[%c15, %c0_49], %126 {strides = array<i32>} : memref<128x128xf32, #tpu.memory_space<vmem>>, vector<1x128xf32>,
    %c16_i32 = arith.constant 16 : i32
    %128 = arith.addi %31, %c16_i32 : i32
    %129 = arith.index_cast %128 : i32 to index
    %130 = memref.load %arg1[%129] : memref<384xi32, #tpu.memory_space<smem>>
    %131 = arith.index_cast %130 : i32 to index
    %c0_50 = arith.constant 0 : index
    %132 = vector.load %arg8[%131, %c0_50] : memref<512x128xf32, #tpu.memory_space<vmem>>, vector<1x128xf32>
    %c16 = arith.constant 16 : index
    %c0_51 = arith.constant 0 : index
    %133 = vector.load %arg7[%c16, %c0_51] : memref<128x128xf32, #tpu.memory_space<vmem>>, vector<1x128xf32>
    tpu.vector_store %arg7[%c16, %c0_51], %132 {strides = array<i32>} : memref<128x128xf32, #tpu.memory_space<vmem>>, vector<1x128xf32>,
    %c17_i32 = arith.constant 17 : i32
    %134 = arith.addi %31, %c17_i32 : i32
    %135 = arith.index_cast %134 : i32 to index
    %136 = memref.load %arg1[%135] : memref<384xi32, #tpu.memory_space<smem>>
    %137 = arith.index_cast %136 : i32 to index
    %c0_52 = arith.constant 0 : index
    %138 = vector.load %arg8[%137, %c0_52] : memref<512x128xf32, #tpu.memory_space<vmem>>, vector<1x128xf32>
    %c17 = arith.constant 17 : index
    %c0_53 = arith.constant 0 : index
    %139 = vector.load %arg7[%c17, %c0_53] : memref<128x128xf32, #tpu.memory_space<vmem>>, vector<1x128xf32>
    tpu.vector_store %arg7[%c17, %c0_53], %138 {strides = array<i32>} : memref<128x128xf32, #tpu.memory_space<vmem>>, vector<1x128xf32>,
    %c18_i32 = arith.constant 18 : i32
    %140 = arith.addi %31, %c18_i32 : i32
    %141 = arith.index_cast %140 : i32 to index
    %142 = memref.load %arg1[%141] : memref<384xi32, #tpu.memory_space<smem>>
    %143 = arith.index_cast %142 : i32 to index
    %c0_54 = arith.constant 0 : index
    %144 = vector.load %arg8[%143, %c0_54] : memref<512x128xf32, #tpu.memory_space<vmem>>, vector<1x128xf32>
    %c18 = arith.constant 18 : index
    %c0_55 = arith.constant 0 : index
    %145 = vector.load %arg7[%c18, %c0_55] : memref<128x128xf32, #tpu.memory_space<vmem>>, vector<1x128xf32>
    tpu.vector_store %arg7[%c18, %c0_55], %144 {strides = array<i32>} : memref<128x128xf32, #tpu.memory_space<vmem>>, vector<1x128xf32>,
    %c19_i32 = arith.constant 19 : i32
    %146 = arith.addi %31, %c19_i32 : i32
    %147 = arith.index_cast %146 : i32 to index
    %148 = memref.load %arg1[%147] : memref<384xi32, #tpu.memory_space<smem>>
    %149 = arith.index_cast %148 : i32 to index
    %c0_56 = arith.constant 0 : index
    %150 = vector.load %arg8[%149, %c0_56] : memref<512x128xf32, #tpu.memory_space<vmem>>, vector<1x128xf32>
    %c19 = arith.constant 19 : index
    %c0_57 = arith.constant 0 : index
    %151 = vector.load %arg7[%c19, %c0_57] : memref<128x128xf32, #tpu.memory_space<vmem>>, vector<1x128xf32>
    tpu.vector_store %arg7[%c19, %c0_57], %150 {strides = array<i32>} : memref<128x128xf32, #tpu.memory_space<vmem>>, vector<1x128xf32>,
    %c20_i32 = arith.constant 20 : i32
    %152 = arith.addi %31, %c20_i32 : i32
    %153 = arith.index_cast %152 : i32 to index
    %154 = memref.load %arg1[%153] : memref<384xi32, #tpu.memory_space<smem>>
    %155 = arith.index_cast %154 : i32 to index
    %c0_58 = arith.constant 0 : index
    %156 = vector.load %arg8[%155, %c0_58] : memref<512x128xf32, #tpu.memory_space<vmem>>, vector<1x128xf32>
    %c20 = arith.constant 20 : index
    %c0_59 = arith.constant 0 : index
    %157 = vector.load %arg7[%c20, %c0_59] : memref<128x128xf32, #tpu.memory_space<vmem>>, vector<1x128xf32>
    tpu.vector_store %arg7[%c20, %c0_59], %156 {strides = array<i32>} : memref<128x128xf32, #tpu.memory_space<vmem>>, vector<1x128xf32>,
    %c21_i32 = arith.constant 21 : i32
    %158 = arith.addi %31, %c21_i32 : i32
    %159 = arith.index_cast %158 : i32 to index
    %160 = memref.load %arg1[%159] : memref<384xi32, #tpu.memory_space<smem>>
    %161 = arith.index_cast %160 : i32 to index
    %c0_60 = arith.constant 0 : index
    %162 = vector.load %arg8[%161, %c0_60] : memref<512x128xf32, #tpu.memory_space<vmem>>, vector<1x128xf32>
    %c21 = arith.constant 21 : index
    %c0_61 = arith.constant 0 : index
    %163 = vector.load %arg7[%c21, %c0_61] : memref<128x128xf32, #tpu.memory_space<vmem>>, vector<1x128xf32>
    tpu.vector_store %arg7[%c21, %c0_61], %162 {strides = array<i32>} : memref<128x128xf32, #tpu.memory_space<vmem>>, vector<1x128xf32>,
    %c22_i32 = arith.constant 22 : i32
    %164 = arith.addi %31, %c22_i32 : i32
    %165 = arith.index_cast %164 : i32 to index
    %166 = memref.load %arg1[%165] : memref<384xi32, #tpu.memory_space<smem>>
    %167 = arith.index_cast %166 : i32 to index
    %c0_62 = arith.constant 0 : index
    %168 = vector.load %arg8[%167, %c0_62] : memref<512x128xf32, #tpu.memory_space<vmem>>, vector<1x128xf32>
    %c22 = arith.constant 22 : index
    %c0_63 = arith.constant 0 : index
    %169 = vector.load %arg7[%c22, %c0_63] : memref<128x128xf32, #tpu.memory_space<vmem>>, vector<1x128xf32>
    tpu.vector_store %arg7[%c22, %c0_63], %168 {strides = array<i32>} : memref<128x128xf32, #tpu.memory_space<vmem>>, vector<1x128xf32>,
    %c23_i32 = arith.constant 23 : i32
    %170 = arith.addi %31, %c23_i32 : i32
    %171 = arith.index_cast %170 : i32 to index
    %172 = memref.load %arg1[%171] : memref<384xi32, #tpu.memory_space<smem>>
    %173 = arith.index_cast %172 : i32 to index
    %c0_64 = arith.constant 0 : index
    %174 = vector.load %arg8[%173, %c0_64] : memref<512x128xf32, #tpu.memory_space<vmem>>, vector<1x128xf32>
    %c23 = arith.constant 23 : index
    %c0_65 = arith.constant 0 : index
    %175 = vector.load %arg7[%c23, %c0_65] : memref<128x128xf32, #tpu.memory_space<vmem>>, vector<1x128xf32>
    tpu.vector_store %arg7[%c23, %c0_65], %174 {strides = array<i32>} : memref<128x128xf32, #tpu.memory_space<vmem>>, vector<1x128xf32>,
    %c24_i32 = arith.constant 24 : i32
    %176 = arith.addi %31, %c24_i32 : i32
    %177 = arith.index_cast %176 : i32 to index
    %178 = memref.load %arg1[%177] : memref<384xi32, #tpu.memory_space<smem>>
    %179 = arith.index_cast %178 : i32 to index
    %c0_66 = arith.constant 0 : index
    %180 = vector.load %arg8[%179, %c0_66] : memref<512x128xf32, #tpu.memory_space<vmem>>, vector<1x128xf32>
    %c24 = arith.constant 24 : index
    %c0_67 = arith.constant 0 : index
    %181 = vector.load %arg7[%c24, %c0_67] : memref<128x128xf32, #tpu.memory_space<vmem>>, vector<1x128xf32>
    tpu.vector_store %arg7[%c24, %c0_67], %180 {strides = array<i32>} : memref<128x128xf32, #tpu.memory_space<vmem>>, vector<1x128xf32>,
    %c25_i32 = arith.constant 25 : i32
    %182 = arith.addi %31, %c25_i32 : i32
    %183 = arith.index_cast %182 : i32 to index
    %184 = memref.load %arg1[%183] : memref<384xi32, #tpu.memory_space<smem>>
    %185 = arith.index_cast %184 : i32 to index
    %c0_68 = arith.constant 0 : index
    %186 = vector.load %arg8[%185, %c0_68] : memref<512x128xf32, #tpu.memory_space<vmem>>, vector<1x128xf32>
    %c25 = arith.constant 25 : index
    %c0_69 = arith.constant 0 : index
    %187 = vector.load %arg7[%c25, %c0_69] : memref<128x128xf32, #tpu.memory_space<vmem>>, vector<1x128xf32>
    tpu.vector_store %arg7[%c25, %c0_69], %186 {strides = array<i32>} : memref<128x128xf32, #tpu.memory_space<vmem>>, vector<1x128xf32>,
    %c26_i32 = arith.constant 26 : i32
    %188 = arith.addi %31, %c26_i32 : i32
    %189 = arith.index_cast %188 : i32 to index
    %190 = memref.load %arg1[%189] : memref<384xi32, #tpu.memory_space<smem>>
    %191 = arith.index_cast %190 : i32 to index
    %c0_70 = arith.constant 0 : index
    %192 = vector.load %arg8[%191, %c0_70] : memref<512x128xf32, #tpu.memory_space<vmem>>, vector<1x128xf32>
    %c26 = arith.constant 26 : index
    %c0_71 = arith.constant 0 : index
    %193 = vector.load %arg7[%c26, %c0_71] : memref<128x128xf32, #tpu.memory_space<vmem>>, vector<1x128xf32>
    tpu.vector_store %arg7[%c26, %c0_71], %192 {strides = array<i32>} : memref<128x128xf32, #tpu.memory_space<vmem>>, vector<1x128xf32>,
    %c27_i32 = arith.constant 27 : i32
    %194 = arith.addi %31, %c27_i32 : i32
    %195 = arith.index_cast %194 : i32 to index
    %196 = memref.load %arg1[%195] : memref<384xi32, #tpu.memory_space<smem>>
    %197 = arith.index_cast %196 : i32 to index
    %c0_72 = arith.constant 0 : index
    %198 = vector.load %arg8[%197, %c0_72] : memref<512x128xf32, #tpu.memory_space<vmem>>, vector<1x128xf32>
    %c27 = arith.constant 27 : index
    %c0_73 = arith.constant 0 : index
    %199 = vector.load %arg7[%c27, %c0_73] : memref<128x128xf32, #tpu.memory_space<vmem>>, vector<1x128xf32>
    tpu.vector_store %arg7[%c27, %c0_73], %198 {strides = array<i32>} : memref<128x128xf32, #tpu.memory_space<vmem>>, vector<1x128xf32>,
    %c28_i32 = arith.constant 28 : i32
    %200 = arith.addi %31, %c28_i32 : i32
    %201 = arith.index_cast %200 : i32 to index
    %202 = memref.load %arg1[%201] : memref<384xi32, #tpu.memory_space<smem>>
    %203 = arith.index_cast %202 : i32 to index
    %c0_74 = arith.constant 0 : index
    %204 = vector.load %arg8[%203, %c0_74] : memref<512x128xf32, #tpu.memory_space<vmem>>, vector<1x128xf32>
    %c28 = arith.constant 28 : index
    %c0_75 = arith.constant 0 : index
    %205 = vector.load %arg7[%c28, %c0_75] : memref<128x128xf32, #tpu.memory_space<vmem>>, vector<1x128xf32>
    tpu.vector_store %arg7[%c28, %c0_75], %204 {strides = array<i32>} : memref<128x128xf32, #tpu.memory_space<vmem>>, vector<1x128xf32>,
    %c29_i32 = arith.constant 29 : i32
    %206 = arith.addi %31, %c29_i32 : i32
    %207 = arith.index_cast %206 : i32 to index
    %208 = memref.load %arg1[%207] : memref<384xi32, #tpu.memory_space<smem>>
    %209 = arith.index_cast %208 : i32 to index
    %c0_76 = arith.constant 0 : index
    %210 = vector.load %arg8[%209, %c0_76] : memref<512x128xf32, #tpu.memory_space<vmem>>, vector<1x128xf32>
    %c29 = arith.constant 29 : index
    %c0_77 = arith.constant 0 : index
    %211 = vector.load %arg7[%c29, %c0_77] : memref<128x128xf32, #tpu.memory_space<vmem>>, vector<1x128xf32>
    tpu.vector_store %arg7[%c29, %c0_77], %210 {strides = array<i32>} : memref<128x128xf32, #tpu.memory_space<vmem>>, vector<1x128xf32>,
    %c30_i32 = arith.constant 30 : i32
    %212 = arith.addi %31, %c30_i32 : i32
    %213 = arith.index_cast %212 : i32 to index
    %214 = memref.load %arg1[%213] : memref<384xi32, #tpu.memory_space<smem>>
    %215 = arith.index_cast %214 : i32 to index
    %c0_78 = arith.constant 0 : index
    %216 = vector.load %arg8[%215, %c0_78] : memref<512x128xf32, #tpu.memory_space<vmem>>, vector<1x128xf32>
    %c30 = arith.constant 30 : index
    %c0_79 = arith.constant 0 : index
    %217 = vector.load %arg7[%c30, %c0_79] : memref<128x128xf32, #tpu.memory_space<vmem>>, vector<1x128xf32>
    tpu.vector_store %arg7[%c30, %c0_79], %216 {strides = array<i32>} : memref<128x128xf32, #tpu.memory_space<vmem>>, vector<1x128xf32>,
    %c31_i32 = arith.constant 31 : i32
    %218 = arith.addi %31, %c31_i32 : i32
    %219 = arith.index_cast %218 : i32 to index
    %220 = memref.load %arg1[%219] : memref<384xi32, #tpu.memory_space<smem>>
    %221 = arith.index_cast %220 : i32 to index
    %c0_80 = arith.constant 0 : index
    %222 = vector.load %arg8[%221, %c0_80] : memref<512x128xf32, #tpu.memory_space<vmem>>, vector<1x128xf32>
    %c31 = arith.constant 31 : index
    %c0_81 = arith.constant 0 : index
    %223 = vector.load %arg7[%c31, %c0_81] : memref<128x128xf32, #tpu.memory_space<vmem>>, vector<1x128xf32>
    tpu.vector_store %arg7[%c31, %c0_81], %222 {strides = array<i32>} : memref<128x128xf32, #tpu.memory_space<vmem>>, vector<1x128xf32>,
    %c32_i32 = arith.constant 32 : i32
    %224 = arith.addi %31, %c32_i32 : i32
    %225 = arith.index_cast %224 : i32 to index
    %226 = memref.load %arg1[%225] : memref<384xi32, #tpu.memory_space<smem>>
    %227 = arith.index_cast %226 : i32 to index
    %c0_82 = arith.constant 0 : index
    %228 = vector.load %arg8[%227, %c0_82] : memref<512x128xf32, #tpu.memory_space<vmem>>, vector<1x128xf32>
    %c32 = arith.constant 32 : index
    %c0_83 = arith.constant 0 : index
    %229 = vector.load %arg7[%c32, %c0_83] : memref<128x128xf32, #tpu.memory_space<vmem>>, vector<1x128xf32>
    tpu.vector_store %arg7[%c32, %c0_83], %228 {strides = array<i32>} : memref<128x128xf32, #tpu.memory_space<vmem>>, vector<1x128xf32>,
    %c33_i32 = arith.constant 33 : i32
    %230 = arith.addi %31, %c33_i32 : i32
    %231 = arith.index_cast %230 : i32 to index
    %232 = memref.load %arg1[%231] : memref<384xi32, #tpu.memory_space<smem>>
    %233 = arith.index_cast %232 : i32 to index
    %c0_84 = arith.constant 0 : index
    %234 = vector.load %arg8[%233, %c0_84] : memref<512x128xf32, #tpu.memory_space<vmem>>, vector<1x128xf32>
    %c33 = arith.constant 33 : index
    %c0_85 = arith.constant 0 : index
    %235 = vector.load %arg7[%c33, %c0_85] : memref<128x128xf32, #tpu.memory_space<vmem>>, vector<1x128xf32>
    tpu.vector_store %arg7[%c33, %c0_85], %234 {strides = array<i32>} : memref<128x128xf32, #tpu.memory_space<vmem>>, vector<1x128xf32>,
    %c34_i32 = arith.constant 34 : i32
    %236 = arith.addi %31, %c34_i32 : i32
    %237 = arith.index_cast %236 : i32 to index
    %238 = memref.load %arg1[%237] : memref<384xi32, #tpu.memory_space<smem>>
    %239 = arith.index_cast %238 : i32 to index
    %c0_86 = arith.constant 0 : index
    %240 = vector.load %arg8[%239, %c0_86] : memref<512x128xf32, #tpu.memory_space<vmem>>, vector<1x128xf32>
    %c34 = arith.constant 34 : index
    %c0_87 = arith.constant 0 : index
    %241 = vector.load %arg7[%c34, %c0_87] : memref<128x128xf32, #tpu.memory_space<vmem>>, vector<1x128xf32>
    tpu.vector_store %arg7[%c34, %c0_87], %240 {strides = array<i32>} : memref<128x128xf32, #tpu.memory_space<vmem>>, vector<1x128xf32>,
    %c35_i32 = arith.constant 35 : i32
    %242 = arith.addi %31, %c35_i32 : i32
    %243 = arith.index_cast %242 : i32 to index
    %244 = memref.load %arg1[%243] : memref<384xi32, #tpu.memory_space<smem>>
    %245 = arith.index_cast %244 : i32 to index
    %c0_88 = arith.constant 0 : index
    %246 = vector.load %arg8[%245, %c0_88] : memref<512x128xf32, #tpu.memory_space<vmem>>, vector<1x128xf32>
    %c35 = arith.constant 35 : index
    %c0_89 = arith.constant 0 : index
    %247 = vector.load %arg7[%c35, %c0_89] : memref<128x128xf32, #tpu.memory_space<vmem>>, vector<1x128xf32>
    tpu.vector_store %arg7[%c35, %c0_89], %246 {strides = array<i32>} : memref<128x128xf32, #tpu.memory_space<vmem>>, vector<1x128xf32>,
    %c36_i32 = arith.constant 36 : i32
    %248 = arith.addi %31, %c36_i32 : i32
    %249 = arith.index_cast %248 : i32 to index
    %250 = memref.load %arg1[%249] : memref<384xi32, #tpu.memory_space<smem>>
    %251 = arith.index_cast %250 : i32 to index
    %c0_90 = arith.constant 0 : index
    %252 = vector.load %arg8[%251, %c0_90] : memref<512x128xf32, #tpu.memory_space<vmem>>, vector<1x128xf32>
    %c36 = arith.constant 36 : index
    %c0_91 = arith.constant 0 : index
    %253 = vector.load %arg7[%c36, %c0_91] : memref<128x128xf32, #tpu.memory_space<vmem>>, vector<1x128xf32>
    tpu.vector_store %arg7[%c36, %c0_91], %252 {strides = array<i32>} : memref<128x128xf32, #tpu.memory_space<vmem>>, vector<1x128xf32>,
    %c37_i32 = arith.constant 37 : i32
    %254 = arith.addi %31, %c37_i32 : i32
    %255 = arith.index_cast %254 : i32 to index
    %256 = memref.load %arg1[%255] : memref<384xi32, #tpu.memory_space<smem>>
    %257 = arith.index_cast %256 : i32 to index
    %c0_92 = arith.constant 0 : index
    %258 = vector.load %arg8[%257, %c0_92] : memref<512x128xf32, #tpu.memory_space<vmem>>, vector<1x128xf32>
    %c37 = arith.constant 37 : index
    %c0_93 = arith.constant 0 : index
    %259 = vector.load %arg7[%c37, %c0_93] : memref<128x128xf32, #tpu.memory_space<vmem>>, vector<1x128xf32>
    tpu.vector_store %arg7[%c37, %c0_93], %258 {strides = array<i32>} : memref<128x128xf32, #tpu.memory_space<vmem>>, vector<1x128xf32>,
    %c38_i32 = arith.constant 38 : i32
    %260 = arith.addi %31, %c38_i32 : i32
    %261 = arith.index_cast %260 : i32 to index
    %262 = memref.load %arg1[%261] : memref<384xi32, #tpu.memory_space<smem>>
    %263 = arith.index_cast %262 : i32 to index
    %c0_94 = arith.constant 0 : index
    %264 = vector.load %arg8[%263, %c0_94] : memref<512x128xf32, #tpu.memory_space<vmem>>, vector<1x128xf32>
    %c38 = arith.constant 38 : index
    %c0_95 = arith.constant 0 : index
    %265 = vector.load %arg7[%c38, %c0_95] : memref<128x128xf32, #tpu.memory_space<vmem>>, vector<1x128xf32>
    tpu.vector_store %arg7[%c38, %c0_95], %264 {strides = array<i32>} : memref<128x128xf32, #tpu.memory_space<vmem>>, vector<1x128xf32>,
    %c39_i32 = arith.constant 39 : i32
    %266 = arith.addi %31, %c39_i32 : i32
    %267 = arith.index_cast %266 : i32 to index
    %268 = memref.load %arg1[%267] : memref<384xi32, #tpu.memory_space<smem>>
    %269 = arith.index_cast %268 : i32 to index
    %c0_96 = arith.constant 0 : index
    %270 = vector.load %arg8[%269, %c0_96] : memref<512x128xf32, #tpu.memory_space<vmem>>, vector<1x128xf32>
    %c39 = arith.constant 39 : index
    %c0_97 = arith.constant 0 : index
    %271 = vector.load %arg7[%c39, %c0_97] : memref<128x128xf32, #tpu.memory_space<vmem>>, vector<1x128xf32>
    tpu.vector_store %arg7[%c39, %c0_97], %270 {strides = array<i32>} : memref<128x128xf32, #tpu.memory_space<vmem>>, vector<1x128xf32>,
    %c40_i32 = arith.constant 40 : i32
    %272 = arith.addi %31, %c40_i32 : i32
    %273 = arith.index_cast %272 : i32 to index
    %274 = memref.load %arg1[%273] : memref<384xi32, #tpu.memory_space<smem>>
    %275 = arith.index_cast %274 : i32 to index
    %c0_98 = arith.constant 0 : index
    %276 = vector.load %arg8[%275, %c0_98] : memref<512x128xf32, #tpu.memory_space<vmem>>, vector<1x128xf32>
    %c40 = arith.constant 40 : index
    %c0_99 = arith.constant 0 : index
    %277 = vector.load %arg7[%c40, %c0_99] : memref<128x128xf32, #tpu.memory_space<vmem>>, vector<1x128xf32>
    tpu.vector_store %arg7[%c40, %c0_99], %276 {strides = array<i32>} : memref<128x128xf32, #tpu.memory_space<vmem>>, vector<1x128xf32>,
    %c41_i32 = arith.constant 41 : i32
    %278 = arith.addi %31, %c41_i32 : i32
    %279 = arith.index_cast %278 : i32 to index
    %280 = memref.load %arg1[%279] : memref<384xi32, #tpu.memory_space<smem>>
    %281 = arith.index_cast %280 : i32 to index
    %c0_100 = arith.constant 0 : index
    %282 = vector.load %arg8[%281, %c0_100] : memref<512x128xf32, #tpu.memory_space<vmem>>, vector<1x128xf32>
    %c41 = arith.constant 41 : index
    %c0_101 = arith.constant 0 : index
    %283 = vector.load %arg7[%c41, %c0_101] : memref<128x128xf32, #tpu.memory_space<vmem>>, vector<1x128xf32>
    tpu.vector_store %arg7[%c41, %c0_101], %282 {strides = array<i32>} : memref<128x128xf32, #tpu.memory_space<vmem>>, vector<1x128xf32>,
    %c42_i32 = arith.constant 42 : i32
    %284 = arith.addi %31, %c42_i32 : i32
    %285 = arith.index_cast %284 : i32 to index
    %286 = memref.load %arg1[%285] : memref<384xi32, #tpu.memory_space<smem>>
    %287 = arith.index_cast %286 : i32 to index
    %c0_102 = arith.constant 0 : index
    %288 = vector.load %arg8[%287, %c0_102] : memref<512x128xf32, #tpu.memory_space<vmem>>, vector<1x128xf32>
    %c42 = arith.constant 42 : index
    %c0_103 = arith.constant 0 : index
    %289 = vector.load %arg7[%c42, %c0_103] : memref<128x128xf32, #tpu.memory_space<vmem>>, vector<1x128xf32>
    tpu.vector_store %arg7[%c42, %c0_103], %288 {strides = array<i32>} : memref<128x128xf32, #tpu.memory_space<vmem>>, vector<1x128xf32>,
    %c43_i32 = arith.constant 43 : i32
    %290 = arith.addi %31, %c43_i32 : i32
    %291 = arith.index_cast %290 : i32 to index
    %292 = memref.load %arg1[%291] : memref<384xi32, #tpu.memory_space<smem>>
    %293 = arith.index_cast %292 : i32 to index
    %c0_104 = arith.constant 0 : index
    %294 = vector.load %arg8[%293, %c0_104] : memref<512x128xf32, #tpu.memory_space<vmem>>, vector<1x128xf32>
    %c43 = arith.constant 43 : index
    %c0_105 = arith.constant 0 : index
    %295 = vector.load %arg7[%c43, %c0_105] : memref<128x128xf32, #tpu.memory_space<vmem>>, vector<1x128xf32>
    tpu.vector_store %arg7[%c43, %c0_105], %294 {strides = array<i32>} : memref<128x128xf32, #tpu.memory_space<vmem>>, vector<1x128xf32>,
    %c44_i32 = arith.constant 44 : i32
    %296 = arith.addi %31, %c44_i32 : i32
    %297 = arith.index_cast %296 : i32 to index
    %298 = memref.load %arg1[%297] : memref<384xi32, #tpu.memory_space<smem>>
    %299 = arith.index_cast %298 : i32 to index
    %c0_106 = arith.constant 0 : index
    %300 = vector.load %arg8[%299, %c0_106] : memref<512x128xf32, #tpu.memory_space<vmem>>, vector<1x128xf32>
    %c44 = arith.constant 44 : index
    %c0_107 = arith.constant 0 : index
    %301 = vector.load %arg7[%c44, %c0_107] : memref<128x128xf32, #tpu.memory_space<vmem>>, vector<1x128xf32>
    tpu.vector_store %arg7[%c44, %c0_107], %300 {strides = array<i32>} : memref<128x128xf32, #tpu.memory_space<vmem>>, vector<1x128xf32>,
    %c45_i32 = arith.constant 45 : i32
    %302 = arith.addi %31, %c45_i32 : i32
    %303 = arith.index_cast %302 : i32 to index
    %304 = memref.load %arg1[%303] : memref<384xi32, #tpu.memory_space<smem>>
    %305 = arith.index_cast %304 : i32 to index
    %c0_108 = arith.constant 0 : index
    %306 = vector.load %arg8[%305, %c0_108] : memref<512x128xf32, #tpu.memory_space<vmem>>, vector<1x128xf32>
    %c45 = arith.constant 45 : index
    %c0_109 = arith.constant 0 : index
    %307 = vector.load %arg7[%c45, %c0_109] : memref<128x128xf32, #tpu.memory_space<vmem>>, vector<1x128xf32>
    tpu.vector_store %arg7[%c45, %c0_109], %306 {strides = array<i32>} : memref<128x128xf32, #tpu.memory_space<vmem>>, vector<1x128xf32>,
    %c46_i32 = arith.constant 46 : i32
    %308 = arith.addi %31, %c46_i32 : i32
    %309 = arith.index_cast %308 : i32 to index
    %310 = memref.load %arg1[%309] : memref<384xi32, #tpu.memory_space<smem>>
    %311 = arith.index_cast %310 : i32 to index
    %c0_110 = arith.constant 0 : index
    %312 = vector.load %arg8[%311, %c0_110] : memref<512x128xf32, #tpu.memory_space<vmem>>, vector<1x128xf32>
    %c46 = arith.constant 46 : index
    %c0_111 = arith.constant 0 : index
    %313 = vector.load %arg7[%c46, %c0_111] : memref<128x128xf32, #tpu.memory_space<vmem>>, vector<1x128xf32>
    tpu.vector_store %arg7[%c46, %c0_111], %312 {strides = array<i32>} : memref<128x128xf32, #tpu.memory_space<vmem>>, vector<1x128xf32>,
    %c47_i32 = arith.constant 47 : i32
    %314 = arith.addi %31, %c47_i32 : i32
    %315 = arith.index_cast %314 : i32 to index
    %316 = memref.load %arg1[%315] : memref<384xi32, #tpu.memory_space<smem>>
    %317 = arith.index_cast %316 : i32 to index
    %c0_112 = arith.constant 0 : index
    %318 = vector.load %arg8[%317, %c0_112] : memref<512x128xf32, #tpu.memory_space<vmem>>, vector<1x128xf32>
    %c47 = arith.constant 47 : index
    %c0_113 = arith.constant 0 : index
    %319 = vector.load %arg7[%c47, %c0_113] : memref<128x128xf32, #tpu.memory_space<vmem>>, vector<1x128xf32>
    tpu.vector_store %arg7[%c47, %c0_113], %318 {strides = array<i32>} : memref<128x128xf32, #tpu.memory_space<vmem>>, vector<1x128xf32>,
    %c48_i32 = arith.constant 48 : i32
    %320 = arith.addi %31, %c48_i32 : i32
    %321 = arith.index_cast %320 : i32 to index
    %322 = memref.load %arg1[%321] : memref<384xi32, #tpu.memory_space<smem>>
    %323 = arith.index_cast %322 : i32 to index
    %c0_114 = arith.constant 0 : index
    %324 = vector.load %arg8[%323, %c0_114] : memref<512x128xf32, #tpu.memory_space<vmem>>, vector<1x128xf32>
    %c48 = arith.constant 48 : index
    %c0_115 = arith.constant 0 : index
    %325 = vector.load %arg7[%c48, %c0_115] : memref<128x128xf32, #tpu.memory_space<vmem>>, vector<1x128xf32>
    tpu.vector_store %arg7[%c48, %c0_115], %324 {strides = array<i32>} : memref<128x128xf32, #tpu.memory_space<vmem>>, vector<1x128xf32>,
    %c49_i32 = arith.constant 49 : i32
    %326 = arith.addi %31, %c49_i32 : i32
    %327 = arith.index_cast %326 : i32 to index
    %328 = memref.load %arg1[%327] : memref<384xi32, #tpu.memory_space<smem>>
    %329 = arith.index_cast %328 : i32 to index
    %c0_116 = arith.constant 0 : index
    %330 = vector.load %arg8[%329, %c0_116] : memref<512x128xf32, #tpu.memory_space<vmem>>, vector<1x128xf32>
    %c49 = arith.constant 49 : index
    %c0_117 = arith.constant 0 : index
    %331 = vector.load %arg7[%c49, %c0_117] : memref<128x128xf32, #tpu.memory_space<vmem>>, vector<1x128xf32>
    tpu.vector_store %arg7[%c49, %c0_117], %330 {strides = array<i32>} : memref<128x128xf32, #tpu.memory_space<vmem>>, vector<1x128xf32>,
    %c50_i32 = arith.constant 50 : i32
    %332 = arith.addi %31, %c50_i32 : i32
    %333 = arith.index_cast %332 : i32 to index
    %334 = memref.load %arg1[%333] : memref<384xi32, #tpu.memory_space<smem>>
    %335 = arith.index_cast %334 : i32 to index
    %c0_118 = arith.constant 0 : index
    %336 = vector.load %arg8[%335, %c0_118] : memref<512x128xf32, #tpu.memory_space<vmem>>, vector<1x128xf32>
    %c50 = arith.constant 50 : index
    %c0_119 = arith.constant 0 : index
    %337 = vector.load %arg7[%c50, %c0_119] : memref<128x128xf32, #tpu.memory_space<vmem>>, vector<1x128xf32>
    tpu.vector_store %arg7[%c50, %c0_119], %336 {strides = array<i32>} : memref<128x128xf32, #tpu.memory_space<vmem>>, vector<1x128xf32>,
    %c51_i32 = arith.constant 51 : i32
    %338 = arith.addi %31, %c51_i32 : i32
    %339 = arith.index_cast %338 : i32 to index
    %340 = memref.load %arg1[%339] : memref<384xi32, #tpu.memory_space<smem>>
    %341 = arith.index_cast %340 : i32 to index
    %c0_120 = arith.constant 0 : index
    %342 = vector.load %arg8[%341, %c0_120] : memref<512x128xf32, #tpu.memory_space<vmem>>, vector<1x128xf32>
    %c51 = arith.constant 51 : index
    %c0_121 = arith.constant 0 : index
    %343 = vector.load %arg7[%c51, %c0_121] : memref<128x128xf32, #tpu.memory_space<vmem>>, vector<1x128xf32>
    tpu.vector_store %arg7[%c51, %c0_121], %342 {strides = array<i32>} : memref<128x128xf32, #tpu.memory_space<vmem>>, vector<1x128xf32>,
    %c52_i32 = arith.constant 52 : i32
    %344 = arith.addi %31, %c52_i32 : i32
    %345 = arith.index_cast %344 : i32 to index
    %346 = memref.load %arg1[%345] : memref<384xi32, #tpu.memory_space<smem>>
    %347 = arith.index_cast %346 : i32 to index
    %c0_122 = arith.constant 0 : index
    %348 = vector.load %arg8[%347, %c0_122] : memref<512x128xf32, #tpu.memory_space<vmem>>, vector<1x128xf32>
    %c52 = arith.constant 52 : index
    %c0_123 = arith.constant 0 : index
    %349 = vector.load %arg7[%c52, %c0_123] : memref<128x128xf32, #tpu.memory_space<vmem>>, vector<1x128xf32>
    tpu.vector_store %arg7[%c52, %c0_123], %348 {strides = array<i32>} : memref<128x128xf32, #tpu.memory_space<vmem>>, vector<1x128xf32>,
    %c53_i32 = arith.constant 53 : i32
    %350 = arith.addi %31, %c53_i32 : i32
    %351 = arith.index_cast %350 : i32 to index
    %352 = memref.load %arg1[%351] : memref<384xi32, #tpu.memory_space<smem>>
    %353 = arith.index_cast %352 : i32 to index
    %c0_124 = arith.constant 0 : index
    %354 = vector.load %arg8[%353, %c0_124] : memref<512x128xf32, #tpu.memory_space<vmem>>, vector<1x128xf32>
    %c53 = arith.constant 53 : index
    %c0_125 = arith.constant 0 : index
    %355 = vector.load %arg7[%c53, %c0_125] : memref<128x128xf32, #tpu.memory_space<vmem>>, vector<1x128xf32>
    tpu.vector_store %arg7[%c53, %c0_125], %354 {strides = array<i32>} : memref<128x128xf32, #tpu.memory_space<vmem>>, vector<1x128xf32>,
    %c54_i32 = arith.constant 54 : i32
    %356 = arith.addi %31, %c54_i32 : i32
    %357 = arith.index_cast %356 : i32 to index
    %358 = memref.load %arg1[%357] : memref<384xi32, #tpu.memory_space<smem>>
    %359 = arith.index_cast %358 : i32 to index
    %c0_126 = arith.constant 0 : index
    %360 = vector.load %arg8[%359, %c0_126] : memref<512x128xf32, #tpu.memory_space<vmem>>, vector<1x128xf32>
    %c54 = arith.constant 54 : index
    %c0_127 = arith.constant 0 : index
    %361 = vector.load %arg7[%c54, %c0_127] : memref<128x128xf32, #tpu.memory_space<vmem>>, vector<1x128xf32>
    tpu.vector_store %arg7[%c54, %c0_127], %360 {strides = array<i32>} : memref<128x128xf32, #tpu.memory_space<vmem>>, vector<1x128xf32>,
    %c55_i32 = arith.constant 55 : i32
    %362 = arith.addi %31, %c55_i32 : i32
    %363 = arith.index_cast %362 : i32 to index
    %364 = memref.load %arg1[%363] : memref<384xi32, #tpu.memory_space<smem>>
    %365 = arith.index_cast %364 : i32 to index
    %c0_128 = arith.constant 0 : index
    %366 = vector.load %arg8[%365, %c0_128] : memref<512x128xf32, #tpu.memory_space<vmem>>, vector<1x128xf32>
    %c55 = arith.constant 55 : index
    %c0_129 = arith.constant 0 : index
    %367 = vector.load %arg7[%c55, %c0_129] : memref<128x128xf32, #tpu.memory_space<vmem>>, vector<1x128xf32>
    tpu.vector_store %arg7[%c55, %c0_129], %366 {strides = array<i32>} : memref<128x128xf32, #tpu.memory_space<vmem>>, vector<1x128xf32>,
    %c56_i32 = arith.constant 56 : i32
    %368 = arith.addi %31, %c56_i32 : i32
    %369 = arith.index_cast %368 : i32 to index
    %370 = memref.load %arg1[%369] : memref<384xi32, #tpu.memory_space<smem>>
    %371 = arith.index_cast %370 : i32 to index
    %c0_130 = arith.constant 0 : index
    %372 = vector.load %arg8[%371, %c0_130] : memref<512x128xf32, #tpu.memory_space<vmem>>, vector<1x128xf32>
    %c56 = arith.constant 56 : index
    %c0_131 = arith.constant 0 : index
    %373 = vector.load %arg7[%c56, %c0_131] : memref<128x128xf32, #tpu.memory_space<vmem>>, vector<1x128xf32>
    tpu.vector_store %arg7[%c56, %c0_131], %372 {strides = array<i32>} : memref<128x128xf32, #tpu.memory_space<vmem>>, vector<1x128xf32>,
    %c57_i32 = arith.constant 57 : i32
    %374 = arith.addi %31, %c57_i32 : i32
    %375 = arith.index_cast %374 : i32 to index
    %376 = memref.load %arg1[%375] : memref<384xi32, #tpu.memory_space<smem>>
    %377 = arith.index_cast %376 : i32 to index
    %c0_132 = arith.constant 0 : index
    %378 = vector.load %arg8[%377, %c0_132] : memref<512x128xf32, #tpu.memory_space<vmem>>, vector<1x128xf32>
    %c57 = arith.constant 57 : index
    %c0_133 = arith.constant 0 : index
    %379 = vector.load %arg7[%c57, %c0_133] : memref<128x128xf32, #tpu.memory_space<vmem>>, vector<1x128xf32>
    tpu.vector_store %arg7[%c57, %c0_133], %378 {strides = array<i32>} : memref<128x128xf32, #tpu.memory_space<vmem>>, vector<1x128xf32>,
    %c58_i32 = arith.constant 58 : i32
    %380 = arith.addi %31, %c58_i32 : i32
    %381 = arith.index_cast %380 : i32 to index
    %382 = memref.load %arg1[%381] : memref<384xi32, #tpu.memory_space<smem>>
    %383 = arith.index_cast %382 : i32 to index
    %c0_134 = arith.constant 0 : index
    %384 = vector.load %arg8[%383, %c0_134] : memref<512x128xf32, #tpu.memory_space<vmem>>, vector<1x128xf32>
    %c58 = arith.constant 58 : index
    %c0_135 = arith.constant 0 : index
    %385 = vector.load %arg7[%c58, %c0_135] : memref<128x128xf32, #tpu.memory_space<vmem>>, vector<1x128xf32>
    tpu.vector_store %arg7[%c58, %c0_135], %384 {strides = array<i32>} : memref<128x128xf32, #tpu.memory_space<vmem>>, vector<1x128xf32>,
    %c59_i32 = arith.constant 59 : i32
    %386 = arith.addi %31, %c59_i32 : i32
    %387 = arith.index_cast %386 : i32 to index
    %388 = memref.load %arg1[%387] : memref<384xi32, #tpu.memory_space<smem>>
    %389 = arith.index_cast %388 : i32 to index
    %c0_136 = arith.constant 0 : index
    %390 = vector.load %arg8[%389, %c0_136] : memref<512x128xf32, #tpu.memory_space<vmem>>, vector<1x128xf32>
    %c59 = arith.constant 59 : index
    %c0_137 = arith.constant 0 : index
    %391 = vector.load %arg7[%c59, %c0_137] : memref<128x128xf32, #tpu.memory_space<vmem>>, vector<1x128xf32>
    tpu.vector_store %arg7[%c59, %c0_137], %390 {strides = array<i32>} : memref<128x128xf32, #tpu.memory_space<vmem>>, vector<1x128xf32>,
    %c60_i32 = arith.constant 60 : i32
    %392 = arith.addi %31, %c60_i32 : i32
    %393 = arith.index_cast %392 : i32 to index
    %394 = memref.load %arg1[%393] : memref<384xi32, #tpu.memory_space<smem>>
    %395 = arith.index_cast %394 : i32 to index
    %c0_138 = arith.constant 0 : index
    %396 = vector.load %arg8[%395, %c0_138] : memref<512x128xf32, #tpu.memory_space<vmem>>, vector<1x128xf32>
    %c60 = arith.constant 60 : index
    %c0_139 = arith.constant 0 : index
    %397 = vector.load %arg7[%c60, %c0_139] : memref<128x128xf32, #tpu.memory_space<vmem>>, vector<1x128xf32>
    tpu.vector_store %arg7[%c60, %c0_139], %396 {strides = array<i32>} : memref<128x128xf32, #tpu.memory_space<vmem>>, vector<1x128xf32>,
    %c61_i32 = arith.constant 61 : i32
    %398 = arith.addi %31, %c61_i32 : i32
    %399 = arith.index_cast %398 : i32 to index
    %400 = memref.load %arg1[%399] : memref<384xi32, #tpu.memory_space<smem>>
    %401 = arith.index_cast %400 : i32 to index
    %c0_140 = arith.constant 0 : index
    %402 = vector.load %arg8[%401, %c0_140] : memref<512x128xf32, #tpu.memory_space<vmem>>, vector<1x128xf32>
    %c61 = arith.constant 61 : index
    %c0_141 = arith.constant 0 : index
    %403 = vector.load %arg7[%c61, %c0_141] : memref<128x128xf32, #tpu.memory_space<vmem>>, vector<1x128xf32>
    tpu.vector_store %arg7[%c61, %c0_141], %402 {strides = array<i32>} : memref<128x128xf32, #tpu.memory_space<vmem>>, vector<1x128xf32>,
    %c62_i32 = arith.constant 62 : i32
    %404 = arith.addi %31, %c62_i32 : i32
    %405 = arith.index_cast %404 : i32 to index
    %406 = memref.load %arg1[%405] : memref<384xi32, #tpu.memory_space<smem>>
    %407 = arith.index_cast %406 : i32 to index
    %c0_142 = arith.constant 0 : index
    %408 = vector.load %arg8[%407, %c0_142] : memref<512x128xf32, #tpu.memory_space<vmem>>, vector<1x128xf32>
    %c62 = arith.constant 62 : index
    %c0_143 = arith.constant 0 : index
    %409 = vector.load %arg7[%c62, %c0_143] : memref<128x128xf32, #tpu.memory_space<vmem>>, vector<1x128xf32>
    tpu.vector_store %arg7[%c62, %c0_143], %408 {strides = array<i32>} : memref<128x128xf32, #tpu.memory_space<vmem>>, vector<1x128xf32>,
    %c63_i32 = arith.constant 63 : i32
    %410 = arith.addi %31, %c63_i32 : i32
    %411 = arith.index_cast %410 : i32 to index
    %412 = memref.load %arg1[%411] : memref<384xi32, #tpu.memory_space<smem>>
    %413 = arith.index_cast %412 : i32 to index
    %c0_144 = arith.constant 0 : index
    %414 = vector.load %arg8[%413, %c0_144] : memref<512x128xf32, #tpu.memory_space<vmem>>, vector<1x128xf32>
    %c63 = arith.constant 63 : index
    %c0_145 = arith.constant 0 : index
    %415 = vector.load %arg7[%c63, %c0_145] : memref<128x128xf32, #tpu.memory_space<vmem>>, vector<1x128xf32>
    tpu.vector_store %arg7[%c63, %c0_145], %414 {strides = array<i32>} : memref<128x128xf32, #tpu.memory_space<vmem>>, vector<1x128xf32>,
    %c64_i32 = arith.constant 64 : i32
    %416 = arith.addi %31, %c64_i32 : i32
    %417 = arith.index_cast %416 : i32 to index
    %418 = memref.load %arg1[%417] : memref<384xi32, #tpu.memory_space<smem>>
    %419 = arith.index_cast %418 : i32 to index
    %c0_146 = arith.constant 0 : index
    %420 = vector.load %arg8[%419, %c0_146] : memref<512x128xf32, #tpu.memory_space<vmem>>, vector<1x128xf32>
    %c64 = arith.constant 64 : index
    %c0_147 = arith.constant 0 : index
    %421 = vector.load %arg7[%c64, %c0_147] : memref<128x128xf32, #tpu.memory_space<vmem>>, vector<1x128xf32>
    tpu.vector_store %arg7[%c64, %c0_147], %420 {strides = array<i32>} : memref<128x128xf32, #tpu.memory_space<vmem>>, vector<1x128xf32>,
    %c65_i32 = arith.constant 65 : i32
    %422 = arith.addi %31, %c65_i32 : i32
    %423 = arith.index_cast %422 : i32 to index
    %424 = memref.load %arg1[%423] : memref<384xi32, #tpu.memory_space<smem>>
    %425 = arith.index_cast %424 : i32 to index
    %c0_148 = arith.constant 0 : index
    %426 = vector.load %arg8[%425, %c0_148] : memref<512x128xf32, #tpu.memory_space<vmem>>, vector<1x128xf32>
    %c65 = arith.constant 65 : index
    %c0_149 = arith.constant 0 : index
    %427 = vector.load %arg7[%c65, %c0_149] : memref<128x128xf32, #tpu.memory_space<vmem>>, vector<1x128xf32>
    tpu.vector_store %arg7[%c65, %c0_149], %426 {strides = array<i32>} : memref<128x128xf32, #tpu.memory_space<vmem>>, vector<1x128xf32>,
    %c66_i32 = arith.constant 66 : i32
    %428 = arith.addi %31, %c66_i32 : i32
    %429 = arith.index_cast %428 : i32 to index
    %430 = memref.load %arg1[%429] : memref<384xi32, #tpu.memory_space<smem>>
    %431 = arith.index_cast %430 : i32 to index
    %c0_150 = arith.constant 0 : index
    %432 = vector.load %arg8[%431, %c0_150] : memref<512x128xf32, #tpu.memory_space<vmem>>, vector<1x128xf32>
    %c66 = arith.constant 66 : index
    %c0_151 = arith.constant 0 : index
    %433 = vector.load %arg7[%c66, %c0_151] : memref<128x128xf32, #tpu.memory_space<vmem>>, vector<1x128xf32>
    tpu.vector_store %arg7[%c66, %c0_151], %432 {strides = array<i32>} : memref<128x128xf32, #tpu.memory_space<vmem>>, vector<1x128xf32>,
    %c67_i32 = arith.constant 67 : i32
    %434 = arith.addi %31, %c67_i32 : i32
    %435 = arith.index_cast %434 : i32 to index
    %436 = memref.load %arg1[%435] : memref<384xi32, #tpu.memory_space<smem>>
    %437 = arith.index_cast %436 : i32 to index
    %c0_152 = arith.constant 0 : index
    %438 = vector.load %arg8[%437, %c0_152] : memref<512x128xf32, #tpu.memory_space<vmem>>, vector<1x128xf32>
    %c67 = arith.constant 67 : index
    %c0_153 = arith.constant 0 : index
    %439 = vector.load %arg7[%c67, %c0_153] : memref<128x128xf32, #tpu.memory_space<vmem>>, vector<1x128xf32>
    tpu.vector_store %arg7[%c67, %c0_153], %438 {strides = array<i32>} : memref<128x128xf32, #tpu.memory_space<vmem>>, vector<1x128xf32>,
    %c68_i32 = arith.constant 68 : i32
    %440 = arith.addi %31, %c68_i32 : i32
    %441 = arith.index_cast %440 : i32 to index
    %442 = memref.load %arg1[%441] : memref<384xi32, #tpu.memory_space<smem>>
    %443 = arith.index_cast %442 : i32 to index
    %c0_154 = arith.constant 0 : index
    %444 = vector.load %arg8[%443, %c0_154] : memref<512x128xf32, #tpu.memory_space<vmem>>, vector<1x128xf32>
    %c68 = arith.constant 68 : index
    %c0_155 = arith.constant 0 : index
    %445 = vector.load %arg7[%c68, %c0_155] : memref<128x128xf32, #tpu.memory_space<vmem>>, vector<1x128xf32>
    tpu.vector_store %arg7[%c68, %c0_155], %444 {strides = array<i32>} : memref<128x128xf32, #tpu.memory_space<vmem>>, vector<1x128xf32>,
    %c69_i32 = arith.constant 69 : i32
    %446 = arith.addi %31, %c69_i32 : i32
    %447 = arith.index_cast %446 : i32 to index
    %448 = memref.load %arg1[%447] : memref<384xi32, #tpu.memory_space<smem>>
    %449 = arith.index_cast %448 : i32 to index
    %c0_156 = arith.constant 0 : index
    %450 = vector.load %arg8[%449, %c0_156] : memref<512x128xf32, #tpu.memory_space<vmem>>, vector<1x128xf32>
    %c69 = arith.constant 69 : index
    %c0_157 = arith.constant 0 : index
    %451 = vector.load %arg7[%c69, %c0_157] : memref<128x128xf32, #tpu.memory_space<vmem>>, vector<1x128xf32>
    tpu.vector_store %arg7[%c69, %c0_157], %450 {strides = array<i32>} : memref<128x128xf32, #tpu.memory_space<vmem>>, vector<1x128xf32>,
    %c70_i32 = arith.constant 70 : i32
    %452 = arith.addi %31, %c70_i32 : i32
    %453 = arith.index_cast %452 : i32 to index
    %454 = memref.load %arg1[%453] : memref<384xi32, #tpu.memory_space<smem>>
    %455 = arith.index_cast %454 : i32 to index
    %c0_158 = arith.constant 0 : index
    %456 = vector.load %arg8[%455, %c0_158] : memref<512x128xf32, #tpu.memory_space<vmem>>, vector<1x128xf32>
    %c70 = arith.constant 70 : index
    %c0_159 = arith.constant 0 : index
    %457 = vector.load %arg7[%c70, %c0_159] : memref<128x128xf32, #tpu.memory_space<vmem>>, vector<1x128xf32>
    tpu.vector_store %arg7[%c70, %c0_159], %456 {strides = array<i32>} : memref<128x128xf32, #tpu.memory_space<vmem>>, vector<1x128xf32>,
    %c71_i32 = arith.constant 71 : i32
    %458 = arith.addi %31, %c71_i32 : i32
    %459 = arith.index_cast %458 : i32 to index
    %460 = memref.load %arg1[%459] : memref<384xi32, #tpu.memory_space<smem>>
    %461 = arith.index_cast %460 : i32 to index
    %c0_160 = arith.constant 0 : index
    %462 = vector.load %arg8[%461, %c0_160] : memref<512x128xf32, #tpu.memory_space<vmem>>, vector<1x128xf32>
    %c71 = arith.constant 71 : index
    %c0_161 = arith.constant 0 : index
    %463 = vector.load %arg7[%c71, %c0_161] : memref<128x128xf32, #tpu.memory_space<vmem>>, vector<1x128xf32>
    tpu.vector_store %arg7[%c71, %c0_161], %462 {strides = array<i32>} : memref<128x128xf32, #tpu.memory_space<vmem>>, vector<1x128xf32>,
    %c72_i32 = arith.constant 72 : i32
    %464 = arith.addi %31, %c72_i32 : i32
    %465 = arith.index_cast %464 : i32 to index
    %466 = memref.load %arg1[%465] : memref<384xi32, #tpu.memory_space<smem>>
    %467 = arith.index_cast %466 : i32 to index
    %c0_162 = arith.constant 0 : index
    %468 = vector.load %arg8[%467, %c0_162] : memref<512x128xf32, #tpu.memory_space<vmem>>, vector<1x128xf32>
    %c72 = arith.constant 72 : index
    %c0_163 = arith.constant 0 : index
    %469 = vector.load %arg7[%c72, %c0_163] : memref<128x128xf32, #tpu.memory_space<vmem>>, vector<1x128xf32>
    tpu.vector_store %arg7[%c72, %c0_163], %468 {strides = array<i32>} : memref<128x128xf32, #tpu.memory_space<vmem>>, vector<1x128xf32>,
    %c73_i32 = arith.constant 73 : i32
    %470 = arith.addi %31, %c73_i32 : i32
    %471 = arith.index_cast %470 : i32 to index
    %472 = memref.load %arg1[%471] : memref<384xi32, #tpu.memory_space<smem>>
    %473 = arith.index_cast %472 : i32 to index
    %c0_164 = arith.constant 0 : index
    %474 = vector.load %arg8[%473, %c0_164] : memref<512x128xf32, #tpu.memory_space<vmem>>, vector<1x128xf32>
    %c73 = arith.constant 73 : index
    %c0_165 = arith.constant 0 : index
    %475 = vector.load %arg7[%c73, %c0_165] : memref<128x128xf32, #tpu.memory_space<vmem>>, vector<1x128xf32>
    tpu.vector_store %arg7[%c73, %c0_165], %474 {strides = array<i32>} : memref<128x128xf32, #tpu.memory_space<vmem>>, vector<1x128xf32>,
    %c74_i32 = arith.constant 74 : i32
    %476 = arith.addi %31, %c74_i32 : i32
    %477 = arith.index_cast %476 : i32 to index
    %478 = memref.load %arg1[%477] : memref<384xi32, #tpu.memory_space<smem>>
    %479 = arith.index_cast %478 : i32 to index
    %c0_166 = arith.constant 0 : index
    %480 = vector.load %arg8[%479, %c0_166] : memref<512x128xf32, #tpu.memory_space<vmem>>, vector<1x128xf32>
    %c74 = arith.constant 74 : index
    %c0_167 = arith.constant 0 : index
    %481 = vector.load %arg7[%c74, %c0_167] : memref<128x128xf32, #tpu.memory_space<vmem>>, vector<1x128xf32>
    tpu.vector_store %arg7[%c74, %c0_167], %480 {strides = array<i32>} : memref<128x128xf32, #tpu.memory_space<vmem>>, vector<1x128xf32>,
    %c75_i32 = arith.constant 75 : i32
    %482 = arith.addi %31, %c75_i32 : i32
    %483 = arith.index_cast %482 : i32 to index
    %484 = memref.load %arg1[%483] : memref<384xi32, #tpu.memory_space<smem>>
    %485 = arith.index_cast %484 : i32 to index
    %c0_168 = arith.constant 0 : index
    %486 = vector.load %arg8[%485, %c0_168] : memref<512x128xf32, #tpu.memory_space<vmem>>, vector<1x128xf32>
    %c75 = arith.constant 75 : index
    %c0_169 = arith.constant 0 : index
    %487 = vector.load %arg7[%c75, %c0_169] : memref<128x128xf32, #tpu.memory_space<vmem>>, vector<1x128xf32>
    tpu.vector_store %arg7[%c75, %c0_169], %486 {strides = array<i32>} : memref<128x128xf32, #tpu.memory_space<vmem>>, vector<1x128xf32>,
    %c76_i32 = arith.constant 76 : i32
    %488 = arith.addi %31, %c76_i32 : i32
    %489 = arith.index_cast %488 : i32 to index
    %490 = memref.load %arg1[%489] : memref<384xi32, #tpu.memory_space<smem>>
    %491 = arith.index_cast %490 : i32 to index
    %c0_170 = arith.constant 0 : index
    %492 = vector.load %arg8[%491, %c0_170] : memref<512x128xf32, #tpu.memory_space<vmem>>, vector<1x128xf32>
    %c76 = arith.constant 76 : index
    %c0_171 = arith.constant 0 : index
    %493 = vector.load %arg7[%c76, %c0_171] : memref<128x128xf32, #tpu.memory_space<vmem>>, vector<1x128xf32>
    tpu.vector_store %arg7[%c76, %c0_171], %492 {strides = array<i32>} : memref<128x128xf32, #tpu.memory_space<vmem>>, vector<1x128xf32>,
    %c77_i32 = arith.constant 77 : i32
    %494 = arith.addi %31, %c77_i32 : i32
    %495 = arith.index_cast %494 : i32 to index
    %496 = memref.load %arg1[%495] : memref<384xi32, #tpu.memory_space<smem>>
    %497 = arith.index_cast %496 : i32 to index
    %c0_172 = arith.constant 0 : index
    %498 = vector.load %arg8[%497, %c0_172] : memref<512x128xf32, #tpu.memory_space<vmem>>, vector<1x128xf32>
    %c77 = arith.constant 77 : index
    %c0_173 = arith.constant 0 : index
    %499 = vector.load %arg7[%c77, %c0_173] : memref<128x128xf32, #tpu.memory_space<vmem>>, vector<1x128xf32>
    tpu.vector_store %arg7[%c77, %c0_173], %498 {strides = array<i32>} : memref<128x128xf32, #tpu.memory_space<vmem>>, vector<1x128xf32>,
    %c78_i32 = arith.constant 78 : i32
    %500 = arith.addi %31, %c78_i32 : i32
    %501 = arith.index_cast %500 : i32 to index
    %502 = memref.load %arg1[%501] : memref<384xi32, #tpu.memory_space<smem>>
    %503 = arith.index_cast %502 : i32 to index
    %c0_174 = arith.constant 0 : index
    %504 = vector.load %arg8[%503, %c0_174] : memref<512x128xf32, #tpu.memory_space<vmem>>, vector<1x128xf32>
    %c78 = arith.constant 78 : index
    %c0_175 = arith.constant 0 : index
    %505 = vector.load %arg7[%c78, %c0_175] : memref<128x128xf32, #tpu.memory_space<vmem>>, vector<1x128xf32>
    tpu.vector_store %arg7[%c78, %c0_175], %504 {strides = array<i32>} : memref<128x128xf32, #tpu.memory_space<vmem>>, vector<1x128xf32>,
    %c79_i32 = arith.constant 79 : i32
    %506 = arith.addi %31, %c79_i32 : i32
    %507 = arith.index_cast %506 : i32 to index
    %508 = memref.load %arg1[%507] : memref<384xi32, #tpu.memory_space<smem>>
    %509 = arith.index_cast %508 : i32 to index
    %c0_176 = arith.constant 0 : index
    %510 = vector.load %arg8[%509, %c0_176] : memref<512x128xf32, #tpu.memory_space<vmem>>, vector<1x128xf32>
    %c79 = arith.constant 79 : index
    %c0_177 = arith.constant 0 : index
    %511 = vector.load %arg7[%c79, %c0_177] : memref<128x128xf32, #tpu.memory_space<vmem>>, vector<1x128xf32>
    tpu.vector_store %arg7[%c79, %c0_177], %510 {strides = array<i32>} : memref<128x128xf32, #tpu.memory_space<vmem>>, vector<1x128xf32>,
    %c80_i32 = arith.constant 80 : i32
    %512 = arith.addi %31, %c80_i32 : i32
    %513 = arith.index_cast %512 : i32 to index
    %514 = memref.load %arg1[%513] : memref<384xi32, #tpu.memory_space<smem>>
    %515 = arith.index_cast %514 : i32 to index
    %c0_178 = arith.constant 0 : index
    %516 = vector.load %arg8[%515, %c0_178] : memref<512x128xf32, #tpu.memory_space<vmem>>, vector<1x128xf32>
    %c80 = arith.constant 80 : index
    %c0_179 = arith.constant 0 : index
    %517 = vector.load %arg7[%c80, %c0_179] : memref<128x128xf32, #tpu.memory_space<vmem>>, vector<1x128xf32>
    tpu.vector_store %arg7[%c80, %c0_179], %516 {strides = array<i32>} : memref<128x128xf32, #tpu.memory_space<vmem>>, vector<1x128xf32>,
    %c81_i32 = arith.constant 81 : i32
    %518 = arith.addi %31, %c81_i32 : i32
    %519 = arith.index_cast %518 : i32 to index
    %520 = memref.load %arg1[%519] : memref<384xi32, #tpu.memory_space<smem>>
    %521 = arith.index_cast %520 : i32 to index
    %c0_180 = arith.constant 0 : index
    %522 = vector.load %arg8[%521, %c0_180] : memref<512x128xf32, #tpu.memory_space<vmem>>, vector<1x128xf32>
    %c81 = arith.constant 81 : index
    %c0_181 = arith.constant 0 : index
    %523 = vector.load %arg7[%c81, %c0_181] : memref<128x128xf32, #tpu.memory_space<vmem>>, vector<1x128xf32>
    tpu.vector_store %arg7[%c81, %c0_181], %522 {strides = array<i32>} : memref<128x128xf32, #tpu.memory_space<vmem>>, vector<1x128xf32>,
    %c82_i32 = arith.constant 82 : i32
    %524 = arith.addi %31, %c82_i32 : i32
    %525 = arith.index_cast %524 : i32 to index
    %526 = memref.load %arg1[%525] : memref<384xi32, #tpu.memory_space<smem>>
    %527 = arith.index_cast %526 : i32 to index
    %c0_182 = arith.constant 0 : index
    %528 = vector.load %arg8[%527, %c0_182] : memref<512x128xf32, #tpu.memory_space<vmem>>, vector<1x128xf32>
    %c82 = arith.constant 82 : index
    %c0_183 = arith.constant 0 : index
    %529 = vector.load %arg7[%c82, %c0_183] : memref<128x128xf32, #tpu.memory_space<vmem>>, vector<1x128xf32>
    tpu.vector_store %arg7[%c82, %c0_183], %528 {strides = array<i32>} : memref<128x128xf32, #tpu.memory_space<vmem>>, vector<1x128xf32>,
    %c83_i32 = arith.constant 83 : i32
    %530 = arith.addi %31, %c83_i32 : i32
    %531 = arith.index_cast %530 : i32 to index
    %532 = memref.load %arg1[%531] : memref<384xi32, #tpu.memory_space<smem>>
    %533 = arith.index_cast %532 : i32 to index
    %c0_184 = arith.constant 0 : index
    %534 = vector.load %arg8[%533, %c0_184] : memref<512x128xf32, #tpu.memory_space<vmem>>, vector<1x128xf32>
    %c83 = arith.constant 83 : index
    %c0_185 = arith.constant 0 : index
    %535 = vector.load %arg7[%c83, %c0_185] : memref<128x128xf32, #tpu.memory_space<vmem>>, vector<1x128xf32>
    tpu.vector_store %arg7[%c83, %c0_185], %534 {strides = array<i32>} : memref<128x128xf32, #tpu.memory_space<vmem>>, vector<1x128xf32>,
    %c84_i32 = arith.constant 84 : i32
    %536 = arith.addi %31, %c84_i32 : i32
    %537 = arith.index_cast %536 : i32 to index
    %538 = memref.load %arg1[%537] : memref<384xi32, #tpu.memory_space<smem>>
    %539 = arith.index_cast %538 : i32 to index
    %c0_186 = arith.constant 0 : index
    %540 = vector.load %arg8[%539, %c0_186] : memref<512x128xf32, #tpu.memory_space<vmem>>, vector<1x128xf32>
    %c84 = arith.constant 84 : index
    %c0_187 = arith.constant 0 : index
    %541 = vector.load %arg7[%c84, %c0_187] : memref<128x128xf32, #tpu.memory_space<vmem>>, vector<1x128xf32>
    tpu.vector_store %arg7[%c84, %c0_187], %540 {strides = array<i32>} : memref<128x128xf32, #tpu.memory_space<vmem>>, vector<1x128xf32>,
    %c85_i32 = arith.constant 85 : i32
    %542 = arith.addi %31, %c85_i32 : i32
    %543 = arith.index_cast %542 : i32 to index
    %544 = memref.load %arg1[%543] : memref<384xi32, #tpu.memory_space<smem>>
    %545 = arith.index_cast %544 : i32 to index
    %c0_188 = arith.constant 0 : index
    %546 = vector.load %arg8[%545, %c0_188] : memref<512x128xf32, #tpu.memory_space<vmem>>, vector<1x128xf32>
    %c85 = arith.constant 85 : index
    %c0_189 = arith.constant 0 : index
    %547 = vector.load %arg7[%c85, %c0_189] : memref<128x128xf32, #tpu.memory_space<vmem>>, vector<1x128xf32>
    tpu.vector_store %arg7[%c85, %c0_189], %546 {strides = array<i32>} : memref<128x128xf32, #tpu.memory_space<vmem>>, vector<1x128xf32>,
    %c86_i32 = arith.constant 86 : i32
    %548 = arith.addi %31, %c86_i32 : i32
    %549 = arith.index_cast %548 : i32 to index
    %550 = memref.load %arg1[%549] : memref<384xi32, #tpu.memory_space<smem>>
    %551 = arith.index_cast %550 : i32 to index
    %c0_190 = arith.constant 0 : index
    %552 = vector.load %arg8[%551, %c0_190] : memref<512x128xf32, #tpu.memory_space<vmem>>, vector<1x128xf32>
    %c86 = arith.constant 86 : index
    %c0_191 = arith.constant 0 : index
    %553 = vector.load %arg7[%c86, %c0_191] : memref<128x128xf32, #tpu.memory_space<vmem>>, vector<1x128xf32>
    tpu.vector_store %arg7[%c86, %c0_191], %552 {strides = array<i32>} : memref<128x128xf32, #tpu.memory_space<vmem>>, vector<1x128xf32>,
    %c87_i32 = arith.constant 87 : i32
    %554 = arith.addi %31, %c87_i32 : i32
    %555 = arith.index_cast %554 : i32 to index
    %556 = memref.load %arg1[%555] : memref<384xi32, #tpu.memory_space<smem>>
    %557 = arith.index_cast %556 : i32 to index
    %c0_192 = arith.constant 0 : index
    %558 = vector.load %arg8[%557, %c0_192] : memref<512x128xf32, #tpu.memory_space<vmem>>, vector<1x128xf32>
    %c87 = arith.constant 87 : index
    %c0_193 = arith.constant 0 : index
    %559 = vector.load %arg7[%c87, %c0_193] : memref<128x128xf32, #tpu.memory_space<vmem>>, vector<1x128xf32>
    tpu.vector_store %arg7[%c87, %c0_193], %558 {strides = array<i32>} : memref<128x128xf32, #tpu.memory_space<vmem>>, vector<1x128xf32>,
    %c88_i32 = arith.constant 88 : i32
    %560 = arith.addi %31, %c88_i32 : i32
    %561 = arith.index_cast %560 : i32 to index
    %562 = memref.load %arg1[%561] : memref<384xi32, #tpu.memory_space<smem>>
    %563 = arith.index_cast %562 : i32 to index
    %c0_194 = arith.constant 0 : index
    %564 = vector.load %arg8[%563, %c0_194] : memref<512x128xf32, #tpu.memory_space<vmem>>, vector<1x128xf32>
    %c88 = arith.constant 88 : index
    %c0_195 = arith.constant 0 : index
    %565 = vector.load %arg7[%c88, %c0_195] : memref<128x128xf32, #tpu.memory_space<vmem>>, vector<1x128xf32>
    tpu.vector_store %arg7[%c88, %c0_195], %564 {strides = array<i32>} : memref<128x128xf32, #tpu.memory_space<vmem>>, vector<1x128xf32>,
    %c89_i32 = arith.constant 89 : i32
    %566 = arith.addi %31, %c89_i32 : i32
    %567 = arith.index_cast %566 : i32 to index
    %568 = memref.load %arg1[%567] : memref<384xi32, #tpu.memory_space<smem>>
    %569 = arith.index_cast %568 : i32 to index
    %c0_196 = arith.constant 0 : index
    %570 = vector.load %arg8[%569, %c0_196] : memref<512x128xf32, #tpu.memory_space<vmem>>, vector<1x128xf32>
    %c89 = arith.constant 89 : index
    %c0_197 = arith.constant 0 : index
    %571 = vector.load %arg7[%c89, %c0_197] : memref<128x128xf32, #tpu.memory_space<vmem>>, vector<1x128xf32>
    tpu.vector_store %arg7[%c89, %c0_197], %570 {strides = array<i32>} : memref<128x128xf32, #tpu.memory_space<vmem>>, vector<1x128xf32>,
    %c90_i32 = arith.constant 90 : i32
    %572 = arith.addi %31, %c90_i32 : i32
    %573 = arith.index_cast %572 : i32 to index
    %574 = memref.load %arg1[%573] : memref<384xi32, #tpu.memory_space<smem>>
    %575 = arith.index_cast %574 : i32 to index
    %c0_198 = arith.constant 0 : index
    %576 = vector.load %arg8[%575, %c0_198] : memref<512x128xf32, #tpu.memory_space<vmem>>, vector<1x128xf32>
    %c90 = arith.constant 90 : index
    %c0_199 = arith.constant 0 : index
    %577 = vector.load %arg7[%c90, %c0_199] : memref<128x128xf32, #tpu.memory_space<vmem>>, vector<1x128xf32>
    tpu.vector_store %arg7[%c90, %c0_199], %576 {strides = array<i32>} : memref<128x128xf32, #tpu.memory_space<vmem>>, vector<1x128xf32>,
    %c91_i32 = arith.constant 91 : i32
    %578 = arith.addi %31, %c91_i32 : i32
    %579 = arith.index_cast %578 : i32 to index
    %580 = memref.load %arg1[%579] : memref<384xi32, #tpu.memory_space<smem>>
    %581 = arith.index_cast %580 : i32 to index
    %c0_200 = arith.constant 0 : index
    %582 = vector.load %arg8[%581, %c0_200] : memref<512x128xf32, #tpu.memory_space<vmem>>, vector<1x128xf32>
    %c91 = arith.constant 91 : index
    %c0_201 = arith.constant 0 : index
    %583 = vector.load %arg7[%c91, %c0_201] : memref<128x128xf32, #tpu.memory_space<vmem>>, vector<1x128xf32>
    tpu.vector_store %arg7[%c91, %c0_201], %582 {strides = array<i32>} : memref<128x128xf32, #tpu.memory_space<vmem>>, vector<1x128xf32>,
    %c92_i32 = arith.constant 92 : i32
    %584 = arith.addi %31, %c92_i32 : i32
    %585 = arith.index_cast %584 : i32 to index
    %586 = memref.load %arg1[%585] : memref<384xi32, #tpu.memory_space<smem>>
    %587 = arith.index_cast %586 : i32 to index
    %c0_202 = arith.constant 0 : index
    %588 = vector.load %arg8[%587, %c0_202] : memref<512x128xf32, #tpu.memory_space<vmem>>, vector<1x128xf32>
    %c92 = arith.constant 92 : index
    %c0_203 = arith.constant 0 : index
    %589 = vector.load %arg7[%c92, %c0_203] : memref<128x128xf32, #tpu.memory_space<vmem>>, vector<1x128xf32>
    tpu.vector_store %arg7[%c92, %c0_203], %588 {strides = array<i32>} : memref<128x128xf32, #tpu.memory_space<vmem>>, vector<1x128xf32>,
    %c93_i32 = arith.constant 93 : i32
    %590 = arith.addi %31, %c93_i32 : i32
    %591 = arith.index_cast %590 : i32 to index
    %592 = memref.load %arg1[%591] : memref<384xi32, #tpu.memory_space<smem>>
    %593 = arith.index_cast %592 : i32 to index
    %c0_204 = arith.constant 0 : index
    %594 = vector.load %arg8[%593, %c0_204] : memref<512x128xf32, #tpu.memory_space<vmem>>, vector<1x128xf32>
    %c93 = arith.constant 93 : index
    %c0_205 = arith.constant 0 : index
    %595 = vector.load %arg7[%c93, %c0_205] : memref<128x128xf32, #tpu.memory_space<vmem>>, vector<1x128xf32>
    tpu.vector_store %arg7[%c93, %c0_205], %594 {strides = array<i32>} : memref<128x128xf32, #tpu.memory_space<vmem>>, vector<1x128xf32>,
    %c94_i32 = arith.constant 94 : i32
    %596 = arith.addi %31, %c94_i32 : i32
    %597 = arith.index_cast %596 : i32 to index
    %598 = memref.load %arg1[%597] : memref<384xi32, #tpu.memory_space<smem>>
    %599 = arith.index_cast %598 : i32 to index
    %c0_206 = arith.constant 0 : index
    %600 = vector.load %arg8[%599, %c0_206] : memref<512x128xf32, #tpu.memory_space<vmem>>, vector<1x128xf32>
    %c94 = arith.constant 94 : index
    %c0_207 = arith.constant 0 : index
    %601 = vector.load %arg7[%c94, %c0_207] : memref<128x128xf32, #tpu.memory_space<vmem>>, vector<1x128xf32>
    tpu.vector_store %arg7[%c94, %c0_207], %600 {strides = array<i32>} : memref<128x128xf32, #tpu.memory_space<vmem>>, vector<1x128xf32>,
    %c95_i32 = arith.constant 95 : i32
    %602 = arith.addi %31, %c95_i32 : i32
    %603 = arith.index_cast %602 : i32 to index
    %604 = memref.load %arg1[%603] : memref<384xi32, #tpu.memory_space<smem>>
    %605 = arith.index_cast %604 : i32 to index
    %c0_208 = arith.constant 0 : index
    %606 = vector.load %arg8[%605, %c0_208] : memref<512x128xf32, #tpu.memory_space<vmem>>, vector<1x128xf32>
    %c95 = arith.constant 95 : index
    %c0_209 = arith.constant 0 : index
    %607 = vector.load %arg7[%c95, %c0_209] : memref<128x128xf32, #tpu.memory_space<vmem>>, vector<1x128xf32>
    tpu.vector_store %arg7[%c95, %c0_209], %606 {strides = array<i32>} : memref<128x128xf32, #tpu.memory_space<vmem>>, vector<1x128xf32>,
    %c96_i32 = arith.constant 96 : i32
    %608 = arith.addi %31, %c96_i32 : i32
    %609 = arith.index_cast %608 : i32 to index
    %610 = memref.load %arg1[%609] : memref<384xi32, #tpu.memory_space<smem>>
    %611 = arith.index_cast %610 : i32 to index
    %c0_210 = arith.constant 0 : index
    %612 = vector.load %arg8[%611, %c0_210] : memref<512x128xf32, #tpu.memory_space<vmem>>, vector<1x128xf32>
    %c96 = arith.constant 96 : index
    %c0_211 = arith.constant 0 : index
    %613 = vector.load %arg7[%c96, %c0_211] : memref<128x128xf32, #tpu.memory_space<vmem>>, vector<1x128xf32>
    tpu.vector_store %arg7[%c96, %c0_211], %612 {strides = array<i32>} : memref<128x128xf32, #tpu.memory_space<vmem>>, vector<1x128xf32>,
    %c97_i32 = arith.constant 97 : i32
    %614 = arith.addi %31, %c97_i32 : i32
    %615 = arith.index_cast %614 : i32 to index
    %616 = memref.load %arg1[%615] : memref<384xi32, #tpu.memory_space<smem>>
    %617 = arith.index_cast %616 : i32 to index
    %c0_212 = arith.constant 0 : index
    %618 = vector.load %arg8[%617, %c0_212] : memref<512x128xf32, #tpu.memory_space<vmem>>, vector<1x128xf32>
    %c97 = arith.constant 97 : index
    %c0_213 = arith.constant 0 : index
    %619 = vector.load %arg7[%c97, %c0_213] : memref<128x128xf32, #tpu.memory_space<vmem>>, vector<1x128xf32>
    tpu.vector_store %arg7[%c97, %c0_213], %618 {strides = array<i32>} : memref<128x128xf32, #tpu.memory_space<vmem>>, vector<1x128xf32>,
    %c98_i32 = arith.constant 98 : i32
    %620 = arith.addi %31, %c98_i32 : i32
    %621 = arith.index_cast %620 : i32 to index
    %622 = memref.load %arg1[%621] : memref<384xi32, #tpu.memory_space<smem>>
    %623 = arith.index_cast %622 : i32 to index
    %c0_214 = arith.constant 0 : index
    %624 = vector.load %arg8[%623, %c0_214] : memref<512x128xf32, #tpu.memory_space<vmem>>, vector<1x128xf32>
    %c98 = arith.constant 98 : index
    %c0_215 = arith.constant 0 : index
    %625 = vector.load %arg7[%c98, %c0_215] : memref<128x128xf32, #tpu.memory_space<vmem>>, vector<1x128xf32>
    tpu.vector_store %arg7[%c98, %c0_215], %624 {strides = array<i32>} : memref<128x128xf32, #tpu.memory_space<vmem>>, vector<1x128xf32>,
    %c99_i32 = arith.constant 99 : i32
    %626 = arith.addi %31, %c99_i32 : i32
    %627 = arith.index_cast %626 : i32 to index
    %628 = memref.load %arg1[%627] : memref<384xi32, #tpu.memory_space<smem>>
    %629 = arith.index_cast %628 : i32 to index
    %c0_216 = arith.constant 0 : index
    %630 = vector.load %arg8[%629, %c0_216] : memref<512x128xf32, #tpu.memory_space<vmem>>, vector<1x128xf32>
    %c99 = arith.constant 99 : index
    %c0_217 = arith.constant 0 : index
    %631 = vector.load %arg7[%c99, %c0_217] : memref<128x128xf32, #tpu.memory_space<vmem>>, vector<1x128xf32>
    tpu.vector_store %arg7[%c99, %c0_217], %630 {strides = array<i32>} : memref<128x128xf32, #tpu.memory_space<vmem>>, vector<1x128xf32>,
    %c100_i32 = arith.constant 100 : i32
    %632 = arith.addi %31, %c100_i32 : i32
    %633 = arith.index_cast %632 : i32 to index
    %634 = memref.load %arg1[%633] : memref<384xi32, #tpu.memory_space<smem>>
    %635 = arith.index_cast %634 : i32 to index
    %c0_218 = arith.constant 0 : index
    %636 = vector.load %arg8[%635, %c0_218] : memref<512x128xf32, #tpu.memory_space<vmem>>, vector<1x128xf32>
    %c100 = arith.constant 100 : index
    %c0_219 = arith.constant 0 : index
    %637 = vector.load %arg7[%c100, %c0_219] : memref<128x128xf32, #tpu.memory_space<vmem>>, vector<1x128xf32>
    tpu.vector_store %arg7[%c100, %c0_219], %636 {strides = array<i32>} : memref<128x128xf32, #tpu.memory_space<vmem>>, vector<1x128xf32>,
    %c101_i32 = arith.constant 101 : i32
    %638 = arith.addi %31, %c101_i32 : i32
    %639 = arith.index_cast %638 : i32 to index
    %640 = memref.load %arg1[%639] : memref<384xi32, #tpu.memory_space<smem>>
    %641 = arith.index_cast %640 : i32 to index
    %c0_220 = arith.constant 0 : index
    %642 = vector.load %arg8[%641, %c0_220] : memref<512x128xf32, #tpu.memory_space<vmem>>, vector<1x128xf32>
    %c101 = arith.constant 101 : index
    %c0_221 = arith.constant 0 : index
    %643 = vector.load %arg7[%c101, %c0_221] : memref<128x128xf32, #tpu.memory_space<vmem>>, vector<1x128xf32>
    tpu.vector_store %arg7[%c101, %c0_221], %642 {strides = array<i32>} : memref<128x128xf32, #tpu.memory_space<vmem>>, vector<1x128xf32>,
    %c102_i32 = arith.constant 102 : i32
    %644 = arith.addi %31, %c102_i32 : i32
    %645 = arith.index_cast %644 : i32 to index
    %646 = memref.load %arg1[%645] : memref<384xi32, #tpu.memory_space<smem>>
    %647 = arith.index_cast %646 : i32 to index
    %c0_222 = arith.constant 0 : index
    %648 = vector.load %arg8[%647, %c0_222] : memref<512x128xf32, #tpu.memory_space<vmem>>, vector<1x128xf32>
    %c102 = arith.constant 102 : index
    %c0_223 = arith.constant 0 : index
    %649 = vector.load %arg7[%c102, %c0_223] : memref<128x128xf32, #tpu.memory_space<vmem>>, vector<1x128xf32>
    tpu.vector_store %arg7[%c102, %c0_223], %648 {strides = array<i32>} : memref<128x128xf32, #tpu.memory_space<vmem>>, vector<1x128xf32>,
    %c103_i32 = arith.constant 103 : i32
    %650 = arith.addi %31, %c103_i32 : i32
    %651 = arith.index_cast %650 : i32 to index
    %652 = memref.load %arg1[%651] : memref<384xi32, #tpu.memory_space<smem>>
    %653 = arith.index_cast %652 : i32 to index
    %c0_224 = arith.constant 0 : index
    %654 = vector.load %arg8[%653, %c0_224] : memref<512x128xf32, #tpu.memory_space<vmem>>, vector<1x128xf32>
    %c103 = arith.constant 103 : index
    %c0_225 = arith.constant 0 : index
    %655 = vector.load %arg7[%c103, %c0_225] : memref<128x128xf32, #tpu.memory_space<vmem>>, vector<1x128xf32>
    tpu.vector_store %arg7[%c103, %c0_225], %654 {strides = array<i32>} : memref<128x128xf32, #tpu.memory_space<vmem>>, vector<1x128xf32>,
    %c104_i32 = arith.constant 104 : i32
    %656 = arith.addi %31, %c104_i32 : i32
    %657 = arith.index_cast %656 : i32 to index
    %658 = memref.load %arg1[%657] : memref<384xi32, #tpu.memory_space<smem>>
    %659 = arith.index_cast %658 : i32 to index
    %c0_226 = arith.constant 0 : index
    %660 = vector.load %arg8[%659, %c0_226] : memref<512x128xf32, #tpu.memory_space<vmem>>, vector<1x128xf32>
    %c104 = arith.constant 104 : index
    %c0_227 = arith.constant 0 : index
    %661 = vector.load %arg7[%c104, %c0_227] : memref<128x128xf32, #tpu.memory_space<vmem>>, vector<1x128xf32>
    tpu.vector_store %arg7[%c104, %c0_227], %660 {strides = array<i32>} : memref<128x128xf32, #tpu.memory_space<vmem>>, vector<1x128xf32>,
    %c105_i32 = arith.constant 105 : i32
    %662 = arith.addi %31, %c105_i32 : i32
    %663 = arith.index_cast %662 : i32 to index
    %664 = memref.load %arg1[%663] : memref<384xi32, #tpu.memory_space<smem>>
    %665 = arith.index_cast %664 : i32 to index
    %c0_228 = arith.constant 0 : index
    %666 = vector.load %arg8[%665, %c0_228] : memref<512x128xf32, #tpu.memory_space<vmem>>, vector<1x128xf32>
    %c105 = arith.constant 105 : index
    %c0_229 = arith.constant 0 : index
    %667 = vector.load %arg7[%c105, %c0_229] : memref<128x128xf32, #tpu.memory_space<vmem>>, vector<1x128xf32>
    tpu.vector_store %arg7[%c105, %c0_229], %666 {strides = array<i32>} : memref<128x128xf32, #tpu.memory_space<vmem>>, vector<1x128xf32>,
    %c106_i32 = arith.constant 106 : i32
    %668 = arith.addi %31, %c106_i32 : i32
    %669 = arith.index_cast %668 : i32 to index
    %670 = memref.load %arg1[%669] : memref<384xi32, #tpu.memory_space<smem>>
    %671 = arith.index_cast %670 : i32 to index
    %c0_230 = arith.constant 0 : index
    %672 = vector.load %arg8[%671, %c0_230] : memref<512x128xf32, #tpu.memory_space<vmem>>, vector<1x128xf32>
    %c106 = arith.constant 106 : index
    %c0_231 = arith.constant 0 : index
    %673 = vector.load %arg7[%c106, %c0_231] : memref<128x128xf32, #tpu.memory_space<vmem>>, vector<1x128xf32>
    tpu.vector_store %arg7[%c106, %c0_231], %672 {strides = array<i32>} : memref<128x128xf32, #tpu.memory_space<vmem>>, vector<1x128xf32>,
    %c107_i32 = arith.constant 107 : i32
    %674 = arith.addi %31, %c107_i32 : i32
    %675 = arith.index_cast %674 : i32 to index
    %676 = memref.load %arg1[%675] : memref<384xi32, #tpu.memory_space<smem>>
    %677 = arith.index_cast %676 : i32 to index
    %c0_232 = arith.constant 0 : index
    %678 = vector.load %arg8[%677, %c0_232] : memref<512x128xf32, #tpu.memory_space<vmem>>, vector<1x128xf32>
    %c107 = arith.constant 107 : index
    %c0_233 = arith.constant 0 : index
    %679 = vector.load %arg7[%c107, %c0_233] : memref<128x128xf32, #tpu.memory_space<vmem>>, vector<1x128xf32>
    tpu.vector_store %arg7[%c107, %c0_233], %678 {strides = array<i32>} : memref<128x128xf32, #tpu.memory_space<vmem>>, vector<1x128xf32>,
    %c108_i32 = arith.constant 108 : i32
    %680 = arith.addi %31, %c108_i32 : i32
    %681 = arith.index_cast %680 : i32 to index
    %682 = memref.load %arg1[%681] : memref<384xi32, #tpu.memory_space<smem>>
    %683 = arith.index_cast %682 : i32 to index
    %c0_234 = arith.constant 0 : index
    %684 = vector.load %arg8[%683, %c0_234] : memref<512x128xf32, #tpu.memory_space<vmem>>, vector<1x128xf32>
    %c108 = arith.constant 108 : index
    %c0_235 = arith.constant 0 : index
    %685 = vector.load %arg7[%c108, %c0_235] : memref<128x128xf32, #tpu.memory_space<vmem>>, vector<1x128xf32>
    tpu.vector_store %arg7[%c108, %c0_235], %684 {strides = array<i32>} : memref<128x128xf32, #tpu.memory_space<vmem>>, vector<1x128xf32>,
    %c109_i32 = arith.constant 109 : i32
    %686 = arith.addi %31, %c109_i32 : i32
    %687 = arith.index_cast %686 : i32 to index
    %688 = memref.load %arg1[%687] : memref<384xi32, #tpu.memory_space<smem>>
    %689 = arith.index_cast %688 : i32 to index
    %c0_236 = arith.constant 0 : index
    %690 = vector.load %arg8[%689, %c0_236] : memref<512x128xf32, #tpu.memory_space<vmem>>, vector<1x128xf32>
    %c109 = arith.constant 109 : index
    %c0_237 = arith.constant 0 : index
    %691 = vector.load %arg7[%c109, %c0_237] : memref<128x128xf32, #tpu.memory_space<vmem>>, vector<1x128xf32>
    tpu.vector_store %arg7[%c109, %c0_237], %690 {strides = array<i32>} : memref<128x128xf32, #tpu.memory_space<vmem>>, vector<1x128xf32>,
    %c110_i32 = arith.constant 110 : i32
    %692 = arith.addi %31, %c110_i32 : i32
    %693 = arith.index_cast %692 : i32 to index
    %694 = memref.load %arg1[%693] : memref<384xi32, #tpu.memory_space<smem>>
    %695 = arith.index_cast %694 : i32 to index
    %c0_238 = arith.constant 0 : index
    %696 = vector.load %arg8[%695, %c0_238] : memref<512x128xf32, #tpu.memory_space<vmem>>, vector<1x128xf32>
    %c110 = arith.constant 110 : index
    %c0_239 = arith.constant 0 : index
    %697 = vector.load %arg7[%c110, %c0_239] : memref<128x128xf32, #tpu.memory_space<vmem>>, vector<1x128xf32>
    tpu.vector_store %arg7[%c110, %c0_239], %696 {strides = array<i32>} : memref<128x128xf32, #tpu.memory_space<vmem>>, vector<1x128xf32>,
    %c111_i32 = arith.constant 111 : i32
    %698 = arith.addi %31, %c111_i32 : i32
    %699 = arith.index_cast %698 : i32 to index
    %700 = memref.load %arg1[%699] : memref<384xi32, #tpu.memory_space<smem>>
    %701 = arith.index_cast %700 : i32 to index
    %c0_240 = arith.constant 0 : index
    %702 = vector.load %arg8[%701, %c0_240] : memref<512x128xf32, #tpu.memory_space<vmem>>, vector<1x128xf32>
    %c111 = arith.constant 111 : index
    %c0_241 = arith.constant 0 : index
    %703 = vector.load %arg7[%c111, %c0_241] : memref<128x128xf32, #tpu.memory_space<vmem>>, vector<1x128xf32>
    tpu.vector_store %arg7[%c111, %c0_241], %702 {strides = array<i32>} : memref<128x128xf32, #tpu.memory_space<vmem>>, vector<1x128xf32>,
    %c112_i32 = arith.constant 112 : i32
    %704 = arith.addi %31, %c112_i32 : i32
    %705 = arith.index_cast %704 : i32 to index
    %706 = memref.load %arg1[%705] : memref<384xi32, #tpu.memory_space<smem>>
    %707 = arith.index_cast %706 : i32 to index
    %c0_242 = arith.constant 0 : index
    %708 = vector.load %arg8[%707, %c0_242] : memref<512x128xf32, #tpu.memory_space<vmem>>, vector<1x128xf32>
    %c112 = arith.constant 112 : index
    %c0_243 = arith.constant 0 : index
    %709 = vector.load %arg7[%c112, %c0_243] : memref<128x128xf32, #tpu.memory_space<vmem>>, vector<1x128xf32>
    tpu.vector_store %arg7[%c112, %c0_243], %708 {strides = array<i32>} : memref<128x128xf32, #tpu.memory_space<vmem>>, vector<1x128xf32>,
    %c113_i32 = arith.constant 113 : i32
    %710 = arith.addi %31, %c113_i32 : i32
    %711 = arith.index_cast %710 : i32 to index
    %712 = memref.load %arg1[%711] : memref<384xi32, #tpu.memory_space<smem>>
    %713 = arith.index_cast %712 : i32 to index
    %c0_244 = arith.constant 0 : index
    %714 = vector.load %arg8[%713, %c0_244] : memref<512x128xf32, #tpu.memory_space<vmem>>, vector<1x128xf32>
    %c113 = arith.constant 113 : index
    %c0_245 = arith.constant 0 : index
    %715 = vector.load %arg7[%c113, %c0_245] : memref<128x128xf32, #tpu.memory_space<vmem>>, vector<1x128xf32>
    tpu.vector_store %arg7[%c113, %c0_245], %714 {strides = array<i32>} : memref<128x128xf32, #tpu.memory_space<vmem>>, vector<1x128xf32>,
    %c114_i32 = arith.constant 114 : i32
    %716 = arith.addi %31, %c114_i32 : i32
    %717 = arith.index_cast %716 : i32 to index
    %718 = memref.load %arg1[%717] : memref<384xi32, #tpu.memory_space<smem>>
    %719 = arith.index_cast %718 : i32 to index
    %c0_246 = arith.constant 0 : index
    %720 = vector.load %arg8[%719, %c0_246] : memref<512x128xf32, #tpu.memory_space<vmem>>, vector<1x128xf32>
    %c114 = arith.constant 114 : index
    %c0_247 = arith.constant 0 : index
    %721 = vector.load %arg7[%c114, %c0_247] : memref<128x128xf32, #tpu.memory_space<vmem>>, vector<1x128xf32>
    tpu.vector_store %arg7[%c114, %c0_247], %720 {strides = array<i32>} : memref<128x128xf32, #tpu.memory_space<vmem>>, vector<1x128xf32>,
    %c115_i32 = arith.constant 115 : i32
    %722 = arith.addi %31, %c115_i32 : i32
    %723 = arith.index_cast %722 : i32 to index
    %724 = memref.load %arg1[%723] : memref<384xi32, #tpu.memory_space<smem>>
    %725 = arith.index_cast %724 : i32 to index
    %c0_248 = arith.constant 0 : index
    %726 = vector.load %arg8[%725, %c0_248] : memref<512x128xf32, #tpu.memory_space<vmem>>, vector<1x128xf32>
    %c115 = arith.constant 115 : index
    %c0_249 = arith.constant 0 : index
    %727 = vector.load %arg7[%c115, %c0_249] : memref<128x128xf32, #tpu.memory_space<vmem>>, vector<1x128xf32>
    tpu.vector_store %arg7[%c115, %c0_249], %726 {strides = array<i32>} : memref<128x128xf32, #tpu.memory_space<vmem>>, vector<1x128xf32>,
    %c116_i32 = arith.constant 116 : i32
    %728 = arith.addi %31, %c116_i32 : i32
    %729 = arith.index_cast %728 : i32 to index
    %730 = memref.load %arg1[%729] : memref<384xi32, #tpu.memory_space<smem>>
    %731 = arith.index_cast %730 : i32 to index
    %c0_250 = arith.constant 0 : index
    %732 = vector.load %arg8[%731, %c0_250] : memref<512x128xf32, #tpu.memory_space<vmem>>, vector<1x128xf32>
    %c116 = arith.constant 116 : index
    %c0_251 = arith.constant 0 : index
    %733 = vector.load %arg7[%c116, %c0_251] : memref<128x128xf32, #tpu.memory_space<vmem>>, vector<1x128xf32>
    tpu.vector_store %arg7[%c116, %c0_251], %732 {strides = array<i32>} : memref<128x128xf32, #tpu.memory_space<vmem>>, vector<1x128xf32>,
    %c117_i32 = arith.constant 117 : i32
    %734 = arith.addi %31, %c117_i32 : i32
    %735 = arith.index_cast %734 : i32 to index
    %736 = memref.load %arg1[%735] : memref<384xi32, #tpu.memory_space<smem>>
    %737 = arith.index_cast %736 : i32 to index
    %c0_252 = arith.constant 0 : index
    %738 = vector.load %arg8[%737, %c0_252] : memref<512x128xf32, #tpu.memory_space<vmem>>, vector<1x128xf32>
    %c117 = arith.constant 117 : index
    %c0_253 = arith.constant 0 : index
    %739 = vector.load %arg7[%c117, %c0_253] : memref<128x128xf32, #tpu.memory_space<vmem>>, vector<1x128xf32>
    tpu.vector_store %arg7[%c117, %c0_253], %738 {strides = array<i32>} : memref<128x128xf32, #tpu.memory_space<vmem>>, vector<1x128xf32>,
    %c118_i32 = arith.constant 118 : i32
    %740 = arith.addi %31, %c118_i32 : i32
    %741 = arith.index_cast %740 : i32 to index
    %742 = memref.load %arg1[%741] : memref<384xi32, #tpu.memory_space<smem>>
    %743 = arith.index_cast %742 : i32 to index
    %c0_254 = arith.constant 0 : index
    %744 = vector.load %arg8[%743, %c0_254] : memref<512x128xf32, #tpu.memory_space<vmem>>, vector<1x128xf32>
    %c118 = arith.constant 118 : index
    %c0_255 = arith.constant 0 : index
    %745 = vector.load %arg7[%c118, %c0_255] : memref<128x128xf32, #tpu.memory_space<vmem>>, vector<1x128xf32>
    tpu.vector_store %arg7[%c118, %c0_255], %744 {strides = array<i32>} : memref<128x128xf32, #tpu.memory_space<vmem>>, vector<1x128xf32>,
    %c119_i32 = arith.constant 119 : i32
    %746 = arith.addi %31, %c119_i32 : i32
    %747 = arith.index_cast %746 : i32 to index
    %748 = memref.load %arg1[%747] : memref<384xi32, #tpu.memory_space<smem>>
    %749 = arith.index_cast %748 : i32 to index
    %c0_256 = arith.constant 0 : index
    %750 = vector.load %arg8[%749, %c0_256] : memref<512x128xf32, #tpu.memory_space<vmem>>, vector<1x128xf32>
    %c119 = arith.constant 119 : index
    %c0_257 = arith.constant 0 : index
    %751 = vector.load %arg7[%c119, %c0_257] : memref<128x128xf32, #tpu.memory_space<vmem>>, vector<1x128xf32>
    tpu.vector_store %arg7[%c119, %c0_257], %750 {strides = array<i32>} : memref<128x128xf32, #tpu.memory_space<vmem>>, vector<1x128xf32>,
    %c120_i32 = arith.constant 120 : i32
    %752 = arith.addi %31, %c120_i32 : i32
    %753 = arith.index_cast %752 : i32 to index
    %754 = memref.load %arg1[%753] : memref<384xi32, #tpu.memory_space<smem>>
    %755 = arith.index_cast %754 : i32 to index
    %c0_258 = arith.constant 0 : index
    %756 = vector.load %arg8[%755, %c0_258] : memref<512x128xf32, #tpu.memory_space<vmem>>, vector<1x128xf32>
    %c120 = arith.constant 120 : index
    %c0_259 = arith.constant 0 : index
    %757 = vector.load %arg7[%c120, %c0_259] : memref<128x128xf32, #tpu.memory_space<vmem>>, vector<1x128xf32>
    tpu.vector_store %arg7[%c120, %c0_259], %756 {strides = array<i32>} : memref<128x128xf32, #tpu.memory_space<vmem>>, vector<1x128xf32>,
    %c121_i32 = arith.constant 121 : i32
    %758 = arith.addi %31, %c121_i32 : i32
    %759 = arith.index_cast %758 : i32 to index
    %760 = memref.load %arg1[%759] : memref<384xi32, #tpu.memory_space<smem>>
    %761 = arith.index_cast %760 : i32 to index
    %c0_260 = arith.constant 0 : index
    %762 = vector.load %arg8[%761, %c0_260] : memref<512x128xf32, #tpu.memory_space<vmem>>, vector<1x128xf32>
    %c121 = arith.constant 121 : index
    %c0_261 = arith.constant 0 : index
    %763 = vector.load %arg7[%c121, %c0_261] : memref<128x128xf32, #tpu.memory_space<vmem>>, vector<1x128xf32>
    tpu.vector_store %arg7[%c121, %c0_261], %762 {strides = array<i32>} : memref<128x128xf32, #tpu.memory_space<vmem>>, vector<1x128xf32>,
    %c122_i32 = arith.constant 122 : i32
    %764 = arith.addi %31, %c122_i32 : i32
    %765 = arith.index_cast %764 : i32 to index
    %766 = memref.load %arg1[%765] : memref<384xi32, #tpu.memory_space<smem>>
    %767 = arith.index_cast %766 : i32 to index
    %c0_262 = arith.constant 0 : index
    %768 = vector.load %arg8[%767, %c0_262] : memref<512x128xf32, #tpu.memory_space<vmem>>, vector<1x128xf32>
    %c122 = arith.constant 122 : index
    %c0_263 = arith.constant 0 : index
    %769 = vector.load %arg7[%c122, %c0_263] : memref<128x128xf32, #tpu.memory_space<vmem>>, vector<1x128xf32>
    tpu.vector_store %arg7[%c122, %c0_263], %768 {strides = array<i32>} : memref<128x128xf32, #tpu.memory_space<vmem>>, vector<1x128xf32>,
    %c123_i32 = arith.constant 123 : i32
    %770 = arith.addi %31, %c123_i32 : i32
    %771 = arith.index_cast %770 : i32 to index
    %772 = memref.load %arg1[%771] : memref<384xi32, #tpu.memory_space<smem>>
    %773 = arith.index_cast %772 : i32 to index
    %c0_264 = arith.constant 0 : index
    %774 = vector.load %arg8[%773, %c0_264] : memref<512x128xf32, #tpu.memory_space<vmem>>, vector<1x128xf32>
    %c123 = arith.constant 123 : index
    %c0_265 = arith.constant 0 : index
    %775 = vector.load %arg7[%c123, %c0_265] : memref<128x128xf32, #tpu.memory_space<vmem>>, vector<1x128xf32>
    tpu.vector_store %arg7[%c123, %c0_265], %774 {strides = array<i32>} : memref<128x128xf32, #tpu.memory_space<vmem>>, vector<1x128xf32>,
    %c124_i32 = arith.constant 124 : i32
    %776 = arith.addi %31, %c124_i32 : i32
    %777 = arith.index_cast %776 : i32 to index
    %778 = memref.load %arg1[%777] : memref<384xi32, #tpu.memory_space<smem>>
    %779 = arith.index_cast %778 : i32 to index
    %c0_266 = arith.constant 0 : index
    %780 = vector.load %arg8[%779, %c0_266] : memref<512x128xf32, #tpu.memory_space<vmem>>, vector<1x128xf32>
    %c124 = arith.constant 124 : index
    %c0_267 = arith.constant 0 : index
    %781 = vector.load %arg7[%c124, %c0_267] : memref<128x128xf32, #tpu.memory_space<vmem>>, vector<1x128xf32>
    tpu.vector_store %arg7[%c124, %c0_267], %780 {strides = array<i32>} : memref<128x128xf32, #tpu.memory_space<vmem>>, vector<1x128xf32>,
    %c125_i32 = arith.constant 125 : i32
    %782 = arith.addi %31, %c125_i32 : i32
    %783 = arith.index_cast %782 : i32 to index
    %784 = memref.load %arg1[%783] : memref<384xi32, #tpu.memory_space<smem>>
    %785 = arith.index_cast %784 : i32 to index
    %c0_268 = arith.constant 0 : index
    %786 = vector.load %arg8[%785, %c0_268] : memref<512x128xf32, #tpu.memory_space<vmem>>, vector<1x128xf32>
    %c125 = arith.constant 125 : index
    %c0_269 = arith.constant 0 : index
    %787 = vector.load %arg7[%c125, %c0_269] : memref<128x128xf32, #tpu.memory_space<vmem>>, vector<1x128xf32>
    tpu.vector_store %arg7[%c125, %c0_269], %786 {strides = array<i32>} : memref<128x128xf32, #tpu.memory_space<vmem>>, vector<1x128xf32>,
    %c126_i32 = arith.constant 126 : i32
    %788 = arith.addi %31, %c126_i32 : i32
    %789 = arith.index_cast %788 : i32 to index
    %790 = memref.load %arg1[%789] : memref<384xi32, #tpu.memory_space<smem>>
    %791 = arith.index_cast %790 : i32 to index
    %c0_270 = arith.constant 0 : index
    %792 = vector.load %arg8[%791, %c0_270] : memref<512x128xf32, #tpu.memory_space<vmem>>, vector<1x128xf32>
    %c126 = arith.constant 126 : index
    %c0_271 = arith.constant 0 : index
    %793 = vector.load %arg7[%c126, %c0_271] : memref<128x128xf32, #tpu.memory_space<vmem>>, vector<1x128xf32>
    tpu.vector_store %arg7[%c126, %c0_271], %792 {strides = array<i32>} : memref<128x128xf32, #tpu.memory_space<vmem>>, vector<1x128xf32>,
    %c127_i32 = arith.constant 127 : i32
    %794 = arith.addi %31, %c127_i32 : i32
    %795 = arith.index_cast %794 : i32 to index
    %796 = memref.load %arg1[%795] : memref<384xi32, #tpu.memory_space<smem>>
    %797 = arith.index_cast %796 : i32 to index
    %c0_272 = arith.constant 0 : index
    %798 = vector.load %arg8[%797, %c0_272] : memref<512x128xf32, #tpu.memory_space<vmem>>, vector<1x128xf32>
    %c127 = arith.constant 127 : index
    %c0_273 = arith.constant 0 : index
    %799 = vector.load %arg7[%c127, %c0_273] : memref<128x128xf32, #tpu.memory_space<vmem>>, vector<1x128xf32>
    tpu.vector_store %arg7[%c127, %c0_273], %798 {strides = array<i32>} : memref<128x128xf32, #tpu.memory_space<vmem>>, vector<1x128xf32>,
    return
  }
  func.func @transform_0(%arg0: i32, %arg1: memref<384xi32, #tpu.memory_space<smem>>) -> (i32, i32) {
    %c0_i32 = arith.constant 0 : i32
    %c0_i32_0 = arith.constant 0 : i32
    %c0_i32_1 = arith.constant 0 : i32
    return %c0_i32, %c0_i32_0 : i32, i32
  }
  func.func @transform_1(%arg0: i32, %arg1: memref<384xi32, #tpu.memory_space<smem>>) -> (i32, i32) {
    %c0_i32 = arith.constant 0 : i32
    %c0_i32_0 = arith.constant 0 : i32
    %c0_i32_1 = arith.constant 0 : i32
    return %c0_i32, %c0_i32_0 : i32, i32
  }
  func.func @transform_2(%arg0: i32, %arg1: memref<384xi32, #tpu.memory_space<smem>>) -> (i32, i32) {
    %c0_i32 = arith.constant 0 : i32
    %c0_i32_0 = arith.constant 0 : i32
    %c0_i32_1 = arith.constant 0 : i32
    return %c0_i32, %c0_i32_0 : i32, i32
  }
  func.func @transform_3(%arg0: i32, %arg1: memref<384xi32, #tpu.memory_space<smem>>) -> (i32, i32) {
    %c0_i32 = arith.constant 0 : i32
    %c0_i32_0 = arith.constant 0 : i32
    %c0_i32_1 = arith.constant 0 : i32
    return %c0_i32, %c0_i32_0 : i32, i32
  }
  func.func @transform_4(%arg0: i32, %arg1: memref<384xi32, #tpu.memory_space<smem>>) -> (i32, i32) {
    %c0_i32 = arith.constant 0 : i32
    %c0_i32_0 = arith.constant 0 : i32
    %c0_i32_1 = arith.constant 0 : i32
    return %c0_i32, %c0_i32_0 : i32, i32
  }
  func.func @transform_5(%arg0: i32, %arg1: memref<384xi32, #tpu.memory_space<smem>>) -> (i32, i32) {
    %c0_i32 = arith.constant 0 : i32
    %c0_i32_0 = arith.constant 0 : i32
    return %arg0, %c0_i32 : i32, i32
  }
}

</mosaic_0001>

<bundles_post_ra>
// kernel: tpu_custom_call.1
= control target key start
LH: loop header
LB: loop body
LE: loop exit
PB: predicated region body
PF: predicated region fallthrough
CT: control target
= control target key end

     0   :  { %s4847_s0 = inlined_call_operand.vmem [shape: s32[384], index: 0, kind: input, shape index: {}]   ;;  %s4848_s1 = inlined_call_operand.vmem [shape: f32[512,64], index: 1, kind: input, shape index: {}]   ;;  %s4849_s2 = inlined_call_operand.vmem [shape: f32[1,64], index: 2, kind: input, shape index: {}]   ;;  %s4850_s3 = inlined_call_operand.vmem [shape: f32[1,64], index: 3, kind: input, shape index: {}]   ;;  %s4851_s4 = inlined_call_operand.vmem [shape: f32[64,128], index: 4, kind: input, shape index: {}]   ;;  %s4852_s5 = inlined_call_operand.vmem [shape: f32[1,128], index: 5, kind: input, shape index: {}]   ;;  %s4853_s6 = inlined_call_operand.hbm [shape: f32[384,128], index: 6, kind: output, shape index: {}]  }
   0x1   :  { %4901 = sst [smem:[#allocation113_spill]] %s4848_s1  ;;  %s11_s23 = sshll.u32 %s4847_s0, 4  ;;  %s12_s23 = int_to_ptr.vmem [resolvable:$true] %s11_s23 }
   0x2   :  { %4902 = sst [smem:[#allocation114_spill]] %s4849_s2  ;;  %s2762_s24 = scalar_lea.vmem %s12_s23, 48 }
   0x3   :  { %4903 = sst [smem:[#allocation115_spill]] %s4850_s3  ;;  %p2763_p0 = scmp.ne.s32.totalorder %s12_s23, %s2762_s24 }
   0x4   :  { %4904 = sst [smem:[#allocation116_spill]] %s4851_s4  ;;  %s2766_s25 = scalar_lea.vmem %s12_s23, 64 }
   0x5   :  { %4905 = sst [smem:[#allocation117_spill]] %s4852_s5  ;;  %p2767_p1 = scmp.lt.s32.totalorder %s12_s23, %s12_s23 }
   0x6   :  { %4906 = sst [smem:[#allocation118_spill]] %s4853_s6  ;;  %p2768_p2 = scmp.lt.s32.totalorder %s2766_s25, %s2762_s24 }
   0x8   :  { %p2769_p3 = por %p2768_p2, %p2767_p1 }
   0xa   :  { %p2770_p4 = pnand %p2769_p3, %p2763_p0 }
   0xc   :  { %2773 = shalt.err (!%p2770_p4)  }
   0xd   :  { %s2840_s26 = smov [#allocation4]  }
   0xe   :  { %14 = dma.vmem_to_smem %s12_s23, 48, %s2840_s26, [#allocation3] }
   0xf   :  { %2818 = dma.done.wait [#allocation3], 48 }
  0x10   :  { %2819 = vsyncadd [#allocation3], 4294967248 }
  0x11   :  { %16 = sfence }
  0x12   :  { %17 = vsyncpa [#allocation6], 0 }
  0x13   :  { %19 = vsyncpa [#allocation6 + $0x1], 0  ;;  %s2882_s27 = smov 0   ;;  %s2884_s28 = smov 0  }
  0x14   :  { %s2886_s0 = smov 0   ;;  %s2888_s29 = smov 0  }
  0x15 LB: > { %4907 = sst [smem:[#allocation9_spill]] %s2826_s27  ;;  %s2903_s30 = sadd.s32 4294967295, %s2838_s29   ;;  %s2838_s29 = sphi %s2888_s29, %s5141_s29   ;;  %s2834_s0 = sphi %s2886_s0, %s5144_s0   ;;  %s2830_s28 = sphi %s2884_s28, %s5143_s28   ;;  %s2826_s27 = sphi %s2882_s27, %s5142_s27  }
  0x16   : > { %4908 = sst [smem:[#allocation10_spill]] %s2830_s28  ;;  %s2432_s7 = sadd.s32 4294967294, %s2838_s29  }
  0x17   : > { %4909 = sst [smem:[#allocation11_spill]] %s2834_s0  ;;  %s2907_s8 = sadd.s32 1, %s2838_s29  }
  0x18   : > { %4910 = sst [smem:[#allocation12_spill]] %s2838_s29  ;;  %s137_s9 = sadd.s32 1, %s2834_s0 }
  0x19   : > { %4911 = sst [smem:[#allocation13_spill]] %s2903_s30  ;;  %s134_s10 = ssub.s32 %s2838_s29, %s2907_s8 }
  0x1a   : > { %4912 = sst [smem:[#allocation14_spill]] %s2907_s8  ;;  %p147_p5 = scmp.ne.s32.totalorder %s2834_s0, %s2830_s28 }
  0x1b   : > { %p135_p6 = scmp.eq.s32.totalorder %s134_s10, 0  ;;  %p148_p7 = scmp.eq.s32.totalorder %s2903_s30, 2 }
  0x1c   : > { %p153_p8 = scmp.ne.s32.totalorder %s2830_s28, %s2826_s27  ;;  %p154_p9 = scmp.eq.s32.totalorder %s2432_s7, 2 }
  0x1d   : > { %s2918_s11 = scalar_select %p135_p6, %s2834_s0, %s137_s9  }
  0x1e   : > { %p2920_p10 = por %p148_p7, %p147_p5  ;;  %p2924_p11 = por %p154_p9, %p153_p8 }
  0x1f   : > { %4913 = sst [smem:[#allocation15_spill]] %s2918_s11  ;;  %p2434_p12 = scmp.ge.s32.totalorder %s2838_s29, 1 }
  0x20   : > { %s4914_s12 = scalar_select %p2920_p10, 1, 0 }
  0x21   : > { %s4916_s13 = scalar_select %p2924_p11, 1, 0 }
  0x22   : > { %4915 = sst [smem:[#allocation16_spill]] %s4914_s12  ;;  %p187_p13 = scmp.lt.s32.totalorder %s2838_s29, 4 }
  0x23   : > { %4917 = sst [smem:[#allocation17_spill]] %s4916_s13 }
  0x24   : > { %p188_p0 = pnand %p2434_p12, %p187_p13 }
  0x26   : > { %191 = sbr.rel (%p188_p0) target bundleno = 802 (0x322), region = 40 }
  0x2d   : > { %s4918_s4 = sld [smem:[#allocation116_spill]]  ;;  %vm275_vm0 = vcmask 523264   ;;  %s4919_s1 = sld [smem:[#allocation113_spill]] }
  0x2e   : > { %s4969_s2 = sld [smem:[#allocation114_spill]]  ;;  %s4970_s3 = sld [smem:[#allocation115_spill]] }
  0x2f   : > { %s4185_s18 = sshll.u32 %s2903_s30, 7  ;;  %s4889_s21 = sand.u32 1, %s2830_s28  }
  0x30   : > { %s1605_s19 = sadd.s32 1, %s4185_s18  ;;  %s1610_s20 = sadd.s32 2, %s4185_s18 }
  0x31   : > { %s4191_s22 = sld [smem:[#allocation4 + %s4185_s18]]  ;;  %s4195_s23 = sshll.u32 %s4889_s21, 7 }
  0x32   : > { %s4197_s24 = sld [smem:[#allocation4 + %s1605_s19]]  ;;  %s1615_s26 = sadd.s32 3, %s4185_s18 }
  0x33   : > { %v944_v0 = vld [vmem:[%s4918_s4] sm:$0xff]  ;;  %v945_v1 = vld [vmem:[%s4918_s4 + $0x8] sm:$0xff]  ;;  %v946_v2 = vld [vmem:[%s4918_s4 + $0x10] sm:$0xff]  ;;  %s4199_s25 = sld [smem:[#allocation4 + %s1610_s20]]  ;;  %s1620_s7 = sadd.s32 4, %s4185_s18 }
  0x34   : > { %v2694_v3 = vpack.c.bf16 %v945_v1, %v944_v0  ;;  %v947_v4 = vld [vmem:[%s4918_s4 + $0x18] sm:$0xff]  ;;  %v948_v6 = vld [vmem:[%s4918_s4 + $0x20] sm:$0xff]  ;;  %v949_v7 = vld [vmem:[%s4918_s4 + $0x28] sm:$0xff]  ;;  %s4203_s9 = sld [smem:[#allocation4 + %s1615_s26]]  ;;  %s1625_s14 = sadd.s32 5, %s4185_s18 }
  0x35   : > { %v2698_v5 = vpack.c.bf16 %v947_v4, %v946_v2  ;;  %v2951_v8 = vld [vmem:[%s4919_s1] sm:$0xff]  ;;  %v2956_v9 = vld [vmem:[%s4919_s1 + $0x8] sm:$0xff]  ;;  %v2961_v10 = vld [vmem:[%s4919_s1 + $0x10] sm:$0xff]  ;;  %v2702_v15 = vpack.c.bf16 %v949_v7, %v948_v6  ;;  %s4205_s10 = sld [smem:[#allocation4 + %s1620_s7]]  ;;  %s1630_s15 = sadd.s32 6, %s4185_s18 }
  0x36   : > { %2695 = vmatprep.subr.bf16.mxu0 %v2694_v3  ;;  %2710 = vmatprep.subr.bf16.mxu1 %v2694_v3  ;;  %v2966_v11 = vld [vmem:[%s4919_s1 + $0x18] sm:$0xff]  ;;  %v276_v12 = vsel %vm275_vm0, %v2951_v8, 0.0  ;;  %v277_v13 = vsel %vm275_vm0, %v2956_v9, 0.0  ;;  %v279_v14 = vsel %vm275_vm0, %v2961_v10, 0.0  ;;  %v2977_v16 = vld [vmem:[%s4919_s1 + $0x20] sm:$0xff]  ;;  %v950_v18 = vld [vmem:[%s4918_s4 + $0x30] sm:$0xff] }
  0x37   : > { %2697 = vmatpush3.bf16.msra.mxu0 %v2694_v3  ;;  %2714 = vmatpush3.bf16.msra.mxu1 %v2694_v3  ;;  %v278_v17 = vadd.f32 %v277_v13, %v276_v12  ;;  %v951_v19 = vld [vmem:[%s4918_s4 + $0x38] sm:$0xff]  ;;  %v281_v20 = vsel %vm275_vm0, %v2966_v11, 0.0  ;;  %v2990_v21 = vld [vmem:[%s4919_s1 + $0x28] sm:$0xff]  ;;  %v283_v23 = vsel %vm275_vm0, %v2977_v16, 0.0  ;;  %v2997_v25 = vld [vmem:[%s4919_s1 + $0x30] sm:$0xff]  ;;  %s4209_s16 = sld [smem:[#allocation4 + %s1625_s14]] }
  0x38   : > { %2699 = vmatprep.subr.bf16.mxu0 %v2698_v5  ;;  %2711 = vmatprep.subr.bf16.mxu1 %v2698_v5  ;;  %v2706_v24 = vpack.c.bf16 %v951_v19, %v950_v18  ;;  %v285_v27 = vsel %vm275_vm0, %v2990_v21, 0.0  ;;  %v3004_v28 = vld [vmem:[%s4919_s1 + $0x38] sm:$0xff]  ;;  %v287_v30 = vsel %vm275_vm0, %v2997_v25, 0.0  ;;  %v3011_v31 = vld [vmem:[%s4919_s1 + $0x40] sm:$0xff]  ;;  %v3018_v34 = vld [vmem:[%s4919_s1 + $0x48] sm:$0xff]  ;;  %s4211_s17 = sld [smem:[#allocation4 + %s1630_s15]] }
  0x39   : > { %v280_v22 = vadd.f32 %v279_v14, %v278_v17  ;;  %v289_v33 = vsel %vm275_vm0, %v3004_v28, 0.0  ;;  %v291_v36 = vsel %vm275_vm0, %v3011_v31, 0.0  ;;  %v3025_v37 = vld [vmem:[%s4919_s1 + $0x50] sm:$0xff]  ;;  %v293_v39 = vsel %vm275_vm0, %v3018_v34, 0.0  ;;  %v3032_v40 = vld [vmem:[%s4919_s1 + $0x58] sm:$0xff]  ;;  %v3039_v43 = vld [vmem:[%s4919_s1 + $0x60] sm:$0xff] }
  0x3a   : > { %v295_v42 = vsel %vm275_vm0, %v3025_v37, 0.0  ;;  %v297_v45 = vsel %vm275_vm0, %v3032_v40, 0.0  ;;  %v3046_v46 = vld [vmem:[%s4919_s1 + $0x68] sm:$0xff]  ;;  %v299_v48 = vsel %vm275_vm0, %v3039_v43, 0.0  ;;  %v3053_v49 = vld [vmem:[%s4919_s1 + $0x70] sm:$0xff]  ;;  %v3060_v52 = vld [vmem:[%s4919_s1 + $0x78] sm:$0xff] }
  0x3b   : > { %2701 = vmatpush3.bf16.msra.mxu0 %v2698_v5  ;;  %2715 = vmatpush3.bf16.msra.mxu1 %v2698_v5  ;;  %v282_v26 = vadd.f32 %v281_v20, %v280_v22  ;;  %v301_v51 = vsel %vm275_vm0, %v3046_v46, 0.0  ;;  %v303_v54 = vsel %vm275_vm0, %v3053_v49, 0.0  ;;  %v3067_v55 = vld [vmem:[%s4919_s1 + $0x80] sm:$0xff]  ;;  %v305_v57 = vsel %vm275_vm0, %v3060_v52, 0.0  ;;  %v3074_v58 = vld [vmem:[%s4919_s1 + $0x88] sm:$0xff]  ;;  %v3081_v61 = vld [vmem:[%s4919_s1 + $0x90] sm:$0xff] }
  0x3c   : > { %2703 = vmatprep.subr.bf16.mxu0 %v2702_v15  ;;  %2712 = vmatprep.subr.bf16.mxu1 %v2702_v15  ;;  %v307_v60 = vsel %vm275_vm0, %v3067_v55, 0.0  ;;  %v309_v63 = vsel %vm275_vm0, %v3074_v58, 0.0  ;;  %v3088_v0 = vld [vmem:[%s4919_s1 + $0x98] sm:$0xff]  ;;  %v311_v2 = vsel %vm275_vm0, %v3081_v61, 0.0  ;;  %v3095_v3 = vld [vmem:[%s4919_s1 + $0xa0] sm:$0xff]  ;;  %v3102_v6 = vld [vmem:[%s4919_s1 + $0xa8] sm:$0xff] }
  0x3d   : > { %v284_v29 = vadd.f32 %v283_v23, %v282_v26  ;;  %v313_v5 = vsel %vm275_vm0, %v3088_v0, 0.0  ;;  %v315_v12 = vsel %vm275_vm0, %v3095_v3, 0.0  ;;  %v3109_v13 = vld [vmem:[%s4919_s1 + $0xb0] sm:$0xff]  ;;  %v3116_v17 = vld [vmem:[%s4919_s1 + $0xb8] sm:$0xff]  ;;  %v3123_v20 = vld [vmem:[%s4919_s1 + $0xc0] sm:$0xff]  ;;  %s1635_s19 = sadd.s32 7, %s4185_s18 }
  0x3e   : > { %v319_v19 = vsel %vm275_vm0, %v3109_v13, 0.0  ;;  %v321_v23 = vsel %vm275_vm0, %v3116_v17, 0.0  ;;  %s4214_s20 = sld [smem:[#allocation4 + %s1635_s19]]  ;;  %s1640_s21 = sadd.s32 8, %s4185_s18 }
  0x3f   : > { %2705 = vmatpush3.bf16.msra.mxu0 %v2702_v15  ;;  %2716 = vmatpush3.bf16.msra.mxu1 %v2702_v15  ;;  %v286_v32 = vadd.f32 %v285_v27, %v284_v29  ;;  %v317_v15 = vsel %vm275_vm0, %v3102_v6, 0.0  ;;  %v323_v27 = vsel %vm275_vm0, %v3123_v20, 0.0  ;;  %v3137_v29 = vld [vmem:[%s4919_s1 + $0xd0] sm:$0xff]  ;;  %s1645_s26 = sadd.s32 9, %s4185_s18  ;;  %s1655_s14 = sadd.s32 11, %s4185_s18 }
  0x40   : > { %2707 = vmatprep.subr.bf16.mxu0 %v2706_v24  ;;  %2713 = vmatprep.subr.bf16.mxu1 %v2706_v24  ;;  %s4220_s7 = sld [smem:[#allocation4 + %s1645_s26]]  ;;  %s1660_s4 = sadd.s32 12, %s4185_s18 }
  0x41   : > { %v288_v35 = vadd.f32 %v287_v30, %v286_v32  ;;  %s4226_s15 = sld [smem:[#allocation4 + %s1655_s14]]  ;;  %s1665_s19 = sadd.s32 13, %s4185_s18 }
  0x42   : > { %s4230_s11 = sld [smem:[#allocation4 + %s1660_s4]]  ;;  %s1670_s0 = sadd.s32 14, %s4185_s18 }
  0x43   : > { %2709 = vmatpush3.bf16.msra.mxu0 %v2706_v24  ;;  %2717 = vmatpush3.bf16.msra.mxu1 %v2706_v24  ;;  %v290_v38 = vadd.f32 %v289_v33, %v288_v35  ;;  %v3130_v24 = vld [vmem:[%s4919_s1 + $0xc8] sm:$0xff]  ;;  %v3144_v33 = vld [vmem:[%s4919_s1 + $0xd8] sm:$0xff]  ;;  %s1675_s26 = sadd.s32 15, %s4185_s18  ;;  %s4236_s8 = sld [smem:[#allocation4 + %s1670_s0]] }
  0x44   : > { %v325_v32 = vsel %vm275_vm0, %v3130_v24, 0.0  ;;  %s1680_s13 = sadd.s32 16, %s4185_s18  ;;  %s1685_s14 = sadd.s32 17, %s4185_s18 }
  0x45   : > { %v292_v41 = vadd.f32 %v291_v36, %v290_v38  ;;  %v327_v36 = vsel %vm275_vm0, %v3137_v29, 0.0  ;;  %v3151_v38 = vld [vmem:[%s4919_s1 + $0xe0] sm:$0xff]  ;;  %s4242_s27 = sld [smem:[#allocation4 + %s1680_s13]]  ;;  %s1690_s4 = sadd.s32 18, %s4185_s18 }
  0x46   : > { %s4244_s29 = sld [smem:[#allocation4 + %s1685_s14]]  ;;  %s1700_s0 = sadd.s32 20, %s4185_s18 }
  0x47   : > { %v294_v44 = vadd.f32 %v293_v39, %v292_v41  ;;  %v329_v41 = vsel %vm275_vm0, %v3144_v33, 0.0  ;;  %s4248_s6 = sld [smem:[#allocation4 + %s1690_s4]]  ;;  %s1710_s13 = sadd.s32 22, %s4185_s18 }
  0x48   : > { %s4254_s28 = sld [smem:[#allocation4 + %s1700_s0]]  ;;  %s1715_s14 = sadd.s32 23, %s4185_s18 }
  0x49   : > { %v296_v47 = vadd.f32 %v295_v42, %v294_v44  ;;  %v3158_v42 = vld [vmem:[%s4919_s1 + $0xe8] sm:$0xff]  ;;  %4992 = sst [smem:[#allocation43_spill]] %s4236_s8  ;;  %s1720_s4 = sadd.s32 24, %s4185_s18 }
  0x4a   : > { %s1730_s0 = sadd.s32 26, %s4185_s18  ;;  %s1795_s8 = sadd.s32 39, %s4185_s18 }
  0x4b   : > { %v298_v50 = vadd.f32 %v297_v45, %v296_v47  ;;  %v331_v45 = vsel %vm275_vm0, %v3151_v38, 0.0  ;;  %v3165_v47 = vld [vmem:[%s4919_s1 + $0xf0] sm:$0xff]  ;;  %4994 = sst [smem:[#allocation45_spill]] %s4242_s27  ;;  %s5017_s5 = sld [smem:[#allocation117_spill]] }
  0x4c   : > { %4995 = sst [smem:[#allocation46_spill]] %s4244_s29 }
  0x4d   : > { %v300_v53 = vadd.f32 %v299_v48, %v298_v50  ;;  %v333_v50 = vsel %vm275_vm0, %v3158_v42, 0.0  ;;  %4996 = sst [smem:[#allocation47_spill]] %s4248_s6 }
  0x4e   : > { %4998 = sst [smem:[#allocation49_spill]] %s4254_s28 }
  0x4f   : > { %v302_v56 = vadd.f32 %v301_v51, %v300_v53  ;;  %v3172_v51 = vld [vmem:[%s4919_s1 + $0xf8] sm:$0xff]  ;;  %s4260_s29 = sld [smem:[#allocation4 + %s1710_s13]]  ;;  %s1740_s13 = sadd.s32 28, %s4185_s18 }
  0x50   : > { %s4262_s27 = sld [smem:[#allocation4 + %s1715_s14]]  ;;  %s1745_s14 = sadd.s32 29, %s4185_s18 }
  0x51   : > { %v304_v59 = vadd.f32 %v303_v54, %v302_v56  ;;  %v335_v54 = vsel %vm275_vm0, %v3165_v47, 0.0  ;;  %v3179_v56 = vld [vmem:[%s4919_s1 + $0x100] sm:$0xff] }
  0x53   : > { %v306_v62 = vadd.f32 %v305_v57, %v304_v59  ;;  %v337_v59 = vsel %vm275_vm0, %v3172_v51, 0.0 }
  0x55   : > { %v308_v1 = vadd.f32 %v307_v60, %v306_v62  ;;  %v3186_v60 = vld [vmem:[%s4919_s1 + $0x108] sm:$0xff]  ;;  %5000 = sst [smem:[#allocation51_spill]] %s4260_s29 }
  0x56   : > { %5001 = sst [smem:[#allocation52_spill]] %s4262_s27 }
  0x57   : > { %v310_v4 = vadd.f32 %v309_v63, %v308_v1  ;;  %v339_v63 = vsel %vm275_vm0, %v3179_v56, 0.0  ;;  %v3193_v1 = vld [vmem:[%s4919_s1 + $0x110] sm:$0xff]  ;;  %s4278_s27 = sld [smem:[#allocation4 + %s1740_s13]]  ;;  %s1770_s13 = sadd.s32 34, %s4185_s18 }
  0x58   : > { %s4280_s29 = sld [smem:[#allocation4 + %s1745_s14]] }
  0x59   : > { %v312_v7 = vadd.f32 %v311_v2, %v310_v4  ;;  %v341_v4 = vsel %vm275_vm0, %v3186_v60, 0.0  ;;  %s4296_s14 = sld [smem:[#allocation4 + %s1770_s13]] }
  0x5b   : > { %v314_v14 = vadd.f32 %v313_v5, %v312_v7  ;;  %v3200_v5 = vld [vmem:[%s4919_s1 + $0x118] sm:$0xff] }
  0x5d   : > { %v316_v18 = vadd.f32 %v315_v12, %v314_v14  ;;  %v343_v12 = vsel %vm275_vm0, %v3193_v1, 0.0  ;;  %v3207_v14 = vld [vmem:[%s4919_s1 + $0x120] sm:$0xff]  ;;  %5006 = sst [smem:[#allocation57_spill]] %s4278_s27  ;;  %s1775_s27 = sadd.s32 35, %s4185_s18 }
  0x5e   : > { %5007 = sst [smem:[#allocation58_spill]] %s4280_s29 }
  0x5f   : > { %v318_v22 = vadd.f32 %v317_v15, %v316_v18  ;;  %v345_v18 = vsel %vm275_vm0, %v3200_v5, 0.0  ;;  %5012 = sst [smem:[#allocation63_spill]] %s4296_s14 }
  0x60   : > { %s4298_s29 = sld [smem:[#allocation4 + %s1775_s27]] }
  0x61   : > { %v320_v26 = vadd.f32 %v319_v19, %v318_v22  ;;  %v3214_v19 = vld [vmem:[%s4919_s1 + $0x128] sm:$0xff] }
  0x63   : > { %v322_v30 = vadd.f32 %v321_v23, %v320_v26  ;;  %v347_v23 = vsel %vm275_vm0, %v3207_v14, 0.0  ;;  %v3221_v26 = vld [vmem:[%s4919_s1 + $0x130] sm:$0xff] }
  0x65   : > { %v324_v35 = vadd.f32 %v323_v27, %v322_v30  ;;  %v349_v30 = vsel %vm275_vm0, %v3214_v19, 0.0 }
  0x67   : > { %v326_v39 = vadd.f32 %v325_v32, %v324_v35  ;;  %v3228_v32 = vld [vmem:[%s4919_s1 + $0x138] sm:$0xff] }
  0x69   : > { %v328_v44 = vadd.f32 %v327_v36, %v326_v39  ;;  %v351_v36 = vsel %vm275_vm0, %v3221_v26, 0.0  ;;  %v3235_v39 = vld [vmem:[%s4919_s1 + $0x140] sm:$0xff] }
  0x6b   : > { %v330_v48 = vadd.f32 %v329_v41, %v328_v44  ;;  %v353_v44 = vsel %vm275_vm0, %v3228_v32, 0.0 }
  0x6d   : > { %v332_v53 = vadd.f32 %v331_v45, %v330_v48  ;;  %v3242_v45 = vld [vmem:[%s4919_s1 + $0x148] sm:$0xff] }
  0x6f   : > { %v334_v57 = vadd.f32 %v333_v50, %v332_v53  ;;  %v355_v50 = vsel %vm275_vm0, %v3235_v39, 0.0  ;;  %v3249_v53 = vld [vmem:[%s4919_s1 + $0x150] sm:$0xff] }
  0x71   : > { %v336_v62 = vadd.f32 %v335_v54, %v334_v57  ;;  %v357_v57 = vsel %vm275_vm0, %v3242_v45, 0.0 }
  0x73   : > { %v338_v2 = vadd.f32 %v337_v59, %v336_v62  ;;  %v3256_v59 = vld [vmem:[%s4919_s1 + $0x158] sm:$0xff] }
  0x75   : > { %v340_v7 = vadd.f32 %v339_v63, %v338_v2  ;;  %v359_v63 = vsel %vm275_vm0, %v3249_v53, 0.0  ;;  %v3263_v2 = vld [vmem:[%s4919_s1 + $0x160] sm:$0xff] }
  0x77   : > { %v342_v15 = vadd.f32 %v341_v4, %v340_v7  ;;  %v361_v7 = vsel %vm275_vm0, %v3256_v59, 0.0 }
  0x79   : > { %v344_v22 = vadd.f32 %v343_v12, %v342_v15  ;;  %v3270_v12 = vld [vmem:[%s4919_s1 + $0x168] sm:$0xff] }
  0x7b   : > { %v346_v27 = vadd.f32 %v345_v18, %v344_v22  ;;  %v363_v18 = vsel %vm275_vm0, %v3263_v2, 0.0  ;;  %v3277_v22 = vld [vmem:[%s4919_s1 + $0x170] sm:$0xff] }
  0x7d   : > { %v348_v35 = vadd.f32 %v347_v23, %v346_v27  ;;  %v365_v27 = vsel %vm275_vm0, %v3270_v12, 0.0 }
  0x7f   : > { %v350_v41 = vadd.f32 %v349_v30, %v348_v35  ;;  %v3284_v30 = vld [vmem:[%s4919_s1 + $0x178] sm:$0xff] }
  0x81   : > { %v352_v48 = vadd.f32 %v351_v36, %v350_v41  ;;  %v367_v36 = vsel %vm275_vm0, %v3277_v22, 0.0  ;;  %v3291_v41 = vld [vmem:[%s4919_s1 + $0x180] sm:$0xff] }
  0x83   : > { %v354_v54 = vadd.f32 %v353_v44, %v352_v48  ;;  %v369_v48 = vsel %vm275_vm0, %v3284_v30, 0.0 }
  0x85   : > { %v356_v62 = vadd.f32 %v355_v50, %v354_v54  ;;  %v3298_v50 = vld [vmem:[%s4919_s1 + $0x188] sm:$0xff] }
  0x86   : > { %4920 = vst [vmem:[#allocation18_spill] sm:$0xff] %v3298_v50 }
  0x87   : > { %v358_v4 = vadd.f32 %v357_v57, %v356_v62  ;;  %v371_v57 = vsel %vm275_vm0, %v3291_v41, 0.0  ;;  %v3305_v62 = vld [vmem:[%s4919_s1 + $0x190] sm:$0xff] }
  0x88   : > { %4921 = vst [vmem:[#allocation19_spill] sm:$0xff] %v3305_v62 }
  0x89   : > { %v360_v15 = vadd.f32 %v359_v63, %v358_v4  ;;  %v373_v4 = vsel %vm275_vm0, %v3298_v50, 0.0 }
  0x8b   : > { %v362_v23 = vadd.f32 %v361_v7, %v360_v15  ;;  %v3312_v7 = vld [vmem:[%s4919_s1 + $0x198] sm:$0xff] }
  0x8c   : > { %4922 = vst [vmem:[#allocation20_spill] sm:$0xff] %v3312_v7 }
  0x8d   : > { %v364_v35 = vadd.f32 %v363_v18, %v362_v23  ;;  %v375_v18 = vsel %vm275_vm0, %v3305_v62, 0.0  ;;  %v3319_v23 = vld [vmem:[%s4919_s1 + $0x1a0] sm:$0xff] }
  0x8e   : > { %4923 = vst [vmem:[#allocation21_spill] sm:$0xff] %v3319_v23 }
  0x8f   : > { %v366_v44 = vadd.f32 %v365_v27, %v364_v35  ;;  %v377_v35 = vsel %vm275_vm0, %v3312_v7, 0.0 }
  0x91   : > { %v368_v54 = vadd.f32 %v367_v36, %v366_v44  ;;  %v3326_v36 = vld [vmem:[%s4919_s1 + $0x1a8] sm:$0xff] }
  0x92   : > { %4924 = vst [vmem:[#allocation22_spill] sm:$0xff] %v3326_v36 }
  0x93   : > { %v370_v63 = vadd.f32 %v369_v48, %v368_v54  ;;  %v379_v48 = vsel %vm275_vm0, %v3319_v23, 0.0  ;;  %v3333_v54 = vld [vmem:[%s4919_s1 + $0x1b0] sm:$0xff] }
  0x94   : > { %4925 = vst [vmem:[#allocation23_spill] sm:$0xff] %v3333_v54 }
  0x95   : > { %v372_v15 = vadd.f32 %v371_v57, %v370_v63  ;;  %v381_v63 = vsel %vm275_vm0, %v3326_v36, 0.0 }
  0x97   : > { %v374_v27 = vadd.f32 %v373_v4, %v372_v15  ;;  %v3340_v4 = vld [vmem:[%s4919_s1 + $0x1b8] sm:$0xff] }
  0x98   : > { %4926 = vst [vmem:[#allocation24_spill] sm:$0xff] %v3340_v4 }
  0x99   : > { %v376_v44 = vadd.f32 %v375_v18, %v374_v27  ;;  %v383_v18 = vsel %vm275_vm0, %v3333_v54, 0.0  ;;  %v3347_v27 = vld [vmem:[%s4919_s1 + $0x1c0] sm:$0xff] }
  0x9a   : > { %4927 = vst [vmem:[#allocation25_spill] sm:$0xff] %v3347_v27 }
  0x9b   : > { %v378_v57 = vadd.f32 %v377_v35, %v376_v44  ;;  %v385_v35 = vsel %vm275_vm0, %v3340_v4, 0.0  ;;  %v3354_v44 = vld [vmem:[%s4919_s1 + $0x1c8] sm:$0xff] }
  0x9c   : > { %4928 = vst [vmem:[#allocation26_spill] sm:$0xff] %v3354_v44 }
  0x9d   : > { %v380_v15 = vadd.f32 %v379_v48, %v378_v57  ;;  %v387_v48 = vsel %vm275_vm0, %v3347_v27, 0.0  ;;  %v3361_v57 = vld [vmem:[%s4919_s1 + $0x1d0] sm:$0xff] }
  0x9e   : > { %4929 = vst [vmem:[#allocation27_spill] sm:$0xff] %v3361_v57 }
  0x9f   : > { %v382_v23 = vadd.f32 %v381_v63, %v380_v15  ;;  %v389_v63 = vsel %vm275_vm0, %v3354_v44, 0.0  ;;  %v3368_v15 = vld [vmem:[%s4919_s1 + $0x1d8] sm:$0xff] }
  0xa0   : > { %4930 = vst [vmem:[#allocation28_spill] sm:$0xff] %v3368_v15  ;;  %v393_v27 = vsel %vm275_vm0, %v3368_v15, 0.0 }
  0xa1   : > { %v384_v36 = vadd.f32 %v383_v18, %v382_v23  ;;  %v391_v23 = vsel %vm275_vm0, %v3361_v57, 0.0 }
  0xa3   : > { %v386_v54 = vadd.f32 %v385_v35, %v384_v36  ;;  %v3377_v36 = vld [vmem:[%s4919_s1 + $0x1e0] sm:$0xff] }
  0xa4   : > { %4931 = vst [vmem:[#allocation29_spill] sm:$0xff] %v3377_v36  ;;  %v395_v7 = vsel %vm275_vm0, %v3377_v36, 0.0 }
  0xa5   : > { %v388_v4 = vadd.f32 %v387_v48, %v386_v54  ;;  %v3384_v54 = vld [vmem:[%s4919_s1 + $0x1e8] sm:$0xff] }
  0xa6   : > { %4932 = vst [vmem:[#allocation30_spill] sm:$0xff] %v3384_v54 }
  0xa7   : > { %v390_v18 = vadd.f32 %v389_v63, %v388_v4  ;;  %v397_v4 = vsel %vm275_vm0, %v3384_v54, 0.0  ;;  %v3391_v63 = vld [vmem:[%s4919_s1 + $0x1f0] sm:$0xff] }
  0xa8   : > { %4933 = vst [vmem:[#allocation31_spill] sm:$0xff] %v3391_v63 }
  0xa9   : > { %v392_v35 = vadd.f32 %v391_v23, %v390_v18  ;;  %v3398_v23 = vld [vmem:[%s4919_s1 + $0x1f8] sm:$0xff]  ;;  %s4217_s1 = sld [smem:[#allocation4 + %s1640_s21]] }
  0xaa   : > { %s4232_s21 = sld [smem:[#allocation4 + %s1665_s19]]  ;;  %s1695_s19 = sadd.s32 19, %s4185_s18 }
  0xab   : > { %v394_v44 = vadd.f32 %v393_v27, %v392_v35  ;;  %v399_v27 = vsel %vm275_vm0, %v3391_v63, 0.0  ;;  %s4250_s12 = sld [smem:[#allocation4 + %s1695_s19]]  ;;  %s1725_s19 = sadd.s32 25, %s4185_s18 }
  0xac   : > { %s4268_s6 = sld [smem:[#allocation4 + %s1725_s19]]  ;;  %s1755_s19 = sadd.s32 31, %s4185_s18 }
  0xad   : > { %v396_v48 = vadd.f32 %v395_v7, %v394_v44  ;;  %v401_v7 = vsel %vm275_vm0, %v3398_v23, 0.0 }
  0xaf   : > { %v398_v15 = vadd.f32 %v397_v4, %v396_v48 }
  0xb1   : > { %v400_v18 = vadd.f32 %v399_v27, %v398_v15  ;;  %4997 = sst [smem:[#allocation48_spill]] %s4250_s12 }
  0xb2   : > { %s4266_s12 = sld [smem:[#allocation4 + %s1720_s4]]  ;;  %s1750_s4 = sadd.s32 30, %s4185_s18 }
  0xb3   : > { %v402_v44 = vadd.f32 %v401_v7, %v400_v18  ;;  %5003 = sst [smem:[#allocation54_spill]] %s4268_s6 }
  0xb4   : > { %s4284_s6 = sld [smem:[#allocation4 + %s1750_s4]]  ;;  %s1780_s4 = sadd.s32 36, %s4185_s18 }
  0xb5   : > { %v403_v35 = vrot.slane %v402_v44, 4 }
  0xb7   : > { %v404_v54 = vadd.f32 %v403_v35, %v402_v44 }
  0xb8   : > { %5002 = sst [smem:[#allocation53_spill]] %s4266_s12 }
  0xb9   : > { %v405_v36 = vrot.slane %v404_v54, 2  ;;  %s4286_s12 = sld [smem:[#allocation4 + %s1755_s19]] }
  0xba   : > { %5008 = sst [smem:[#allocation59_spill]] %s4284_s6  ;;  %s1785_s6 = sadd.s32 37, %s4185_s18 }
  0xbb   : > { %v406_v57 = vadd.f32 %v405_v36, %v404_v54  ;;  %s4302_s19 = sld [smem:[#allocation4 + %s1780_s4]] }
  0xbd   : > { %v407_v62 = vrot.slane %v406_v57, 1 }
  0xbf   : > { %v408_v50 = vadd.f32 %v407_v62, %v406_v57  ;;  %5009 = sst [smem:[#allocation60_spill]] %s4286_s12 }
  0xc0   : > { %s4304_s12 = sld [smem:[#allocation4 + %s1785_s6]]  ;;  %s1810_s6 = sadd.s32 42, %s4185_s18 }
  0xc1   : > { %v3402_v48 = vmul.f32 0.001953125, %v408_v50 }
  0xc3   : > { %v3406_v4 = vsub.f32 %v2951_v8, %v3402_v48  ;;  %v3410_v63 = vsub.f32 %v2956_v9, %v3402_v48  ;;  %v3414_v15 = vsub.f32 %v2961_v10, %v3402_v48  ;;  %v3418_v27 = vsub.f32 %v2966_v11, %v3402_v48 }
  0xc4   : > { %v3422_v50 = vsub.f32 %v2977_v16, %v3402_v48  ;;  %v3432_v10 = vsub.f32 %v2990_v21, %v3402_v48  ;;  %v3438_v16 = vsub.f32 %v2997_v25, %v3402_v48  ;;  %v3447_v21 = vsub.f32 %v3004_v28, %v3402_v48 }
  0xc5   : > { %v474_v8 = vmul.f32 %v3406_v4, %v3406_v4  ;;  %v475_v62 = vmul.f32 %v3410_v63, %v3410_v63  ;;  %v476_v9 = vmul.f32 %v3414_v15, %v3414_v15  ;;  %v477_v11 = vmul.f32 %v3418_v27, %v3418_v27 }
  0xc6   : > { %4934 = vst [vmem:[#allocation32_spill] sm:$0xff] %v3422_v50  ;;  %v478_v57 = vmul.f32 %v3422_v50, %v3422_v50  ;;  %v479_v44 = vmul.f32 %v3432_v10, %v3432_v10  ;;  %v3454_v50 = vsub.f32 %v3011_v31, %v3402_v48  ;;  %v3461_v28 = vsub.f32 %v3018_v34, %v3402_v48  ;;  %5013 = sst [smem:[#allocation64_spill]] %s4304_s12  ;;  %s1815_s12 = sadd.s32 43, %s4185_s18 }
  0xc7   : > { %v538_v36 = vsel %vm275_vm0, %v474_v8, 0.0  ;;  %v539_v54 = vsel %vm275_vm0, %v475_v62, 0.0  ;;  %v541_v18 = vsel %vm275_vm0, %v476_v9, 0.0  ;;  %v543_v25 = vsel %vm275_vm0, %v477_v11, 0.0 }
  0xc8   : > { %v540_v7 = vadd.f32 %v539_v54, %v538_v36  ;;  %v480_v8 = vmul.f32 %v3438_v16, %v3438_v16  ;;  %v545_v62 = vsel %vm275_vm0, %v478_v57, 0.0  ;;  %v481_v36 = vmul.f32 %v3447_v21, %v3447_v21 }
  0xc9   : > { %v547_v11 = vsel %vm275_vm0, %v479_v44, 0.0  ;;  %v3468_v31 = vsub.f32 %v3025_v37, %v3402_v48  ;;  %v3475_v34 = vsub.f32 %v3032_v40, %v3402_v48  ;;  %v3482_v37 = vsub.f32 %v3039_v43, %v3402_v48 }
  0xca   : > { %v542_v35 = vadd.f32 %v541_v18, %v540_v7  ;;  %v482_v18 = vmul.f32 %v3454_v50, %v3454_v50  ;;  %v549_v57 = vsel %vm275_vm0, %v480_v8, 0.0  ;;  %v551_v44 = vsel %vm275_vm0, %v481_v36, 0.0 }
  0xcb   : > { %v3489_v40 = vsub.f32 %v3046_v46, %v3402_v48  ;;  %v3496_v43 = vsub.f32 %v3053_v49, %v3402_v48  ;;  %v3503_v46 = vsub.f32 %v3060_v52, %v3402_v48  ;;  %v3510_v49 = vsub.f32 %v3067_v55, %v3402_v48 }
  0xcc   : > { %v544_v9 = vadd.f32 %v543_v25, %v542_v35  ;;  %v483_v25 = vmul.f32 %v3461_v28, %v3461_v28  ;;  %v553_v8 = vsel %vm275_vm0, %v482_v18, 0.0  ;;  %v3517_v52 = vsub.f32 %v3074_v58, %v3402_v48 }
  0xcd   : > { %v3524_v55 = vsub.f32 %v3081_v61, %v3402_v48  ;;  %v3531_v58 = vsub.f32 %v3088_v0, %v3402_v48  ;;  %v3538_v61 = vsub.f32 %v3095_v3, %v3402_v48  ;;  %v3545_v0 = vsub.f32 %v3102_v6, %v3402_v48 }
  0xce   : > { %v546_v54 = vadd.f32 %v545_v62, %v544_v9  ;;  %v484_v62 = vmul.f32 %v3468_v31, %v3468_v31  ;;  %v555_v36 = vsel %vm275_vm0, %v483_v25, 0.0  ;;  %v3552_v3 = vsub.f32 %v3109_v13, %v3402_v48 }
  0xcf   : > { %v3559_v6 = vsub.f32 %v3116_v17, %v3402_v48  ;;  %v3566_v13 = vsub.f32 %v3123_v20, %v3402_v48  ;;  %v3573_v17 = vsub.f32 %v3130_v24, %v3402_v48  ;;  %v3580_v20 = vsub.f32 %v3137_v29, %v3402_v48 }
  0xd0   : > { %v548_v7 = vadd.f32 %v547_v11, %v546_v54  ;;  %v485_v11 = vmul.f32 %v3475_v34, %v3475_v34  ;;  %v557_v18 = vsel %vm275_vm0, %v484_v62, 0.0  ;;  %4935 = vst [vmem:[#allocation33_spill] sm:$0xff] %v3552_v3  ;;  %v3587_v24 = vsub.f32 %v3144_v33, %v3402_v48 }
  0xd1   : > { %4936 = vst [vmem:[#allocation34_spill] sm:$0xff] %v3559_v6  ;;  %4937 = vst [vmem:[#allocation35_spill] sm:$0xff] %v3566_v13  ;;  %v3594_v29 = vsub.f32 %v3151_v38, %v3402_v48  ;;  %v3601_v33 = vsub.f32 %v3158_v42, %v3402_v48  ;;  %v3608_v38 = vsub.f32 %v3165_v47, %v3402_v48 }
  0xd2   : > { %v550_v35 = vadd.f32 %v549_v57, %v548_v7  ;;  %v486_v57 = vmul.f32 %v3482_v37, %v3482_v37  ;;  %v559_v25 = vsel %vm275_vm0, %v485_v11, 0.0  ;;  %4938 = vst [vmem:[#allocation36_spill] sm:$0xff] %v3573_v17  ;;  %4939 = vst [vmem:[#allocation37_spill] sm:$0xff] %v3580_v20  ;;  %v3615_v42 = vsub.f32 %v3172_v51, %v3402_v48 }
  0xd3   : > { %4940 = vst [vmem:[#allocation38_spill] sm:$0xff] %v3587_v24  ;;  %4941 = vst [vmem:[#allocation39_spill] sm:$0xff] %v3594_v29  ;;  %v3622_v47 = vsub.f32 %v3179_v56, %v3402_v48  ;;  %v3629_v51 = vsub.f32 %v3186_v60, %v3402_v48  ;;  %v3636_v56 = vsub.f32 %v3193_v1, %v3402_v48 }
  0xd4   : > { %v552_v9 = vadd.f32 %v551_v44, %v550_v35  ;;  %v487_v44 = vmul.f32 %v3489_v40, %v3489_v40  ;;  %v561_v62 = vsel %vm275_vm0, %v486_v57, 0.0  ;;  %4942 = vst [vmem:[#allocation40_spill] sm:$0xff] %v3601_v33  ;;  %4943 = vst [vmem:[#allocation41_spill] sm:$0xff] %v3608_v38  ;;  %v3643_v60 = vsub.f32 %v3200_v5, %v3402_v48 }
  0xd5   : > { %4944 = vst [vmem:[#allocation42_spill] sm:$0xff] %v3615_v42  ;;  %v3650_v1 = vsub.f32 %v3207_v14, %v3402_v48  ;;  %v3657_v5 = vsub.f32 %v3214_v19, %v3402_v48  ;;  %v3664_v14 = vsub.f32 %v3221_v26, %v3402_v48  ;;  %v3671_v19 = vsub.f32 %v3228_v32, %v3402_v48 }
  0xd6   : > { %v554_v54 = vadd.f32 %v553_v8, %v552_v9  ;;  %v488_v8 = vmul.f32 %v3496_v43, %v3496_v43  ;;  %v563_v11 = vsel %vm275_vm0, %v487_v44, 0.0  ;;  %v3678_v26 = vsub.f32 %v3235_v39, %v3402_v48 }
  0xd7   : > { %v3685_v32 = vsub.f32 %v3242_v45, %v3402_v48  ;;  %v3692_v39 = vsub.f32 %v3249_v53, %v3402_v48  ;;  %v3699_v45 = vsub.f32 %v3256_v59, %v3402_v48  ;;  %v3706_v53 = vsub.f32 %v3263_v2, %v3402_v48 }
  0xd8   : > { %v556_v7 = vadd.f32 %v555_v36, %v554_v54  ;;  %v489_v36 = vmul.f32 %v3503_v46, %v3503_v46  ;;  %v565_v57 = vsel %vm275_vm0, %v488_v8, 0.0  ;;  %v3713_v59 = vsub.f32 %v3270_v12, %v3402_v48 }
  0xd9   : > { %v3720_v2 = vsub.f32 %v3277_v22, %v3402_v48  ;;  %v3727_v12 = vsub.f32 %v3284_v30, %v3402_v48  ;;  %v3734_v22 = vsub.f32 %v3291_v41, %v3402_v48 }
  0xda   : > { %v558_v35 = vadd.f32 %v557_v18, %v556_v7  ;;  %v490_v18 = vmul.f32 %v3510_v49, %v3510_v49  ;;  %v567_v44 = vsel %vm275_vm0, %v489_v36, 0.0 }
  0xdc   : > { %v560_v9 = vadd.f32 %v559_v25, %v558_v35  ;;  %v491_v25 = vmul.f32 %v3517_v52, %v3517_v52  ;;  %v569_v8 = vsel %vm275_vm0, %v490_v18, 0.0 }
  0xde   : > { %v562_v54 = vadd.f32 %v561_v62, %v560_v9  ;;  %v492_v62 = vmul.f32 %v3524_v55, %v3524_v55  ;;  %v571_v36 = vsel %vm275_vm0, %v491_v25, 0.0 }
  0xe0   : > { %v564_v7 = vadd.f32 %v563_v11, %v562_v54  ;;  %v493_v11 = vmul.f32 %v3531_v58, %v3531_v58  ;;  %v573_v18 = vsel %vm275_vm0, %v492_v62, 0.0 }
  0xe2   : > { %v566_v35 = vadd.f32 %v565_v57, %v564_v7  ;;  %v494_v57 = vmul.f32 %v3538_v61, %v3538_v61  ;;  %v575_v25 = vsel %vm275_vm0, %v493_v11, 0.0 }
  0xe4   : > { %v568_v9 = vadd.f32 %v567_v44, %v566_v35  ;;  %v495_v44 = vmul.f32 %v3545_v0, %v3545_v0  ;;  %v577_v62 = vsel %vm275_vm0, %v494_v57, 0.0 }
  0xe6   : > { %v570_v54 = vadd.f32 %v569_v8, %v568_v9  ;;  %v496_v8 = vmul.f32 %v3552_v3, %v3552_v3  ;;  %v579_v11 = vsel %vm275_vm0, %v495_v44, 0.0 }
  0xe8   : > { %v572_v7 = vadd.f32 %v571_v36, %v570_v54  ;;  %v497_v36 = vmul.f32 %v3559_v6, %v3559_v6  ;;  %v581_v57 = vsel %vm275_vm0, %v496_v8, 0.0 }
  0xea   : > { %v574_v35 = vadd.f32 %v573_v18, %v572_v7  ;;  %v498_v18 = vmul.f32 %v3566_v13, %v3566_v13  ;;  %v583_v44 = vsel %vm275_vm0, %v497_v36, 0.0 }
  0xec   : > { %v576_v9 = vadd.f32 %v575_v25, %v574_v35  ;;  %v499_v25 = vmul.f32 %v3573_v17, %v3573_v17  ;;  %v585_v8 = vsel %vm275_vm0, %v498_v18, 0.0 }
  0xee   : > { %v578_v54 = vadd.f32 %v577_v62, %v576_v9  ;;  %v500_v62 = vmul.f32 %v3580_v20, %v3580_v20  ;;  %v587_v36 = vsel %vm275_vm0, %v499_v25, 0.0 }
  0xf0   : > { %v580_v7 = vadd.f32 %v579_v11, %v578_v54  ;;  %v501_v11 = vmul.f32 %v3587_v24, %v3587_v24  ;;  %v589_v18 = vsel %vm275_vm0, %v500_v62, 0.0 }
  0xf2   : > { %v582_v35 = vadd.f32 %v581_v57, %v580_v7  ;;  %v502_v57 = vmul.f32 %v3594_v29, %v3594_v29  ;;  %v591_v25 = vsel %vm275_vm0, %v501_v11, 0.0 }
  0xf4   : > { %v584_v9 = vadd.f32 %v583_v44, %v582_v35  ;;  %v503_v44 = vmul.f32 %v3601_v33, %v3601_v33  ;;  %v593_v62 = vsel %vm275_vm0, %v502_v57, 0.0 }
  0xf6   : > { %v586_v54 = vadd.f32 %v585_v8, %v584_v9  ;;  %v504_v8 = vmul.f32 %v3608_v38, %v3608_v38  ;;  %v595_v11 = vsel %vm275_vm0, %v503_v44, 0.0 }
  0xf8   : > { %v588_v7 = vadd.f32 %v587_v36, %v586_v54  ;;  %v505_v36 = vmul.f32 %v3615_v42, %v3615_v42  ;;  %v597_v57 = vsel %vm275_vm0, %v504_v8, 0.0  ;;  %v522_v42 = vmul.f32 %v3734_v22, %v3734_v22 }
  0xfa   : > { %v590_v35 = vadd.f32 %v589_v18, %v588_v7  ;;  %v506_v18 = vmul.f32 %v3622_v47, %v3622_v47  ;;  %v599_v44 = vsel %vm275_vm0, %v505_v36, 0.0 }
  0xfc   : > { %v592_v9 = vadd.f32 %v591_v25, %v590_v35  ;;  %v507_v25 = vmul.f32 %v3629_v51, %v3629_v51  ;;  %v601_v8 = vsel %vm275_vm0, %v506_v18, 0.0 }
  0xfe   : > { %v594_v54 = vadd.f32 %v593_v62, %v592_v9  ;;  %v508_v62 = vmul.f32 %v3636_v56, %v3636_v56  ;;  %v603_v36 = vsel %vm275_vm0, %v507_v25, 0.0 }
 0x100   : > { %v596_v7 = vadd.f32 %v595_v11, %v594_v54  ;;  %v509_v11 = vmul.f32 %v3643_v60, %v3643_v60  ;;  %v605_v18 = vsel %vm275_vm0, %v508_v62, 0.0 }
 0x102   : > { %v598_v35 = vadd.f32 %v597_v57, %v596_v7  ;;  %v510_v57 = vmul.f32 %v3650_v1, %v3650_v1  ;;  %v607_v25 = vsel %vm275_vm0, %v509_v11, 0.0 }
 0x104   : > { %v600_v9 = vadd.f32 %v599_v44, %v598_v35  ;;  %v511_v44 = vmul.f32 %v3657_v5, %v3657_v5  ;;  %v609_v62 = vsel %vm275_vm0, %v510_v57, 0.0 }
 0x106   : > { %v602_v54 = vadd.f32 %v601_v8, %v600_v9  ;;  %v512_v8 = vmul.f32 %v3664_v14, %v3664_v14  ;;  %v611_v11 = vsel %vm275_vm0, %v511_v44, 0.0 }
 0x108   : > { %v604_v7 = vadd.f32 %v603_v36, %v602_v54  ;;  %v513_v36 = vmul.f32 %v3671_v19, %v3671_v19  ;;  %v613_v57 = vsel %vm275_vm0, %v512_v8, 0.0 }
 0x10a   : > { %v606_v35 = vadd.f32 %v605_v18, %v604_v7  ;;  %v514_v18 = vmul.f32 %v3678_v26, %v3678_v26  ;;  %v615_v44 = vsel %vm275_vm0, %v513_v36, 0.0 }
 0x10c   : > { %v608_v9 = vadd.f32 %v607_v25, %v606_v35  ;;  %v515_v25 = vmul.f32 %v3685_v32, %v3685_v32  ;;  %v617_v8 = vsel %vm275_vm0, %v514_v18, 0.0 }
 0x10e   : > { %v610_v54 = vadd.f32 %v609_v62, %v608_v9  ;;  %v516_v62 = vmul.f32 %v3692_v39, %v3692_v39  ;;  %v619_v36 = vsel %vm275_vm0, %v515_v25, 0.0 }
 0x110   : > { %v612_v7 = vadd.f32 %v611_v11, %v610_v54  ;;  %v517_v11 = vmul.f32 %v3699_v45, %v3699_v45  ;;  %v621_v18 = vsel %vm275_vm0, %v516_v62, 0.0 }
 0x112   : > { %v614_v35 = vadd.f32 %v613_v57, %v612_v7  ;;  %v518_v57 = vmul.f32 %v3706_v53, %v3706_v53  ;;  %v623_v25 = vsel %vm275_vm0, %v517_v11, 0.0 }
 0x114   : > { %v616_v9 = vadd.f32 %v615_v44, %v614_v35  ;;  %v519_v44 = vmul.f32 %v3713_v59, %v3713_v59  ;;  %v625_v62 = vsel %vm275_vm0, %v518_v57, 0.0 }
 0x116   : > { %v618_v54 = vadd.f32 %v617_v8, %v616_v9  ;;  %v520_v8 = vmul.f32 %v3720_v2, %v3720_v2  ;;  %v627_v11 = vsel %vm275_vm0, %v519_v44, 0.0 }
 0x118   : > { %v620_v7 = vadd.f32 %v619_v36, %v618_v54  ;;  %v4945_v36 = vld [vmem:[#allocation18_spill] sm:$0xff]  ;;  %v521_v54 = vmul.f32 %v3727_v12, %v3727_v12  ;;  %v629_v57 = vsel %vm275_vm0, %v520_v8, 0.0  ;;  %v633_v8 = vsel %vm275_vm0, %v522_v42, 0.0 }
 0x119   : > { %v3741_v30 = vsub.f32 %v4945_v36, %v3402_v48 }
 0x11a   : > { %v622_v35 = vadd.f32 %v621_v18, %v620_v7  ;;  %v4946_v7 = vld [vmem:[#allocation19_spill] sm:$0xff]  ;;  %v631_v44 = vsel %vm275_vm0, %v521_v54, 0.0 }
 0x11b   : > { %v3748_v41 = vsub.f32 %v4946_v7, %v3402_v48  ;;  %v523_v38 = vmul.f32 %v3741_v30, %v3741_v30 }
 0x11c   : > { %v624_v9 = vadd.f32 %v623_v25, %v622_v35  ;;  %v4947_v35 = vld [vmem:[#allocation20_spill] sm:$0xff] }
 0x11d   : > { %v3755_v36 = vsub.f32 %v4947_v35, %v3402_v48  ;;  %v524_v33 = vmul.f32 %v3748_v41, %v3748_v41  ;;  %v635_v54 = vsel %vm275_vm0, %v523_v38, 0.0 }
 0x11e   : > { %v626_v18 = vadd.f32 %v625_v62, %v624_v9  ;;  %v4948_v9 = vld [vmem:[#allocation21_spill] sm:$0xff] }
 0x11f   : > { %v3762_v7 = vsub.f32 %v4948_v9, %v3402_v48  ;;  %v525_v29 = vmul.f32 %v3755_v36, %v3755_v36  ;;  %v637_v42 = vsel %vm275_vm0, %v524_v33, 0.0 }
 0x120   : > { %v628_v25 = vadd.f32 %v627_v11, %v626_v18  ;;  %v4949_v18 = vld [vmem:[#allocation22_spill] sm:$0xff] }
 0x121   : > { %v3769_v35 = vsub.f32 %v4949_v18, %v3402_v48  ;;  %v526_v24 = vmul.f32 %v3762_v7, %v3762_v7  ;;  %v639_v38 = vsel %vm275_vm0, %v525_v29, 0.0 }
 0x122   : > { %v630_v62 = vadd.f32 %v629_v57, %v628_v25  ;;  %v4950_v25 = vld [vmem:[#allocation23_spill] sm:$0xff] }
 0x123   : > { %v3776_v9 = vsub.f32 %v4950_v25, %v3402_v48  ;;  %v527_v20 = vmul.f32 %v3769_v35, %v3769_v35  ;;  %v641_v33 = vsel %vm275_vm0, %v526_v24, 0.0 }
 0x124   : > { %v632_v11 = vadd.f32 %v631_v44, %v630_v62  ;;  %v4952_v62 = vld [vmem:[#allocation24_spill] sm:$0xff] }
 0x125   : > { %4951 = vst [vmem:[#allocation18_spill] sm:$0xff] %v3776_v9  ;;  %v3783_v18 = vsub.f32 %v4952_v62, %v3402_v48  ;;  %v528_v17 = vmul.f32 %v3776_v9, %v3776_v9  ;;  %v643_v29 = vsel %vm275_vm0, %v527_v20, 0.0 }
 0x126   : > { %v634_v57 = vadd.f32 %v633_v8, %v632_v11  ;;  %v4954_v11 = vld [vmem:[#allocation25_spill] sm:$0xff] }
 0x127   : > { %4953 = vst [vmem:[#allocation19_spill] sm:$0xff] %v3783_v18  ;;  %v3790_v25 = vsub.f32 %v4954_v11, %v3402_v48  ;;  %v529_v13 = vmul.f32 %v3783_v18, %v3783_v18  ;;  %v645_v24 = vsel %vm275_vm0, %v528_v17, 0.0 }
 0x128   : > { %v636_v44 = vadd.f32 %v635_v54, %v634_v57  ;;  %v4956_v57 = vld [vmem:[#allocation26_spill] sm:$0xff] }
 0x129   : > { %4955 = vst [vmem:[#allocation20_spill] sm:$0xff] %v3790_v25  ;;  %v3797_v62 = vsub.f32 %v4956_v57, %v3402_v48  ;;  %v530_v6 = vmul.f32 %v3790_v25, %v3790_v25  ;;  %v647_v20 = vsel %vm275_vm0, %v529_v13, 0.0 }
 0x12a   : > { %v638_v8 = vadd.f32 %v637_v42, %v636_v44  ;;  %v4958_v44 = vld [vmem:[#allocation27_spill] sm:$0xff] }
 0x12b   : > { %4957 = vst [vmem:[#allocation21_spill] sm:$0xff] %v3797_v62  ;;  %v3804_v11 = vsub.f32 %v4958_v44, %v3402_v48  ;;  %v531_v18 = vmul.f32 %v3797_v62, %v3797_v62  ;;  %v649_v17 = vsel %vm275_vm0, %v530_v6, 0.0 }
 0x12c   : > { %v640_v54 = vadd.f32 %v639_v38, %v638_v8  ;;  %v4960_v8 = vld [vmem:[#allocation28_spill] sm:$0xff] }
 0x12d   : > { %4959 = vst [vmem:[#allocation22_spill] sm:$0xff] %v3804_v11  ;;  %v3811_v57 = vsub.f32 %v4960_v8, %v3402_v48  ;;  %v532_v25 = vmul.f32 %v3804_v11, %v3804_v11  ;;  %v651_v13 = vsel %vm275_vm0, %v531_v18, 0.0 }
 0x12e   : > { %v642_v42 = vadd.f32 %v641_v33, %v640_v54  ;;  %v4962_v54 = vld [vmem:[#allocation29_spill] sm:$0xff] }
 0x12f   : > { %4961 = vst [vmem:[#allocation23_spill] sm:$0xff] %v3811_v57  ;;  %v3818_v44 = vsub.f32 %v4962_v54, %v3402_v48  ;;  %v533_v62 = vmul.f32 %v3811_v57, %v3811_v57  ;;  %v653_v6 = vsel %vm275_vm0, %v532_v25, 0.0 }
 0x130   : > { %v644_v38 = vadd.f32 %v643_v29, %v642_v42  ;;  %v4964_v42 = vld [vmem:[#allocation30_spill] sm:$0xff] }
 0x131   : > { %4963 = vst [vmem:[#allocation24_spill] sm:$0xff] %v3818_v44  ;;  %v3825_v8 = vsub.f32 %v4964_v42, %v3402_v48  ;;  %v534_v11 = vmul.f32 %v3818_v44, %v3818_v44  ;;  %v655_v18 = vsel %vm275_vm0, %v533_v62, 0.0 }
 0x132   : > { %v646_v33 = vadd.f32 %v645_v24, %v644_v38  ;;  %v4966_v38 = vld [vmem:[#allocation31_spill] sm:$0xff] }
 0x133   : > { %4965 = vst [vmem:[#allocation25_spill] sm:$0xff] %v3825_v8  ;;  %v3832_v54 = vsub.f32 %v4966_v38, %v3402_v48  ;;  %v535_v42 = vmul.f32 %v3825_v8, %v3825_v8  ;;  %v657_v38 = vsel %vm275_vm0, %v534_v11, 0.0 }
 0x134   : > { %v648_v29 = vadd.f32 %v647_v20, %v646_v33  ;;  %v3839_v33 = vsub.f32 %v3398_v23, %v3402_v48 }
 0x135   : > { %4967 = vst [vmem:[#allocation26_spill] sm:$0xff] %v3832_v54 }
 0x136   : > { %v650_v24 = vadd.f32 %v649_v17, %v648_v29  ;;  %4968 = vst [vmem:[#allocation27_spill] sm:$0xff] %v3839_v33  ;;  %v536_v29 = vmul.f32 %v3832_v54, %v3832_v54  ;;  %v537_v25 = vmul.f32 %v3839_v33, %v3839_v33 }
 0x138   : > { %v652_v20 = vadd.f32 %v651_v13, %v650_v24  ;;  %v659_v13 = vsel %vm275_vm0, %v535_v42, 0.0  ;;  %v661_v23 = vsel %vm275_vm0, %v536_v29, 0.0  ;;  %v663_v8 = vsel %vm275_vm0, %v537_v25, 0.0 }
 0x13a   : > { %v654_v17 = vadd.f32 %v653_v6, %v652_v20 }
 0x13c   : > { %v656_v57 = vadd.f32 %v655_v18, %v654_v17 }
 0x13e   : > { %v658_v24 = vadd.f32 %v657_v38, %v656_v57  ;;  %v3857_v57 = vld [vmem:[%s4969_s2] ss:$0 sm:$0xff]  ;;  %s1650_s2 = sadd.s32 10, %s4185_s18 }
 0x140   : > { %v660_v48 = vadd.f32 %v659_v13, %v658_v24 }
 0x142   : > { %v662_v44 = vadd.f32 %v661_v23, %v660_v48 }
 0x144   : > { %v664_v62 = vadd.f32 %v663_v8, %v662_v44  ;;  %v3870_v8 = vld [vmem:[%s4970_s3] ss:$0 sm:$0xff]  ;;  %s4223_s3 = sld [smem:[#allocation4 + %s1650_s2]] }
 0x145   : > { %s4238_s2 = sld [smem:[#allocation4 + %s1675_s26]]  ;;  %s1705_s26 = sadd.s32 21, %s4185_s18 }
 0x146   : > { %v665_v6 = vrot.slane %v664_v62, 4  ;;  %s4256_s30 = sld [smem:[#allocation4 + %s1705_s26]]  ;;  %s1735_s26 = sadd.s32 27, %s4185_s18 }
 0x147   : > { %s4274_s28 = sld [smem:[#allocation4 + %s1735_s26]]  ;;  %s1765_s26 = sadd.s32 33, %s4185_s18 }
 0x148   : > { %v666_v20 = vadd.f32 %v665_v6, %v664_v62 }
 0x14a   : > { %v667_v9 = vrot.slane %v666_v20, 2 }
 0x14b   : > { %4993 = sst [smem:[#allocation44_spill]] %s4238_s2  ;;  %s1790_s2 = sadd.s32 38, %s4185_s18 }
 0x14c   : > { %v668_v54 = vadd.f32 %v667_v9, %v666_v20  ;;  %4999 = sst [smem:[#allocation50_spill]] %s4256_s30 }
 0x14d   : > { %s4272_s30 = sld [smem:[#allocation4 + %s1730_s0]]  ;;  %s1760_s0 = sadd.s32 32, %s4185_s18 }
 0x14e   : > { %v669_v3 = vrot.slane %v668_v54, 1  ;;  %5005 = sst [smem:[#allocation56_spill]] %s4274_s28 }
 0x14f   : > { %s4290_s28 = sld [smem:[#allocation4 + %s1760_s0]] }
 0x150   : > { %v670_v11 = vadd.f32 %v669_v3, %v668_v54  ;;  %s4308_s0 = sld [smem:[#allocation4 + %s1790_s2]] }
 0x151   : > { %s4325_s2 = sld [smem:[#allocation4 + %s1810_s6]]  ;;  %s1835_s6 = sadd.s32 47, %s4185_s18 }
 0x152   : > { %v671_v18 = vmul.f32 0.001953125, %v670_v11 }
 0x153   : > { %5004 = sst [smem:[#allocation55_spill]] %s4272_s30 }
 0x154   : > { %v672_v17 = vadd.f32 0.0001, %v671_v18  ;;  %s4292_s30 = sld [smem:[#allocation4 + %s1765_s26]] }
 0x155   : > { %5010 = sst [smem:[#allocation61_spill]] %s4290_s28  ;;  %s1805_s28 = sadd.s32 41, %s4185_s18 }
 0x156   : > { %2760 = vrsqrt.f32 %v672_v17  ;;  %5014 = sst [smem:[#allocation65_spill]] %s4308_s0  ;;  %s1607_s0 = scalar_lea.vmem [#allocation2], %s4197_s24 }
 0x157   : > { %s4310_s26 = sld [smem:[#allocation4 + %s1795_s8]]  ;;  %s1825_s8 = sadd.s32 45, %s4185_s18 }
 0x158   : > { %s4321_s4 = sld [smem:[#allocation4 + %s1805_s28]]  ;;  %s1820_s28 = sadd.s32 44, %s4185_s18 }
 0x159   : > { %5019 = sst [smem:[#allocation69_spill]] %s4325_s2  ;;  %s2040_s2 = sadd.s32 88, %s4185_s18 }
 0x15a   : > { %5011 = sst [smem:[#allocation62_spill]] %s4292_s30  ;;  %s1800_s30 = sadd.s32 40, %s4185_s18 }
 0x15b   : > { %s4314_s13 = sld [smem:[#allocation4 + %s1800_s30]]  ;;  %s1622_s24 = scalar_lea.vmem [#allocation2], %s4205_s10 }
 0x15c   : > { %s4329_s30 = sld [smem:[#allocation4 + %s1815_s12]]  ;;  %s1830_s12 = sadd.s32 46, %s4185_s18 }
 0x15d   : > { %5015 = sst [smem:[#allocation66_spill]] %s4310_s26  ;;  %s1602_s26 = scalar_lea.vmem [#allocation2], %s4191_s22 }
 0x15e   : > { %5018 = sst [smem:[#allocation68_spill]] %s4321_s4  ;;  %s1617_s22 = scalar_lea.vmem [#allocation2], %s4203_s9 }
 0x15f   : > { %s4335_s14 = sld [smem:[#allocation4 + %s1820_s28]]  ;;  %s1642_s9 = scalar_lea.vmem [#allocation2], %s4217_s1 }
 0x160   : > { %v3852_v33 = vpop.eup %2760  ;;  %s4337_s27 = sld [smem:[#allocation4 + %s1825_s8]]  ;;  %s1662_s1 = scalar_lea.vmem [#allocation2], %s4230_s11 }
 0x161   : > { %v674_v42 = vmul.f32 %v3852_v33, %v3406_v4  ;;  %v706_v44 = vmul.f32 %v3852_v33, %v3622_v47  ;;  %v675_v9 = vmul.f32 %v3852_v33, %v3410_v63  ;;  %v707_v3 = vmul.f32 %v3852_v33, %v3629_v51  ;;  %5016 = sst [smem:[#allocation67_spill]] %s4314_s13  ;;  %s5070_s11 = sld [smem:[#allocation50_spill]] }
 0x162   : > { %v676_v54 = vmul.f32 %v3852_v33, %v3414_v15  ;;  %v708_v4 = vmul.f32 %v3852_v33, %v3636_v56  ;;  %v677_v47 = vmul.f32 %v3852_v33, %v3418_v27  ;;  %v709_v63 = vmul.f32 %v3852_v33, %v3643_v60  ;;  %5020 = sst [smem:[#allocation70_spill]] %s4329_s30  ;;  %s5063_s10 = sld [smem:[#allocation43_spill]] }
 0x163   : > { %v745_v29 = vmul.f32 %v3857_v57, %v674_v42  ;;  %v777_v51 = vmul.f32 %v3857_v57, %v706_v44  ;;  %v746_v38 = vmul.f32 %v3857_v57, %v675_v9  ;;  %v778_v25 = vmul.f32 %v3857_v57, %v707_v3  ;;  %s4345_s28 = sld [smem:[#allocation4 + %s1830_s12]] }
 0x164   : > { %v747_v13 = vmul.f32 %v3857_v57, %v676_v54  ;;  %v779_v15 = vmul.f32 %v3857_v57, %v708_v4  ;;  %v748_v56 = vmul.f32 %v3857_v57, %v677_v47  ;;  %v780_v24 = vmul.f32 %v3857_v57, %v709_v63  ;;  %v4971_v4 = vld [vmem:[#allocation32_spill] sm:$0xff]  ;;  %s4347_s8 = sld [smem:[#allocation4 + %s1835_s6]] }
 0x165   : > { %v816_v27 = vadd.f32 %v3870_v8, %v745_v29  ;;  %v848_v60 = vadd.f32 %v3870_v8, %v777_v51  ;;  %v817_v23 = vadd.f32 %v3870_v8, %v746_v38  ;;  %v849_v48 = vadd.f32 %v3870_v8, %v778_v25  ;;  %5021 = sst [smem:[#allocation71_spill]] %s4335_s14 }
 0x166   : > { %v818_v62 = vadd.f32 %v3870_v8, %v747_v13  ;;  %v850_v6 = vadd.f32 %v3870_v8, %v779_v15  ;;  %v819_v20 = vadd.f32 %v3870_v8, %v748_v56  ;;  %v851_v11 = vadd.f32 %v3870_v8, %v780_v24  ;;  %5022 = sst [smem:[#allocation72_spill]] %s4337_s27  ;;  %s1845_s27 = sadd.s32 49, %s4185_s18 }
 0x167   : > { %v880_v18 = vmax.f32 %v816_v27, 0.0  ;;  %v912_v17 = vmax.f32 %v848_v60, 0.0  ;;  %v881_v42 = vmax.f32 %v817_v23, 0.0  ;;  %v913_v44 = vmax.f32 %v849_v48, 0.0  ;;  %s4357_s6 = sld [smem:[#allocation4 + %s1845_s27]]  ;;  %s1860_s27 = sadd.s32 52, %s4185_s18 }
 0x168   : > { %v882_v9 = vmax.f32 %v818_v62, 0.0  ;;  %v914_v3 = vmax.f32 %v850_v6, 0.0  ;;  %v883_v54 = vmax.f32 %v819_v20, 0.0  ;;  %v678_v47 = vmul.f32 %v3852_v33, %v4971_v4 }
 0x169   : > { %2598 = vmatprep.mubr.msk.f32.mxu0 %vm275_vm0, %v880_v18  ;;  %2646 = vmatprep.mubr.msk.f32.mxu1 %vm275_vm0, %v912_v17  ;;  %v710_v63 = vmul.f32 %v3852_v33, %v3650_v1  ;;  %v679_v29 = vmul.f32 %v3852_v33, %v3432_v10  ;;  %v915_v51 = vmax.f32 %v851_v11, 0.0  ;;  %v711_v38 = vmul.f32 %v3852_v33, %v3657_v5  ;;  %5023 = sst [smem:[#allocation73_spill]] %s4345_s28  ;;  %s1855_s28 = sadd.s32 51, %s4185_s18 }
 0x16a   : > { %2599 = vmatmul.mubr.msk.f32.vlgmr.msra.gmra.mrb[0].mxu0 %vm275_vm0, %v881_v42  ;;  %2647 = vmatmul.mubr.msk.f32.vlgmr.msra.gmra.mrb[0].mxu1 %vm275_vm0, %v913_v44  ;;  %v680_v25 = vmul.f32 %v3852_v33, %v3438_v16  ;;  %v712_v13 = vmul.f32 %v3852_v33, %v3664_v14  ;;  %v749_v10 = vmul.f32 %v3857_v57, %v678_v47  ;;  %5024 = sst [smem:[#allocation74_spill]] %s4347_s8  ;;  %s1850_s8 = sadd.s32 50, %s4185_s18 }
 0x16b   : > { %2601 = vmatprep.mubr.msk.f32.mxu0 %vm275_vm0, %v882_v9  ;;  %2649 = vmatprep.mubr.msk.f32.mxu1 %vm275_vm0, %v914_v3  ;;  %v781_v1 = vmul.f32 %v3857_v57, %v710_v63  ;;  %v750_v15 = vmul.f32 %v3857_v57, %v679_v29  ;;  %v782_v56 = vmul.f32 %v3857_v57, %v711_v38  ;;  %s4361_s14 = sld [smem:[#allocation4 + %s1850_s8]] }
 0x16c   : > { %v751_v5 = vmul.f32 %v3857_v57, %v680_v25  ;;  %v783_v24 = vmul.f32 %v3857_v57, %v712_v13  ;;  %v681_v16 = vmul.f32 %v3852_v33, %v3447_v21  ;;  %v820_v14 = vadd.f32 %v3870_v8, %v749_v10  ;;  %s4371_s8 = sld [smem:[#allocation4 + %s1860_s27]] }
 0x16d   : > { %v852_v27 = vadd.f32 %v3870_v8, %v781_v1  ;;  %v821_v60 = vadd.f32 %v3870_v8, %v750_v15  ;;  %v713_v23 = vmul.f32 %v3852_v33, %v3671_v19  ;;  %v853_v48 = vadd.f32 %v3870_v8, %v782_v56  ;;  %5026 = sst [smem:[#allocation76_spill]] %s4357_s6  ;;  %s1865_s6 = sadd.s32 53, %s4185_s18 }
 0x16e   : > { %2602 = vmatmul.mubr.msk.f32.gmra.mrb[2].mxu0 %vm275_vm0, %v883_v54  ;;  %2650 = vmatmul.mubr.msk.f32.gmra.mrb[2].mxu1 %vm275_vm0, %v915_v51  ;;  %v822_v62 = vadd.f32 %v3870_v8, %v751_v5  ;;  %v854_v6 = vadd.f32 %v3870_v8, %v783_v24  ;;  %v884_v21 = vmax.f32 %v820_v14, 0.0  ;;  %v752_v18 = vmul.f32 %v3857_v57, %v681_v16 }
 0x16f   : > { %v916_v20 = vmax.f32 %v852_v27, 0.0  ;;  %v885_v11 = vmax.f32 %v821_v60, 0.0  ;;  %v917_v17 = vmax.f32 %v853_v48, 0.0  ;;  %v784_v19 = vmul.f32 %v3857_v57, %v713_v23 }
 0x170   : > { %v886_v42 = vmax.f32 %v822_v62, 0.0  ;;  %v918_v44 = vmax.f32 %v854_v6, 0.0  ;;  %2604 = vmatprep.mubr.msk.f32.mxu0 %vm275_vm0, %v884_v21  ;;  %v823_v9 = vadd.f32 %v3870_v8, %v752_v18  ;;  %v682_v3 = vmul.f32 %v3852_v33, %v3454_v50 }
 0x171   : > { %2652 = vmatprep.mubr.msk.f32.mxu1 %vm275_vm0, %v916_v20  ;;  %v714_v54 = vmul.f32 %v3852_v33, %v3678_v26  ;;  %v855_v4 = vadd.f32 %v3870_v8, %v784_v19  ;;  %v683_v47 = vmul.f32 %v3852_v33, %v3461_v28  ;;  %v715_v63 = vmul.f32 %v3852_v33, %v3685_v32  ;;  %5027 = sst [smem:[#allocation77_spill]] %s4361_s14 }
 0x172   : > { %2605 = vmatmul.mubr.msk.f32.gmra.mrb[4].mxu0 %vm275_vm0, %v885_v11  ;;  %2653 = vmatmul.mubr.msk.f32.gmra.mrb[4].mxu1 %vm275_vm0, %v917_v17  ;;  %v887_v50 = vmax.f32 %v823_v9, 0.0  ;;  %v753_v29 = vmul.f32 %v3857_v57, %v682_v3  ;;  %v684_v51 = vmul.f32 %v3852_v33, %v3468_v31  ;;  %v716_v32 = vmul.f32 %v3852_v33, %v3692_v39  ;;  %5029 = sst [smem:[#allocation79_spill]] %s4371_s8  ;;  %s1885_s8 = sadd.s32 57, %s4185_s18 }
 0x173   : > { %2607 = vmatprep.mubr.msk.f32.mxu0 %vm275_vm0, %v886_v42  ;;  %2655 = vmatprep.mubr.msk.f32.mxu1 %vm275_vm0, %v918_v44  ;;  %v785_v26 = vmul.f32 %v3857_v57, %v714_v54  ;;  %v919_v38 = vmax.f32 %v855_v4, 0.0  ;;  %v754_v25 = vmul.f32 %v3857_v57, %v683_v47  ;;  %v786_v28 = vmul.f32 %v3857_v57, %v715_v63  ;;  %s4373_s14 = sld [smem:[#allocation4 + %s1865_s6]] }
 0x174   : > { %v824_v13 = vadd.f32 %v3870_v8, %v753_v29  ;;  %v755_v1 = vmul.f32 %v3857_v57, %v684_v51  ;;  %v685_v15 = vmul.f32 %v3852_v33, %v3475_v34  ;;  %v787_v5 = vmul.f32 %v3857_v57, %v716_v32 }
 0x175   : > { %v856_v10 = vadd.f32 %v3870_v8, %v785_v26  ;;  %v825_v31 = vadd.f32 %v3870_v8, %v754_v25  ;;  %v857_v56 = vadd.f32 %v3870_v8, %v786_v28  ;;  %v717_v23 = vmul.f32 %v3852_v33, %v3699_v45 }
 0x176   : > { %2608 = vmatmul.mubr.msk.f32.gmra.mrb[6].mxu0 %vm275_vm0, %v887_v50  ;;  %2656 = vmatmul.mubr.msk.f32.gmra.mrb[6].mxu1 %vm275_vm0, %v919_v38  ;;  %v888_v39 = vmax.f32 %v824_v13, 0.0  ;;  %v826_v16 = vadd.f32 %v3870_v8, %v755_v1  ;;  %v756_v14 = vmul.f32 %v3857_v57, %v685_v15  ;;  %v858_v34 = vadd.f32 %v3870_v8, %v787_v5 }
 0x177   : > { %v920_v24 = vmax.f32 %v856_v10, 0.0  ;;  %v889_v27 = vmax.f32 %v825_v31, 0.0  ;;  %v921_v60 = vmax.f32 %v857_v56, 0.0  ;;  %v686_v6 = vmul.f32 %v3852_v33, %v3482_v37 }
 0x178   : > { %2610 = vmatprep.mubr.msk.f32.mxu0 %vm275_vm0, %v888_v39  ;;  %v890_v48 = vmax.f32 %v826_v16, 0.0  ;;  %v827_v62 = vadd.f32 %v3870_v8, %v756_v14  ;;  %v718_v21 = vmul.f32 %v3852_v33, %v3706_v53  ;;  %v922_v20 = vmax.f32 %v858_v34, 0.0 }
 0x179   : > { %2658 = vmatprep.mubr.msk.f32.mxu1 %vm275_vm0, %v920_v24  ;;  %v788_v45 = vmul.f32 %v3857_v57, %v717_v23  ;;  %v687_v11 = vmul.f32 %v3852_v33, %v3489_v40  ;;  %v719_v18 = vmul.f32 %v3852_v33, %v3713_v59  ;;  %v757_v37 = vmul.f32 %v3857_v57, %v686_v6  ;;  %5030 = sst [smem:[#allocation80_spill]] %s4373_s14  ;;  %s1880_s14 = sadd.s32 56, %s4185_s18 }
 0x17a   : > { %2611 = vmatmul.mubr.msk.f32.gmra.mrb[8].mxu0 %vm275_vm0, %v889_v27  ;;  %2659 = vmatmul.mubr.msk.f32.gmra.mrb[8].mxu1 %vm275_vm0, %v921_v60  ;;  %v891_v17 = vmax.f32 %v827_v62, 0.0  ;;  %v789_v53 = vmul.f32 %v3857_v57, %v718_v21  ;;  %v688_v42 = vmul.f32 %v3852_v33, %v3496_v43  ;;  %v720_v59 = vmul.f32 %v3852_v33, %v3720_v2 }
 0x17b   : > { %2613 = vmatprep.mubr.msk.f32.mxu0 %vm275_vm0, %v890_v48  ;;  %2661 = vmatprep.mubr.msk.f32.mxu1 %vm275_vm0, %v922_v20  ;;  %v859_v44 = vadd.f32 %v3870_v8, %v788_v45  ;;  %v758_v19 = vmul.f32 %v3857_v57, %v687_v11  ;;  %v790_v40 = vmul.f32 %v3857_v57, %v719_v18 }
 0x17c   : > { %v828_v9 = vadd.f32 %v3870_v8, %v757_v37  ;;  %v860_v3 = vadd.f32 %v3870_v8, %v789_v53  ;;  %v759_v54 = vmul.f32 %v3857_v57, %v688_v42  ;;  %v689_v43 = vmul.f32 %v3852_v33, %v3503_v46 }
 0x17d   : > { %v923_v4 = vmax.f32 %v859_v44, 0.0  ;;  %v829_v47 = vadd.f32 %v3870_v8, %v758_v19  ;;  %v861_v63 = vadd.f32 %v3870_v8, %v790_v40  ;;  %v791_v50 = vmul.f32 %v3857_v57, %v720_v59 }
 0x17e   : > { %2614 = vmatmul.mubr.msk.f32.gmra.mrb[10].mxu0 %vm275_vm0, %v891_v17  ;;  %v892_v29 = vmax.f32 %v828_v9, 0.0  ;;  %v924_v2 = vmax.f32 %v860_v3, 0.0  ;;  %v830_v26 = vadd.f32 %v3870_v8, %v759_v54  ;;  %v760_v51 = vmul.f32 %v3857_v57, %v689_v43  ;;  %v4972_v3 = vld [vmem:[#allocation33_spill] sm:$0xff] }
 0x17f   : > { %2662 = vmatmul.mubr.msk.f32.gmra.mrb[10].mxu1 %vm275_vm0, %v923_v4  ;;  %v893_v38 = vmax.f32 %v829_v47, 0.0  ;;  %v925_v25 = vmax.f32 %v861_v63, 0.0  ;;  %v862_v46 = vadd.f32 %v3870_v8, %v791_v50  ;;  %v721_v28 = vmul.f32 %v3852_v33, %v3727_v12  ;;  %v4973_v4 = vld [vmem:[#allocation18_spill] sm:$0xff] }
 0x180   : > { %2616 = vmatprep.mubr.msk.f32.mxu0 %vm275_vm0, %v892_v29  ;;  %2664 = vmatprep.mubr.msk.f32.mxu1 %vm275_vm0, %v924_v2  ;;  %v894_v32 = vmax.f32 %v830_v26, 0.0  ;;  %v831_v13 = vadd.f32 %v3870_v8, %v760_v51  ;;  %v690_v10 = vmul.f32 %v3852_v33, %v3510_v49  ;;  %v722_v1 = vmul.f32 %v3852_v33, %v3734_v22  ;;  %v4974_v29 = vld [vmem:[#allocation34_spill] sm:$0xff] }
 0x181   : > { %v926_v15 = vmax.f32 %v862_v46, 0.0  ;;  %v792_v31 = vmul.f32 %v3857_v57, %v721_v28  ;;  %v691_v12 = vmul.f32 %v3852_v33, %v3517_v52  ;;  %v723_v56 = vmul.f32 %v3852_v33, %v3741_v30 }
 0x182   : > { %2617 = vmatmul.mubr.msk.f32.gmra.mrb[12].mxu0 %vm275_vm0, %v893_v38  ;;  %v895_v5 = vmax.f32 %v831_v13, 0.0  ;;  %v761_v39 = vmul.f32 %v3857_v57, %v690_v10  ;;  %v793_v49 = vmul.f32 %v3857_v57, %v722_v1  ;;  %v692_v22 = vmul.f32 %v3852_v33, %v3524_v55 }
 0x183   : > { %2619 = vmatprep.mubr.msk.f32.mxu0 %vm275_vm0, %v894_v32  ;;  %2665 = vmatmul.mubr.msk.f32.gmra.mrb[12].mxu1 %vm275_vm0, %v925_v25  ;;  %v863_v24 = vadd.f32 %v3870_v8, %v792_v31  ;;  %v762_v16 = vmul.f32 %v3857_v57, %v691_v12  ;;  %v794_v52 = vmul.f32 %v3857_v57, %v723_v56  ;;  %v4975_v31 = vld [vmem:[#allocation19_spill] sm:$0xff] }
 0x184   : > { %v724_v30 = vmul.f32 %v3852_v33, %v3748_v41  ;;  %2667 = vmatprep.mubr.msk.f32.mxu1 %vm275_vm0, %v926_v15  ;;  %v832_v14 = vadd.f32 %v3870_v8, %v761_v39  ;;  %v864_v27 = vadd.f32 %v3870_v8, %v793_v49  ;;  %v763_v60 = vmul.f32 %v3857_v57, %v692_v22  ;;  %v4976_v39 = vld [vmem:[#allocation35_spill] sm:$0xff]  ;;  %v4977_v22 = vld [vmem:[#allocation20_spill] sm:$0xff] }
 0x185   : > { %v693_v55 = vmul.f32 %v3852_v33, %v3531_v58  ;;  %v927_v34 = vmax.f32 %v863_v24, 0.0  ;;  %v833_v23 = vadd.f32 %v3870_v8, %v762_v16  ;;  %v865_v48 = vadd.f32 %v3870_v8, %v794_v52 }
 0x186   : > { %2620 = vmatmul.mubr.msk.f32.gmra.mrb[14].mxu0 %vm275_vm0, %v895_v5  ;;  %v795_v41 = vmul.f32 %v3857_v57, %v724_v30  ;;  %v896_v62 = vmax.f32 %v832_v14, 0.0  ;;  %v928_v6 = vmax.f32 %v864_v27, 0.0  ;;  %v834_v21 = vadd.f32 %v3870_v8, %v763_v60  ;;  %v4978_v30 = vld [vmem:[#allocation36_spill] sm:$0xff]  ;;  %v4979_v27 = vld [vmem:[#allocation21_spill] sm:$0xff] }
 0x187   : > { %v764_v20 = vmul.f32 %v3857_v57, %v693_v55  ;;  %2668 = vmatmul.mubr.msk.f32.gmra.mrb[14].mxu1 %vm275_vm0, %v927_v34  ;;  %v897_v45 = vmax.f32 %v833_v23, 0.0  ;;  %v929_v11 = vmax.f32 %v865_v48, 0.0  ;;  %v725_v18 = vmul.f32 %v3852_v33, %v3755_v36  ;;  %v4980_v48 = vld [vmem:[#allocation37_spill] sm:$0xff] }
 0x188   : > { %v866_v58 = vadd.f32 %v3870_v8, %v795_v41  ;;  %2622 = vmatprep.mubr.msk.f32.mxu0 %vm275_vm0, %v896_v62  ;;  %2670 = vmatprep.mubr.msk.f32.mxu1 %vm275_vm0, %v928_v6  ;;  %v898_v17 = vmax.f32 %v834_v21, 0.0  ;;  %v694_v53 = vmul.f32 %v3852_v33, %v3538_v61  ;;  %v726_v42 = vmul.f32 %v3852_v33, %v3762_v7 }
 0x189   : > { %v835_v37 = vadd.f32 %v3870_v8, %v764_v20  ;;  %v796_v19 = vmul.f32 %v3857_v57, %v725_v18  ;;  %v695_v36 = vmul.f32 %v3852_v33, %v3545_v0  ;;  %v727_v40 = vmul.f32 %v3852_v33, %v3769_v35  ;;  %v4981_v20 = vld [vmem:[#allocation22_spill] sm:$0xff] }
 0x18a   : > { %2623 = vmatmul.mubr.msk.f32.gmra.mrb[16].mxu0 %vm275_vm0, %v897_v45  ;;  %v930_v44 = vmax.f32 %v866_v58, 0.0  ;;  %v765_v9 = vmul.f32 %v3857_v57, %v694_v53  ;;  %v797_v61 = vmul.f32 %v3857_v57, %v726_v42  ;;  %v696_v7 = vmul.f32 %v3852_v33, %v4972_v3 }
 0x18b   : > { %2625 = vmatprep.mubr.msk.f32.mxu0 %vm275_vm0, %v898_v17  ;;  %v899_v59 = vmax.f32 %v835_v37, 0.0  ;;  %2671 = vmatmul.mubr.msk.f32.gmra.mrb[16].mxu1 %vm275_vm0, %v929_v11  ;;  %v867_v54 = vadd.f32 %v3870_v8, %v796_v19  ;;  %v766_v43 = vmul.f32 %v3857_v57, %v695_v36  ;;  %v798_v0 = vmul.f32 %v3857_v57, %v727_v40  ;;  %v4982_v17 = vld [vmem:[#allocation38_spill] sm:$0xff] }
 0x18c   : > { %v728_v35 = vmul.f32 %v3852_v33, %v4973_v4  ;;  %2673 = vmatprep.mubr.msk.f32.mxu1 %vm275_vm0, %v930_v44  ;;  %v836_v47 = vadd.f32 %v3870_v8, %v765_v9  ;;  %v868_v63 = vadd.f32 %v3870_v8, %v797_v61  ;;  %v767_v50 = vmul.f32 %v3857_v57, %v696_v7 }
 0x18d   : > { %v697_v2 = vmul.f32 %v3852_v33, %v4974_v29  ;;  %v931_v26 = vmax.f32 %v867_v54, 0.0  ;;  %v837_v51 = vadd.f32 %v3870_v8, %v766_v43  ;;  %v869_v38 = vadd.f32 %v3870_v8, %v798_v0  ;;  %v4983_v54 = vld [vmem:[#allocation23_spill] sm:$0xff] }
 0x18e   : > { %2626 = vmatmul.mubr.msk.f32.gmra.mrb[18].mxu0 %vm275_vm0, %v899_v59  ;;  %v799_v25 = vmul.f32 %v3857_v57, %v728_v35  ;;  %v900_v46 = vmax.f32 %v836_v47, 0.0  ;;  %v932_v28 = vmax.f32 %v868_v63, 0.0  ;;  %v838_v32 = vadd.f32 %v3870_v8, %v767_v50  ;;  %v4984_v35 = vld [vmem:[#allocation39_spill] sm:$0xff]  ;;  %v4985_v63 = vld [vmem:[#allocation24_spill] sm:$0xff] }
 0x18f   : > { %v768_v13 = vmul.f32 %v3857_v57, %v697_v2  ;;  %2674 = vmatmul.mubr.msk.f32.gmra.mrb[18].mxu1 %vm275_vm0, %v931_v26  ;;  %v901_v10 = vmax.f32 %v837_v51, 0.0  ;;  %v933_v1 = vmax.f32 %v869_v38, 0.0  ;;  %v729_v12 = vmul.f32 %v3852_v33, %v4975_v31  ;;  %v4986_v26 = vld [vmem:[#allocation40_spill] sm:$0xff]  ;;  %v4987_v38 = vld [vmem:[#allocation25_spill] sm:$0xff] }
 0x190   : > { %v870_v15 = vadd.f32 %v3870_v8, %v799_v25  ;;  %2628 = vmatprep.mubr.msk.f32.mxu0 %vm275_vm0, %v900_v46  ;;  %2676 = vmatprep.mubr.msk.f32.mxu1 %vm275_vm0, %v932_v28  ;;  %v902_v56 = vmax.f32 %v838_v32, 0.0  ;;  %v698_v49 = vmul.f32 %v3852_v33, %v4976_v39  ;;  %v730_v24 = vmul.f32 %v3852_v33, %v4977_v22  ;;  %v4990_v22 = vld [vmem:[#allocation42_spill] sm:$0xff] }
 0x191   : > { %v839_v5 = vadd.f32 %v3870_v8, %v768_v13  ;;  %v800_v52 = vmul.f32 %v3857_v57, %v729_v12  ;;  %v699_v14 = vmul.f32 %v3852_v33, %v4978_v30  ;;  %v731_v60 = vmul.f32 %v3852_v33, %v4979_v27  ;;  %v4988_v13 = vld [vmem:[#allocation41_spill] sm:$0xff]  ;;  %v4989_v12 = vld [vmem:[#allocation26_spill] sm:$0xff] }
 0x192   : > { %2629 = vmatmul.mubr.msk.f32.gmra.mrb[20].mxu0 %vm275_vm0, %v901_v10  ;;  %v934_v16 = vmax.f32 %v870_v15, 0.0  ;;  %v769_v34 = vmul.f32 %v3857_v57, %v698_v49  ;;  %v801_v23 = vmul.f32 %v3857_v57, %v730_v24  ;;  %v700_v41 = vmul.f32 %v3852_v33, %v4980_v48 }
 0x193   : > { %2631 = vmatprep.mubr.msk.f32.mxu0 %vm275_vm0, %v902_v56  ;;  %v903_v55 = vmax.f32 %v839_v5, 0.0  ;;  %2677 = vmatmul.mubr.msk.f32.gmra.mrb[20].mxu1 %vm275_vm0, %v933_v1  ;;  %v871_v62 = vadd.f32 %v3870_v8, %v800_v52  ;;  %v770_v6 = vmul.f32 %v3857_v57, %v699_v14  ;;  %v802_v21 = vmul.f32 %v3857_v57, %v731_v60 }
 0x194   : > { %v732_v45 = vmul.f32 %v3852_v33, %v4981_v20  ;;  %2679 = vmatprep.mubr.msk.f32.mxu1 %vm275_vm0, %v934_v16  ;;  %v840_v11 = vadd.f32 %v3870_v8, %v769_v34  ;;  %v872_v58 = vadd.f32 %v3870_v8, %v801_v23  ;;  %v771_v18 = vmul.f32 %v3857_v57, %v700_v41 }
 0x195   : > { %v701_v37 = vmul.f32 %v3852_v33, %v4982_v17  ;;  %v935_v53 = vmax.f32 %v871_v62, 0.0  ;;  %v841_v42 = vadd.f32 %v3870_v8, %v770_v6  ;;  %v873_v44 = vadd.f32 %v3870_v8, %v802_v21  ;;  %v4991_v62 = vld [vmem:[#allocation27_spill] sm:$0xff] }
 0x196   : > { %2632 = vmatmul.mubr.msk.f32.gmra.mrb[22].mxu0 %vm275_vm0, %v903_v55  ;;  %v803_v19 = vmul.f32 %v3857_v57, %v732_v45  ;;  %v904_v36 = vmax.f32 %v840_v11, 0.0  ;;  %v936_v40 = vmax.f32 %v872_v58, 0.0  ;;  %v842_v59 = vadd.f32 %v3870_v8, %v771_v18 }
 0x197   : > { %v772_v9 = vmul.f32 %v3857_v57, %v701_v37  ;;  %2680 = vmatmul.mubr.msk.f32.gmra.mrb[22].mxu1 %vm275_vm0, %v935_v53  ;;  %v905_v61 = vmax.f32 %v841_v42, 0.0  ;;  %v937_v3 = vmax.f32 %v873_v44, 0.0  ;;  %v733_v43 = vmul.f32 %v3852_v33, %v4983_v54 }
 0x198   : > { %v874_v7 = vadd.f32 %v3870_v8, %v803_v19  ;;  %2634 = vmatprep.mubr.msk.f32.mxu0 %vm275_vm0, %v904_v36  ;;  %2682 = vmatprep.mubr.msk.f32.mxu1 %vm275_vm0, %v936_v40  ;;  %v906_v0 = vmax.f32 %v842_v59, 0.0  ;;  %v702_v47 = vmul.f32 %v3852_v33, %v4984_v35  ;;  %v734_v50 = vmul.f32 %v3852_v33, %v4985_v63 }
 0x199   : > { %v843_v4 = vadd.f32 %v3870_v8, %v772_v9  ;;  %v804_v2 = vmul.f32 %v3857_v57, %v733_v43  ;;  %v703_v51 = vmul.f32 %v3852_v33, %v4986_v26  ;;  %v735_v25 = vmul.f32 %v3852_v33, %v4987_v38 }
 0x19a   : > { %2635 = vmatmul.mubr.msk.f32.gmra.mrb[24].mxu0 %vm275_vm0, %v905_v61  ;;  %v938_v29 = vmax.f32 %v874_v7, 0.0  ;;  %v773_v28 = vmul.f32 %v3857_v57, %v702_v47  ;;  %v805_v32 = vmul.f32 %v3857_v57, %v734_v50  ;;  %v704_v10 = vmul.f32 %v3852_v33, %v4988_v13 }
 0x19b   : > { %2637 = vmatprep.mubr.msk.f32.mxu0 %vm275_vm0, %v906_v0  ;;  %v907_v46 = vmax.f32 %v843_v4, 0.0  ;;  %2683 = vmatmul.mubr.msk.f32.gmra.mrb[24].mxu1 %vm275_vm0, %v937_v3  ;;  %v875_v1 = vadd.f32 %v3870_v8, %v804_v2  ;;  %v774_v15 = vmul.f32 %v3857_v57, %v703_v51  ;;  %v806_v31 = vmul.f32 %v3857_v57, %v735_v25 }
 0x19c   : > { %v736_v56 = vmul.f32 %v3852_v33, %v4989_v12  ;;  %2685 = vmatprep.mubr.msk.f32.mxu1 %vm275_vm0, %v938_v29  ;;  %v844_v5 = vadd.f32 %v3870_v8, %v773_v28  ;;  %v876_v39 = vadd.f32 %v3870_v8, %v805_v32  ;;  %v775_v49 = vmul.f32 %v3857_v57, %v704_v10 }
 0x19d   : > { %v705_v24 = vmul.f32 %v3852_v33, %v4990_v22  ;;  %v939_v16 = vmax.f32 %v875_v1, 0.0  ;;  %v845_v52 = vadd.f32 %v3870_v8, %v774_v15  ;;  %v877_v30 = vadd.f32 %v3870_v8, %v806_v31 }
 0x19e   : > { %2638 = vmatmul.mubr.msk.f32.gmra.mrb[26].mxu0 %vm275_vm0, %v907_v46  ;;  %v807_v14 = vmul.f32 %v3857_v57, %v736_v56  ;;  %v908_v27 = vmax.f32 %v844_v5, 0.0  ;;  %v940_v60 = vmax.f32 %v876_v39, 0.0  ;;  %v846_v55 = vadd.f32 %v3870_v8, %v775_v49 }
 0x19f   : > { %v776_v34 = vmul.f32 %v3857_v57, %v705_v24  ;;  %2686 = vmatmul.mubr.msk.f32.gmra.mrb[26].mxu1 %vm275_vm0, %v939_v16  ;;  %v909_v23 = vmax.f32 %v845_v52, 0.0  ;;  %v941_v48 = vmax.f32 %v877_v30, 0.0  ;;  %v737_v6 = vmul.f32 %v3852_v33, %v4991_v62 }
 0x1a0   : > { %v878_v41 = vadd.f32 %v3870_v8, %v807_v14  ;;  %2640 = vmatprep.mubr.msk.f32.mxu0 %vm275_vm0, %v908_v27  ;;  %2688 = vmatprep.mubr.msk.f32.mxu1 %vm275_vm0, %v940_v60  ;;  %v910_v21 = vmax.f32 %v846_v55, 0.0 }
 0x1a1   : > { %v847_v20 = vadd.f32 %v3870_v8, %v776_v34  ;;  %v808_v11 = vmul.f32 %v3857_v57, %v737_v6  ;;  %v4319_v57 = vld [vmem:[%s5017_s5] ss:$0 sm:$0xff]  ;;  %s1840_s5 = sadd.s32 48, %s4185_s18 }
 0x1a2   : > { %2641 = vmatmul.mubr.msk.f32.gmra.mrb[28].mxu0 %vm275_vm0, %v909_v23  ;;  %v942_v45 = vmax.f32 %v878_v41, 0.0  ;;  %s4353_s12 = sld [smem:[#allocation4 + %s1840_s5]] }
 0x1a3   : > { %2643 = vmatprep.mubr.msk.f32.mxu0 %vm275_vm0, %v910_v21  ;;  %v911_v58 = vmax.f32 %v847_v20, 0.0  ;;  %2689 = vmatmul.mubr.msk.f32.gmra.mrb[28].mxu1 %vm275_vm0, %v941_v48  ;;  %v879_v33 = vadd.f32 %v3870_v8, %v808_v11  ;;  %s4365_s5 = sld [smem:[#allocation4 + %s1855_s28]]  ;;  %s1870_s28 = sadd.s32 54, %s4185_s18 }
 0x1a4   : > { %2691 = vmatprep.mubr.msk.f32.mxu1 %vm275_vm0, %v942_v45  ;;  %s4381_s27 = sld [smem:[#allocation4 + %s1870_s28]] }
 0x1a5   : > { %v943_v18 = vmax.f32 %v879_v33, 0.0  ;;  %s4391_s28 = sld [smem:[#allocation4 + %s1885_s8]]  ;;  %s1900_s8 = sadd.s32 60, %s4185_s18 }
 0x1a6   : > { %2644 = vmatmul.mubr.msk.f32.gmra.mrb[30].mxu0 %vm275_vm0, %v911_v58 }
 0x1a7   : > { %2692 = vmatmul.mubr.msk.f32.gmra.mrb[30].mxu1 %vm275_vm0, %v943_v18 }
 0x1a8   : > { %5025 = sst [smem:[#allocation75_spill]] %s4353_s12 }
 0x1a9   : > { %5028 = sst [smem:[#allocation78_spill]] %s4365_s5  ;;  %s1875_s5 = sadd.s32 55, %s4185_s18 }
 0x1aa   : > { %5031 = sst [smem:[#allocation81_spill]] %s4381_s27 }
 0x1ab   : > { %s4383_s6 = sld [smem:[#allocation4 + %s1875_s5]]  ;;  %s1890_s5 = sadd.s32 58, %s4185_s18 }
 0x1ac   : > { %s4388_s12 = sld [smem:[#allocation4 + %s1880_s14]] }
 0x1ad   : > { %5034 = sst [smem:[#allocation84_spill]] %s4391_s28  ;;  %s1905_s28 = sadd.s32 61, %s4185_s18 }
 0x1ae   : > { %s4397_s27 = sld [smem:[#allocation4 + %s1890_s5]] }
 0x1af   : > { %s4406_s5 = sld [smem:[#allocation4 + %s1900_s8]] }
 0x1b1   : > { %5032 = sst [smem:[#allocation82_spill]] %s4383_s6  ;;  %s1895_s6 = sadd.s32 59, %s4185_s18 }
 0x1b2   : > { %5033 = sst [smem:[#allocation83_spill]] %s4388_s12 }
 0x1b3   : > { %s4400_s14 = sld [smem:[#allocation4 + %s1895_s6]] }
 0x1b4   : > { %5035 = sst [smem:[#allocation85_spill]] %s4397_s27  ;;  %s1915_s27 = sadd.s32 63, %s4185_s18 }
 0x1b5   : > { %5037 = sst [smem:[#allocation87_spill]] %s4406_s5  ;;  %s1925_s5 = sadd.s32 65, %s4185_s18 }
 0x1b6   : > { %s4409_s6 = sld [smem:[#allocation4 + %s1905_s28]] }
 0x1b7   : > { %s4418_s28 = sld [smem:[#allocation4 + %s1915_s27]] }
 0x1b8   : > { %s4427_s27 = sld [smem:[#allocation4 + %s1925_s5]] }
 0x1b9   : > { %5036 = sst [smem:[#allocation86_spill]] %s4400_s14  ;;  %s1910_s14 = sadd.s32 62, %s4185_s18 }
 0x1ba   : > { %s4415_s8 = sld [smem:[#allocation4 + %s1910_s14]] }
 0x1bc   : > { %5038 = sst [smem:[#allocation88_spill]] %s4409_s6  ;;  %s1920_s6 = sadd.s32 64, %s4185_s18 }
 0x1bd   : > { %5040 = sst [smem:[#allocation90_spill]] %s4418_s28  ;;  %s1930_s28 = sadd.s32 66, %s4185_s18 }
 0x1be   : > { %s4424_s14 = sld [smem:[#allocation4 + %s1920_s6]] }
 0x1bf   : > { %5042 = sst [smem:[#allocation92_spill]] %s4427_s27  ;;  %s1940_s27 = sadd.s32 68, %s4185_s18 }
 0x1c0   : > { %5039 = sst [smem:[#allocation89_spill]] %s4415_s8  ;;  %s1935_s8 = sadd.s32 67, %s4185_s18 }
 0x1c1   : > { %s4433_s6 = sld [smem:[#allocation4 + %s1930_s28]] }
 0x1c2   : > { %s4436_s5 = sld [smem:[#allocation4 + %s1935_s8]] }
 0x1c3   : > { %s4442_s28 = sld [smem:[#allocation4 + %s1940_s27]] }
 0x1c4   : > { %5041 = sst [smem:[#allocation91_spill]] %s4424_s14  ;;  %s1945_s14 = sadd.s32 69, %s4185_s18 }
 0x1c5   : > { %s4445_s8 = sld [smem:[#allocation4 + %s1945_s14]] }
 0x1c7   : > { %5043 = sst [smem:[#allocation93_spill]] %s4433_s6  ;;  %s1955_s6 = sadd.s32 71, %s4185_s18 }
 0x1c8   : > { %5044 = sst [smem:[#allocation94_spill]] %s4436_s5  ;;  %s1950_s5 = sadd.s32 70, %s4185_s18 }
 0x1c9   : > { %5045 = sst [smem:[#allocation95_spill]] %s4442_s28  ;;  %s1965_s28 = sadd.s32 73, %s4185_s18 }
 0x1ca   : > { %s4451_s27 = sld [smem:[#allocation4 + %s1950_s5]] }
 0x1cb   : > { %5046 = sst [smem:[#allocation96_spill]] %s4445_s8  ;;  %s1960_s8 = sadd.s32 72, %s4185_s18 }
 0x1cc   : > { %s4454_s14 = sld [smem:[#allocation4 + %s1955_s6]] }
 0x1cd   : > { %s4460_s5 = sld [smem:[#allocation4 + %s1960_s8]] }
 0x1ce   : > { %s4463_s6 = sld [smem:[#allocation4 + %s1965_s28]] }
 0x1d0   : > { %5047 = sst [smem:[#allocation97_spill]] %s4451_s27  ;;  %s1975_s27 = sadd.s32 75, %s4185_s18 }
 0x1d1   : > { %s4472_s28 = sld [smem:[#allocation4 + %s1975_s27]] }
 0x1d2   : > { %5048 = sst [smem:[#allocation98_spill]] %s4454_s14  ;;  %s1970_s14 = sadd.s32 74, %s4185_s18 }
 0x1d3   : > { %5049 = sst [smem:[#allocation99_spill]] %s4460_s5  ;;  %s1985_s5 = sadd.s32 77, %s4185_s18 }
 0x1d4   : > { %5050 = sst [smem:[#allocation100_spill]] %s4463_s6  ;;  %s1980_s6 = sadd.s32 76, %s4185_s18 }
 0x1d5   : > { %s4469_s8 = sld [smem:[#allocation4 + %s1970_s14]] }
 0x1d6   : > { %s4478_s14 = sld [smem:[#allocation4 + %s1980_s6]] }
 0x1d7   : > { %5052 = sst [smem:[#allocation102_spill]] %s4472_s28  ;;  %s1990_s28 = sadd.s32 78, %s4185_s18 }
 0x1d8   : > { %s4481_s27 = sld [smem:[#allocation4 + %s1985_s5]] }
 0x1d9   : > { %s4487_s6 = sld [smem:[#allocation4 + %s1990_s28]] }
 0x1db   : > { %5051 = sst [smem:[#allocation101_spill]] %s4469_s8  ;;  %s1995_s8 = sadd.s32 79, %s4185_s18 }
 0x1dc   : > { %5053 = sst [smem:[#allocation103_spill]] %s4478_s14  ;;  %s2005_s14 = sadd.s32 81, %s4185_s18 }
 0x1dd   : > { %s4490_s5 = sld [smem:[#allocation4 + %s1995_s8]] }
 0x1de   : > { %5054 = sst [smem:[#allocation104_spill]] %s4481_s27  ;;  %s2000_s27 = sadd.s32 80, %s4185_s18 }
 0x1df   : > { %5055 = sst [smem:[#allocation105_spill]] %s4487_s6  ;;  %s2015_s6 = sadd.s32 83, %s4185_s18 }
 0x1e0   : > { %s4496_s28 = sld [smem:[#allocation4 + %s2000_s27]] }
 0x1e1   : > { %s4499_s8 = sld [smem:[#allocation4 + %s2005_s14]] }
 0x1e2   : > { %s4508_s14 = sld [smem:[#allocation4 + %s2015_s6]] }
 0x1e3   : > { %5056 = sst [smem:[#allocation106_spill]] %s4490_s5  ;;  %s2010_s5 = sadd.s32 82, %s4185_s18 }
 0x1e4   : > { %s4505_s27 = sld [smem:[#allocation4 + %s2010_s5]] }
 0x1e6   : > { %5057 = sst [smem:[#allocation107_spill]] %s4496_s28  ;;  %s2025_s28 = sadd.s32 85, %s4185_s18 }
 0x1e7   : > { %5058 = sst [smem:[#allocation108_spill]] %s4499_s8  ;;  %s2020_s8 = sadd.s32 84, %s4185_s18 }
 0x1e8   : > { %5060 = sst [smem:[#allocation110_spill]] %s4508_s14  ;;  %s2030_s14 = sadd.s32 86, %s4185_s18 }
 0x1e9   : > { %s4514_s5 = sld [smem:[#allocation4 + %s2020_s8]]  ;;  %s2045_s8 = sadd.s32 89, %s4185_s18 }
 0x1ea   : > { %5059 = sst [smem:[#allocation109_spill]] %s4505_s27  ;;  %s2035_s27 = sadd.s32 87, %s4185_s18 }
 0x1eb   : > { %s4517_s6 = sld [smem:[#allocation4 + %s2025_s28]]  ;;  %s2050_s28 = sadd.s32 90, %s4185_s18 }
 0x1ec   : > { %s4521_s12 = sld [smem:[#allocation4 + %s2030_s14]]  ;;  %s4539_s14 = scalar_lea.vmem [#allocation5], %s4195_s23 }
 0x1ed   : > { %s4523_s30 = sld [smem:[#allocation4 + %s2035_s27]]  ;;  %s1612_s27 = scalar_lea.vmem [#allocation2], %s4199_s25 }
 0x1ee   : > { %s4529_s4 = sld [smem:[#allocation4 + %s2045_s8]]  ;;  %s1627_s23 = scalar_lea.vmem [#allocation2], %s4209_s16 }
 0x1ef   : > { %5061 = sst [smem:[#allocation111_spill]] %s4514_s5  ;;  %s1632_s25 = scalar_lea.vmem [#allocation2], %s4211_s17 }
 0x1f0   : > { %s4527_s5 = sld [smem:[#allocation4 + %s2040_s2]]  ;;  %s1647_s16 = scalar_lea.vmem [#allocation2], %s4220_s7 }
 0x1f1   : > { %5062 = sst [smem:[#allocation112_spill]] %s4517_s6  ;;  %s2055_s6 = sadd.s32 91, %s4185_s18 }
 0x1f2   : > { %s4533_s13 = sld [smem:[#allocation4 + %s2050_s28]]  ;;  %s1657_s2 = scalar_lea.vmem [#allocation2], %s4226_s15 }
 0x1f3   : > { %s5064_s17 = sld [smem:[#allocation44_spill]]  ;;  %s5065_s8 = sld [smem:[#allocation45_spill]] }
 0x1f4   : > { %s1667_s28 = scalar_lea.vmem [#allocation2], %s4232_s21  ;;  %s5067_s7 = sld [smem:[#allocation47_spill]] }
 0x1f5   : > { %s5072_s21 = sld [smem:[#allocation52_spill]] }
 0x1f9   : > { %s1677_s15 = scalar_lea.vmem [#allocation2], %s5064_s17  ;;  %s5075_s17 = sld [smem:[#allocation55_spill]] }
 0x23d   : > { %v2600_v8 = vpop.f32.mrb[0].mxu0  ;;  %v2648_v17 = vpop.f32.mrb[0].mxu1 }
 0x23e   : > { %v1223_v37 = vadd.f32 %v2600_v8, %v4319_v57  ;;  %v1383_v53 = vadd.f32 %v2648_v17, %v4319_v57  ;;  %v1217_v42 = vpop.f32.mrb[1].mxu0  ;;  %v1377_v44 = vpop.f32.mrb[1].mxu1 }
 0x23f   : > { %v1218_v19 = vadd.f32 %v4319_v57, %v1217_v42  ;;  %v1378_v36 = vadd.f32 %v4319_v57, %v1377_v44 }
 0x240   : > { %1537 = vst [vmem:[#allocation2 + $0x8] sm:$0xff] %v1223_v37  ;;  %1569 = vst [vmem:[#allocation2 + $0x108] sm:$0xff] %v1383_v53 }
 0x241   : > { %1536 = vst [vmem:[#allocation2] sm:$0xff] %v1218_v19  ;;  %1568 = vst [vmem:[#allocation2 + $0x100] sm:$0xff] %v1378_v36  ;;  %v2603_v40 = vpop.f32.mrb[2].mxu0  ;;  %v2651_v59 = vpop.f32.mrb[2].mxu1 }
 0x242   : > { %v1233_v9 = vadd.f32 %v2603_v40, %v4319_v57  ;;  %v1393_v61 = vadd.f32 %v2651_v59, %v4319_v57  ;;  %v1227_v3 = vpop.f32.mrb[3].mxu0  ;;  %v1387_v7 = vpop.f32.mrb[3].mxu1 }
 0x243   : > { %v1228_v54 = vadd.f32 %v4319_v57, %v1227_v3  ;;  %v1388_v43 = vadd.f32 %v4319_v57, %v1387_v7 }
 0x244   : > { %1539 = vst [vmem:[#allocation2 + $0x18] sm:$0xff] %v1233_v9  ;;  %1571 = vst [vmem:[#allocation2 + $0x118] sm:$0xff] %v1393_v61 }
 0x245   : > { %1538 = vst [vmem:[#allocation2 + $0x10] sm:$0xff] %v1228_v54  ;;  %1570 = vst [vmem:[#allocation2 + $0x110] sm:$0xff] %v1388_v43  ;;  %v2606_v0 = vpop.f32.mrb[4].mxu0  ;;  %v2654_v4 = vpop.f32.mrb[4].mxu1 }
 0x246   : > { %v1243_v35 = vadd.f32 %v2606_v0, %v4319_v57  ;;  %v1403_v47 = vadd.f32 %v2654_v4, %v4319_v57  ;;  %v1237_v63 = vpop.f32.mrb[5].mxu0  ;;  %v1397_v50 = vpop.f32.mrb[5].mxu1 }
 0x247   : > { %v1238_v29 = vadd.f32 %v4319_v57, %v1237_v63  ;;  %v1398_v2 = vadd.f32 %v4319_v57, %v1397_v50 }
 0x248   : > { %1541 = vst [vmem:[#allocation2 + $0x28] sm:$0xff] %v1243_v35  ;;  %1573 = vst [vmem:[#allocation2 + $0x128] sm:$0xff] %v1403_v47 }
 0x249   : > { %1540 = vst [vmem:[#allocation2 + $0x20] sm:$0xff] %v1238_v29  ;;  %1572 = vst [vmem:[#allocation2 + $0x120] sm:$0xff] %v1398_v2  ;;  %v2609_v26 = vpop.f32.mrb[6].mxu0  ;;  %v2657_v51 = vpop.f32.mrb[6].mxu1 }
 0x24a   : > { %v1253_v38 = vadd.f32 %v2609_v26, %v4319_v57  ;;  %v1413_v25 = vadd.f32 %v2657_v51, %v4319_v57  ;;  %v1247_v46 = vpop.f32.mrb[7].mxu0  ;;  %v1407_v28 = vpop.f32.mrb[7].mxu1 }
 0x24b   : > { %v1248_v32 = vadd.f32 %v4319_v57, %v1247_v46  ;;  %v1408_v13 = vadd.f32 %v4319_v57, %v1407_v28 }
 0x24c   : > { %1543 = vst [vmem:[#allocation2 + $0x38] sm:$0xff] %v1253_v38  ;;  %1575 = vst [vmem:[#allocation2 + $0x138] sm:$0xff] %v1413_v25 }
 0x24d   : > { %1542 = vst [vmem:[#allocation2 + $0x30] sm:$0xff] %v1248_v32  ;;  %1574 = vst [vmem:[#allocation2 + $0x130] sm:$0xff] %v1408_v13  ;;  %v2612_v10 = vpop.f32.mrb[8].mxu0  ;;  %v2660_v1 = vpop.f32.mrb[8].mxu1 }
 0x24e   : > { %v1263_v15 = vadd.f32 %v2612_v10, %v4319_v57  ;;  %v1423_v31 = vadd.f32 %v2660_v1, %v4319_v57  ;;  %v1257_v12 = vpop.f32.mrb[9].mxu0  ;;  %v1417_v56 = vpop.f32.mrb[9].mxu1 }
 0x24f   : > { %v1258_v5 = vadd.f32 %v4319_v57, %v1257_v12  ;;  %v1418_v39 = vadd.f32 %v4319_v57, %v1417_v56 }
 0x250   : > { %1545 = vst [vmem:[#allocation2 + $0x48] sm:$0xff] %v1263_v15  ;;  %1577 = vst [vmem:[#allocation2 + $0x148] sm:$0xff] %v1423_v31 }
 0x251   : > { %1544 = vst [vmem:[#allocation2 + $0x40] sm:$0xff] %v1258_v5  ;;  %1576 = vst [vmem:[#allocation2 + $0x140] sm:$0xff] %v1418_v39  ;;  %v2615_v49 = vpop.f32.mrb[10].mxu0 }
 0x252   : > { %v1273_v22 = vadd.f32 %v2615_v49, %v4319_v57  ;;  %v1267_v24 = vpop.f32.mrb[11].mxu0  ;;  %v2663_v16 = vpop.f32.mrb[10].mxu1 }
 0x253   : > { %v1268_v52 = vadd.f32 %v4319_v57, %v1267_v24  ;;  %v1433_v30 = vadd.f32 %v2663_v16, %v4319_v57  ;;  %v1427_v14 = vpop.f32.mrb[11].mxu1 }
 0x254   : > { %1547 = vst [vmem:[#allocation2 + $0x58] sm:$0xff] %v1273_v22  ;;  %v1428_v27 = vadd.f32 %v4319_v57, %v1427_v14 }
 0x255   : > { %1546 = vst [vmem:[#allocation2 + $0x50] sm:$0xff] %v1268_v52  ;;  %v2618_v60 = vpop.f32.mrb[12].mxu0  ;;  %1579 = vst [vmem:[#allocation2 + $0x158] sm:$0xff] %v1433_v30 }
 0x256   : > { %v1283_v55 = vadd.f32 %v2618_v60, %v4319_v57  ;;  %v1277_v34 = vpop.f32.mrb[13].mxu0  ;;  %1578 = vst [vmem:[#allocation2 + $0x150] sm:$0xff] %v1428_v27  ;;  %v2666_v23 = vpop.f32.mrb[12].mxu1 }
 0x257   : > { %v1278_v48 = vadd.f32 %v4319_v57, %v1277_v34  ;;  %v1443_v41 = vadd.f32 %v2666_v23, %v4319_v57  ;;  %v1437_v62 = vpop.f32.mrb[13].mxu1 }
 0x258   : > { %1549 = vst [vmem:[#allocation2 + $0x68] sm:$0xff] %v1283_v55  ;;  %v1438_v6 = vadd.f32 %v4319_v57, %v1437_v62 }
 0x259   : > { %1548 = vst [vmem:[#allocation2 + $0x60] sm:$0xff] %v1278_v48  ;;  %v2621_v21 = vpop.f32.mrb[14].mxu0  ;;  %1581 = vst [vmem:[#allocation2 + $0x168] sm:$0xff] %v1443_v41 }
 0x25a   : > { %v1293_v20 = vadd.f32 %v2621_v21, %v4319_v57  ;;  %v1287_v45 = vpop.f32.mrb[15].mxu0  ;;  %1580 = vst [vmem:[#allocation2 + $0x160] sm:$0xff] %v1438_v6  ;;  %v2669_v11 = vpop.f32.mrb[14].mxu1 }
 0x25b   : > { %v1288_v58 = vadd.f32 %v4319_v57, %v1287_v45  ;;  %v1453_v33 = vadd.f32 %v2669_v11, %v4319_v57  ;;  %v1447_v18 = vpop.f32.mrb[15].mxu1 }
 0x25c   : > { %1551 = vst [vmem:[#allocation2 + $0x78] sm:$0xff] %v1293_v20  ;;  %v1448_v8 = vadd.f32 %v4319_v57, %v1447_v18 }
 0x25d   : > { %1550 = vst [vmem:[#allocation2 + $0x70] sm:$0xff] %v1288_v58  ;;  %v2624_v17 = vpop.f32.mrb[16].mxu0  ;;  %1583 = vst [vmem:[#allocation2 + $0x178] sm:$0xff] %v1453_v33 }
 0x25e   : > { %v1303_v37 = vadd.f32 %v2624_v17, %v4319_v57  ;;  %v1297_v53 = vpop.f32.mrb[17].mxu0  ;;  %1582 = vst [vmem:[#allocation2 + $0x170] sm:$0xff] %v1448_v8  ;;  %v2672_v42 = vpop.f32.mrb[16].mxu1 }
 0x25f   : > { %v1298_v44 = vadd.f32 %v4319_v57, %v1297_v53  ;;  %v1463_v19 = vadd.f32 %v2672_v42, %v4319_v57  ;;  %v1457_v36 = vpop.f32.mrb[17].mxu1 }
 0x260   : > { %1553 = vst [vmem:[#allocation2 + $0x88] sm:$0xff] %v1303_v37  ;;  %v1458_v40 = vadd.f32 %v4319_v57, %v1457_v36 }
 0x261   : > { %1552 = vst [vmem:[#allocation2 + $0x80] sm:$0xff] %v1298_v44  ;;  %v2627_v59 = vpop.f32.mrb[18].mxu0  ;;  %1585 = vst [vmem:[#allocation2 + $0x188] sm:$0xff] %v1463_v19 }
 0x262   : > { %v1313_v9 = vadd.f32 %v2627_v59, %v4319_v57  ;;  %v1307_v61 = vpop.f32.mrb[19].mxu0  ;;  %1584 = vst [vmem:[#allocation2 + $0x180] sm:$0xff] %v1458_v40  ;;  %v2675_v3 = vpop.f32.mrb[18].mxu1 }
 0x263   : > { %v1308_v7 = vadd.f32 %v4319_v57, %v1307_v61  ;;  %v1473_v54 = vadd.f32 %v2675_v3, %v4319_v57  ;;  %v1467_v43 = vpop.f32.mrb[19].mxu1 }
 0x264   : > { %1555 = vst [vmem:[#allocation2 + $0x98] sm:$0xff] %v1313_v9  ;;  %v1468_v0 = vadd.f32 %v4319_v57, %v1467_v43 }
 0x265   : > { %1554 = vst [vmem:[#allocation2 + $0x90] sm:$0xff] %v1308_v7  ;;  %v2630_v4 = vpop.f32.mrb[20].mxu0  ;;  %1587 = vst [vmem:[#allocation2 + $0x198] sm:$0xff] %v1473_v54 }
 0x266   : > { %v1323_v35 = vadd.f32 %v2630_v4, %v4319_v57  ;;  %v1317_v47 = vpop.f32.mrb[21].mxu0  ;;  %1586 = vst [vmem:[#allocation2 + $0x190] sm:$0xff] %v1468_v0  ;;  %v2678_v63 = vpop.f32.mrb[20].mxu1 }
 0x267   : > { %v1318_v50 = vadd.f32 %v4319_v57, %v1317_v47  ;;  %v1483_v29 = vadd.f32 %v2678_v63, %v4319_v57  ;;  %v1477_v2 = vpop.f32.mrb[21].mxu1 }
 0x268   : > { %1557 = vst [vmem:[#allocation2 + $0xa8] sm:$0xff] %v1323_v35  ;;  %v1478_v26 = vadd.f32 %v4319_v57, %v1477_v2 }
 0x269   : > { %1556 = vst [vmem:[#allocation2 + $0xa0] sm:$0xff] %v1318_v50  ;;  %v2633_v51 = vpop.f32.mrb[22].mxu0  ;;  %1589 = vst [vmem:[#allocation2 + $0x1a8] sm:$0xff] %v1483_v29 }
 0x26a   : > { %v1333_v38 = vadd.f32 %v2633_v51, %v4319_v57  ;;  %v1327_v25 = vpop.f32.mrb[23].mxu0  ;;  %1588 = vst [vmem:[#allocation2 + $0x1a0] sm:$0xff] %v1478_v26  ;;  %v2681_v46 = vpop.f32.mrb[22].mxu1 }
 0x26b   : > { %v1328_v28 = vadd.f32 %v4319_v57, %v1327_v25  ;;  %v1493_v32 = vadd.f32 %v2681_v46, %v4319_v57  ;;  %v1487_v13 = vpop.f32.mrb[23].mxu1 }
 0x26c   : > { %1559 = vst [vmem:[#allocation2 + $0xb8] sm:$0xff] %v1333_v38  ;;  %v1488_v10 = vadd.f32 %v4319_v57, %v1487_v13 }
 0x26d   : > { %1558 = vst [vmem:[#allocation2 + $0xb0] sm:$0xff] %v1328_v28  ;;  %v2636_v1 = vpop.f32.mrb[24].mxu0  ;;  %1591 = vst [vmem:[#allocation2 + $0x1b8] sm:$0xff] %v1493_v32 }
 0x26e   : > { %v1343_v15 = vadd.f32 %v2636_v1, %v4319_v57  ;;  %v1337_v31 = vpop.f32.mrb[25].mxu0  ;;  %1590 = vst [vmem:[#allocation2 + $0x1b0] sm:$0xff] %v1488_v10  ;;  %v2684_v12 = vpop.f32.mrb[24].mxu1 }
 0x26f   : > { %v1338_v56 = vadd.f32 %v4319_v57, %v1337_v31  ;;  %v1503_v5 = vadd.f32 %v2684_v12, %v4319_v57  ;;  %v1497_v39 = vpop.f32.mrb[25].mxu1 }
 0x270   : > { %1561 = vst [vmem:[#allocation2 + $0xc8] sm:$0xff] %v1343_v15  ;;  %v1498_v49 = vadd.f32 %v4319_v57, %v1497_v39 }
 0x271   : > { %1560 = vst [vmem:[#allocation2 + $0xc0] sm:$0xff] %v1338_v56  ;;  %v2639_v22 = vpop.f32.mrb[26].mxu0  ;;  %1593 = vst [vmem:[#allocation2 + $0x1c8] sm:$0xff] %v1503_v5 }
 0x272   : > { %v1353_v24 = vadd.f32 %v2639_v22, %v4319_v57  ;;  %v1347_v16 = vpop.f32.mrb[27].mxu0  ;;  %1592 = vst [vmem:[#allocation2 + $0x1c0] sm:$0xff] %v1498_v49  ;;  %v2687_v52 = vpop.f32.mrb[26].mxu1 }
 0x273   : > { %v1348_v30 = vadd.f32 %v4319_v57, %v1347_v16  ;;  %v1513_v14 = vadd.f32 %v2687_v52, %v4319_v57  ;;  %v1507_v27 = vpop.f32.mrb[27].mxu1 }
 0x274   : > { %1563 = vst [vmem:[#allocation2 + $0xd8] sm:$0xff] %v1353_v24  ;;  %v1508_v60 = vadd.f32 %v4319_v57, %v1507_v27 }
 0x275   : > { %1562 = vst [vmem:[#allocation2 + $0xd0] sm:$0xff] %v1348_v30  ;;  %v2642_v55 = vpop.f32.mrb[28].mxu0  ;;  %1595 = vst [vmem:[#allocation2 + $0x1d8] sm:$0xff] %v1513_v14 }
 0x276   : > { %v1363_v34 = vadd.f32 %v2642_v55, %v4319_v57  ;;  %v1357_v23 = vpop.f32.mrb[29].mxu0  ;;  %1594 = vst [vmem:[#allocation2 + $0x1d0] sm:$0xff] %v1508_v60  ;;  %v2690_v48 = vpop.f32.mrb[28].mxu1 }
 0x277   : > { %v1358_v41 = vadd.f32 %v4319_v57, %v1357_v23  ;;  %v1523_v62 = vadd.f32 %v2690_v48, %v4319_v57  ;;  %v1517_v6 = vpop.f32.mrb[29].mxu1 }
 0x278   : > { %1565 = vst [vmem:[#allocation2 + $0xe8] sm:$0xff] %v1363_v34  ;;  %v1518_v21 = vadd.f32 %v4319_v57, %v1517_v6 }
 0x279   : > { %1564 = vst [vmem:[#allocation2 + $0xe0] sm:$0xff] %v1358_v41  ;;  %v2645_v20 = vpop.f32.mrb[30].mxu0  ;;  %1597 = vst [vmem:[#allocation2 + $0x1e8] sm:$0xff] %v1523_v62 }
 0x27a   : > { %v1373_v45 = vadd.f32 %v2645_v20, %v4319_v57  ;;  %v1367_v11 = vpop.f32.mrb[31].mxu0  ;;  %1596 = vst [vmem:[#allocation2 + $0x1e0] sm:$0xff] %v1518_v21  ;;  %v2693_v58 = vpop.f32.mrb[30].mxu1 }
 0x27b   : > { %v1368_v33 = vadd.f32 %v4319_v57, %v1367_v11  ;;  %v1533_v18 = vadd.f32 %v2693_v58, %v4319_v57  ;;  %v1527_v8 = vpop.f32.mrb[31].mxu1 }
 0x27c   : > { %1567 = vst [vmem:[#allocation2 + $0xf8] sm:$0xff] %v1373_v45  ;;  %v1528_v17 = vadd.f32 %v4319_v57, %v1527_v8 }
 0x27d   : > { %1566 = vst [vmem:[#allocation2 + $0xf0] sm:$0xff] %v1368_v33  ;;  %1599 = vst [vmem:[#allocation2 + $0x1f8] sm:$0xff] %v1533_v18 }
 0x27e   : > { %1598 = vst [vmem:[#allocation2 + $0x1f0] sm:$0xff] %v1528_v17 }
 0x285   : > { %v1603_v57 = vld [vmem:[%s1602_s26] sm:$0x1]  ;;  %s1652_s26 = scalar_lea.vmem [#allocation2], %s4223_s3  ;;  %s5069_s3 = sld [smem:[#allocation49_spill]] }
 0x286   : > { %v1608_v37 = vld [vmem:[%s1607_s0] sm:$0x1]  ;;  %1604 = vst [vmem:[%s4539_s14] sm:$0x1] %v1603_v57  ;;  %s1637_s0 = scalar_lea.vmem [#allocation2], %s4214_s20  ;;  %s5066_s20 = sld [smem:[#allocation46_spill]] }
 0x287   : > { %v1613_v53 = vld [vmem:[%s1612_s27] sm:$0x1]  ;;  %1609 = vst [vmem:[%s4539_s14 + $0x1] sm:$0x1] %v1608_v37  ;;  %s1672_s27 = scalar_lea.vmem [#allocation2], %s5063_s10  ;;  %s5073_s10 = sld [smem:[#allocation53_spill]] }
 0x288   : > { %1614 = vst [vmem:[%s4539_s14 + $0x2] sm:$0x1] %v1613_v53  ;;  %v1618_v42 = vld [vmem:[%s1617_s22] sm:$0x1]  ;;  %s5068_s22 = sld [smem:[#allocation48_spill]] }
 0x289   : > { %v1623_v44 = vld [vmem:[%s1622_s24] sm:$0x1]  ;;  %1619 = vst [vmem:[%s4539_s14 + $0x3] sm:$0x1] %v1618_v42  ;;  %s1682_s24 = scalar_lea.vmem [#allocation2], %s5065_s8 }
 0x28a   : > { %v1628_v19 = vld [vmem:[%s1627_s23] sm:$0x1]  ;;  %1624 = vst [vmem:[%s4539_s14 + $0x4] sm:$0x1] %v1623_v44 }
 0x28b   : > { %1629 = vst [vmem:[%s4539_s14 + $0x5] sm:$0x1] %v1628_v19  ;;  %v1633_v36 = vld [vmem:[%s1632_s25] sm:$0x1]  ;;  %s5071_s25 = sld [smem:[#allocation51_spill]] }
 0x28c   : > { %v1638_v40 = vld [vmem:[%s1637_s0] sm:$0x1]  ;;  %1634 = vst [vmem:[%s4539_s14 + $0x6] sm:$0x1] %v1633_v36  ;;  %s1687_s23 = scalar_lea.vmem [#allocation2], %s5066_s20  ;;  %s1692_s0 = scalar_lea.vmem [#allocation2], %s5067_s7 }
 0x28d   : > { %v1643_v59 = vld [vmem:[%s1642_s9] sm:$0x1]  ;;  %1639 = vst [vmem:[%s4539_s14 + $0x7] sm:$0x1] %v1638_v40  ;;  %s5076_s20 = sld [smem:[#allocation56_spill]]  ;;  %s5078_s7 = sld [smem:[#allocation58_spill]] }
 0x28e   : > { %1644 = vst [vmem:[%s4539_s14 + $0x8] sm:$0x1] %v1643_v59  ;;  %v1648_v9 = vld [vmem:[%s1647_s16] sm:$0x1]  ;;  %s1697_s9 = scalar_lea.vmem [#allocation2], %s5068_s22  ;;  %s1702_s16 = scalar_lea.vmem [#allocation2], %s5069_s3 }
 0x28f   : > { %v1653_v61 = vld [vmem:[%s1652_s26] sm:$0x1]  ;;  %1649 = vst [vmem:[%s4539_s14 + $0x9] sm:$0x1] %v1648_v9  ;;  %s5074_s26 = sld [smem:[#allocation54_spill]]  ;;  %s5079_s3 = sld [smem:[#allocation59_spill]] }
 0x290   : > { %v1658_v3 = vld [vmem:[%s1657_s2] sm:$0x1]  ;;  %1654 = vst [vmem:[%s4539_s14 + $0xa] sm:$0x1] %v1653_v61  ;;  %s1707_s2 = scalar_lea.vmem [#allocation2], %s5070_s11  ;;  %s5081_s11 = sld [smem:[#allocation61_spill]] }
 0x291   : > { %1659 = vst [vmem:[%s4539_s14 + $0xb] sm:$0x1] %v1658_v3  ;;  %v1663_v7 = vld [vmem:[%s1662_s1] sm:$0x1]  ;;  %s1712_s8 = scalar_lea.vmem [#allocation2], %s5071_s25  ;;  %s1717_s1 = scalar_lea.vmem [#allocation2], %s5072_s21 }
 0x292   : > { %v1668_v54 = vld [vmem:[%s1667_s28] sm:$0x1]  ;;  %1664 = vst [vmem:[%s4539_s14 + $0xc] sm:$0x1] %v1663_v7  ;;  %s5077_s28 = sld [smem:[#allocation57_spill]]  ;;  %s5082_s21 = sld [smem:[#allocation62_spill]] }
 0x293   : > { %v1673_v43 = vld [vmem:[%s1672_s27] sm:$0x1]  ;;  %1669 = vst [vmem:[%s4539_s14 + $0xd] sm:$0x1] %v1668_v54  ;;  %s1722_s27 = scalar_lea.vmem [#allocation2], %s5073_s10 }
 0x294   : > { %1674 = vst [vmem:[%s4539_s14 + $0xe] sm:$0x1] %v1673_v43  ;;  %v1678_v0 = vld [vmem:[%s1677_s15] sm:$0x1]  ;;  %s1732_s15 = scalar_lea.vmem [#allocation2], %s5075_s17  ;;  %s5084_s17 = sld [smem:[#allocation64_spill]] }
 0x295   : > { %v1683_v4 = vld [vmem:[%s1682_s24] sm:$0x1]  ;;  %1679 = vst [vmem:[%s4539_s14 + $0xf] sm:$0x1] %v1678_v0  ;;  %s1727_s22 = scalar_lea.vmem [#allocation2], %s5074_s26  ;;  %s5080_s24 = sld [smem:[#allocation60_spill]] }
 0x296   : > { %v1688_v35 = vld [vmem:[%s1687_s23] sm:$0x1]  ;;  %1684 = vst [vmem:[%s4539_s14 + $0x10] sm:$0x1] %v1683_v4  ;;  %s1737_s23 = scalar_lea.vmem [#allocation2], %s5076_s20  ;;  %s1752_s10 = scalar_lea.vmem [#allocation2], %s5079_s3 }
 0x297   : > { %1689 = vst [vmem:[%s4539_s14 + $0x11] sm:$0x1] %v1688_v35  ;;  %v1693_v47 = vld [vmem:[%s1692_s0] sm:$0x1]  ;;  %s1747_s0 = scalar_lea.vmem [#allocation2], %s5078_s7  ;;  %s1762_s26 = scalar_lea.vmem [#allocation2], %s5081_s11 }
 0x298   : > { %v1698_v63 = vld [vmem:[%s1697_s9] sm:$0x1]  ;;  %1694 = vst [vmem:[%s4539_s14 + $0x12] sm:$0x1] %v1693_v47  ;;  %s1742_s25 = scalar_lea.vmem [#allocation2], %s5077_s28  ;;  %s5083_s9 = sld [smem:[#allocation63_spill]] }
 0x299   : > { %v1703_v50 = vld [vmem:[%s1702_s16] sm:$0x1]  ;;  %1699 = vst [vmem:[%s4539_s14 + $0x13] sm:$0x1] %v1698_v63  ;;  %s1777_s28 = scalar_lea.vmem [#allocation2], %s4298_s29  ;;  %s5087_s7 = sld [smem:[#allocation67_spill]] }
 0x29a   : > { %1704 = vst [vmem:[%s4539_s14 + $0x14] sm:$0x1] %v1703_v50  ;;  %v1708_v29 = vld [vmem:[%s1707_s2] sm:$0x1]  ;;  %s5085_s2 = sld [smem:[#allocation65_spill]]  ;;  %s1787_s3 = scalar_lea.vmem [#allocation2], %s5084_s17 }
 0x29b   : > { %v1713_v2 = vld [vmem:[%s1712_s8] sm:$0x1]  ;;  %1709 = vst [vmem:[%s4539_s14 + $0x15] sm:$0x1] %v1708_v29  ;;  %s1757_s16 = scalar_lea.vmem [#allocation2], %s5080_s24  ;;  %s1767_s8 = scalar_lea.vmem [#allocation2], %s5082_s21 }
 0x29c   : > { %v1718_v26 = vld [vmem:[%s1717_s1] sm:$0x1]  ;;  %1714 = vst [vmem:[%s4539_s14 + $0x16] sm:$0x1] %v1713_v2  ;;  %s5086_s1 = sld [smem:[#allocation66_spill]]  ;;  %s5090_s11 = sld [smem:[#allocation70_spill]] }
 0x29d   : > { %1719 = vst [vmem:[%s4539_s14 + $0x17] sm:$0x1] %v1718_v26  ;;  %v1723_v51 = vld [vmem:[%s1722_s27] sm:$0x1]  ;;  %s5088_s27 = sld [smem:[#allocation68_spill]] }
 0x29e   : > { %v1728_v38 = vld [vmem:[%s1727_s22] sm:$0x1]  ;;  %1724 = vst [vmem:[%s4539_s14 + $0x18] sm:$0x1] %v1723_v51  ;;  %s1772_s20 = scalar_lea.vmem [#allocation2], %s5083_s9  ;;  %s1782_s22 = scalar_lea.vmem [#allocation2], %s4302_s19 }
 0x29f   : > { %v1733_v25 = vld [vmem:[%s1732_s15] sm:$0x1]  ;;  %1729 = vst [vmem:[%s4539_s14 + $0x19] sm:$0x1] %v1728_v38  ;;  %s5089_s15 = sld [smem:[#allocation69_spill]]  ;;  %s5092_s19 = sld [smem:[#allocation72_spill]] }
 0x2a0   : > { %1734 = vst [vmem:[%s4539_s14 + $0x1a] sm:$0x1] %v1733_v25  ;;  %v1738_v46 = vld [vmem:[%s1737_s23] sm:$0x1]  ;;  %s1792_s24 = scalar_lea.vmem [#allocation2], %s5085_s2  ;;  %s5091_s23 = sld [smem:[#allocation71_spill]] }
 0x2a1   : > { %v1743_v28 = vld [vmem:[%s1742_s25] sm:$0x1]  ;;  %1739 = vst [vmem:[%s4539_s14 + $0x1b] sm:$0x1] %v1738_v46  ;;  %s1802_s25 = scalar_lea.vmem [#allocation2], %s5087_s7  ;;  %s5094_s9 = sld [smem:[#allocation74_spill]] }
 0x2a2   : > { %v1748_v32 = vld [vmem:[%s1747_s0] sm:$0x1]  ;;  %1744 = vst [vmem:[%s4539_s14 + $0x1c] sm:$0x1] %v1743_v28  ;;  %s1797_s29 = scalar_lea.vmem [#allocation2], %s5086_s1  ;;  %s5093_s0 = sld [smem:[#allocation73_spill]] }
 0x2a3   : > { %1749 = vst [vmem:[%s4539_s14 + $0x1d] sm:$0x1] %v1748_v32  ;;  %v1753_v13 = vld [vmem:[%s1752_s10] sm:$0x1]  ;;  %s1807_s21 = scalar_lea.vmem [#allocation2], %s5088_s27  ;;  %s5096_s2 = sld [smem:[#allocation76_spill]] }
 0x2a4   : > { %v1758_v10 = vld [vmem:[%s1757_s16] sm:$0x1]  ;;  %1754 = vst [vmem:[%s4539_s14 + $0x1e] sm:$0x1] %v1753_v13  ;;  %s1817_s16 = scalar_lea.vmem [#allocation2], %s5090_s11  ;;  %s5099_s27 = sld [smem:[#allocation79_spill]] }
 0x2a5   : > { %v1763_v1 = vld [vmem:[%s1762_s26] sm:$0x1]  ;;  %1759 = vst [vmem:[%s4539_s14 + $0x1f] sm:$0x1] %v1758_v10  ;;  %s1812_s10 = scalar_lea.vmem [#allocation2], %s5089_s15  ;;  %s5095_s26 = sld [smem:[#allocation75_spill]] }
 0x2a6   : > { %1764 = vst [vmem:[%s4539_s14 + $0x20] sm:$0x1] %v1763_v1  ;;  %v1768_v15 = vld [vmem:[%s1767_s8] sm:$0x1]  ;;  %s1822_s17 = scalar_lea.vmem [#allocation2], %s5091_s23  ;;  %s5097_s8 = sld [smem:[#allocation77_spill]] }
 0x2a7   : > { %v1773_v31 = vld [vmem:[%s1772_s20] sm:$0x1]  ;;  %1769 = vst [vmem:[%s4539_s14 + $0x21] sm:$0x1] %v1768_v15  ;;  %s1827_s20 = scalar_lea.vmem [#allocation2], %s5092_s19  ;;  %s1837_s7 = scalar_lea.vmem [#allocation2], %s5094_s9 }
 0x2a8   : > { %v1778_v12 = vld [vmem:[%s1777_s28] sm:$0x1]  ;;  %1774 = vst [vmem:[%s4539_s14 + $0x22] sm:$0x1] %v1773_v31  ;;  %s1832_s1 = scalar_lea.vmem [#allocation2], %s5093_s0  ;;  %s5098_s28 = sld [smem:[#allocation78_spill]] }
 0x2a9   : > { %1779 = vst [vmem:[%s4539_s14 + $0x23] sm:$0x1] %v1778_v12  ;;  %v1783_v56 = vld [vmem:[%s1782_s22] sm:$0x1]  ;;  %s5100_s22 = sld [smem:[#allocation80_spill]]  ;;  %s1847_s15 = scalar_lea.vmem [#allocation2], %s5096_s2 }
 0x2aa   : > { %v1788_v5 = vld [vmem:[%s1787_s3] sm:$0x1]  ;;  %1784 = vst [vmem:[%s4539_s14 + $0x24] sm:$0x1] %v1783_v56  ;;  %s5102_s23 = sld [smem:[#allocation82_spill]]  ;;  %s1862_s19 = scalar_lea.vmem [#allocation2], %s5099_s27 }
 0x2ab   : > { %v1793_v39 = vld [vmem:[%s1792_s24] sm:$0x1]  ;;  %1789 = vst [vmem:[%s4539_s14 + $0x25] sm:$0x1] %v1788_v5  ;;  %s1842_s3 = scalar_lea.vmem [#allocation2], %s5095_s26  ;;  %s5101_s24 = sld [smem:[#allocation81_spill]] }
 0x2ac   : > { %1794 = vst [vmem:[%s4539_s14 + $0x26] sm:$0x1] %v1793_v39  ;;  %v1798_v49 = vld [vmem:[%s1797_s29] sm:$0x1]  ;;  %s1852_s11 = scalar_lea.vmem [#allocation2], %s5097_s8  ;;  %s5103_s29 = sld [smem:[#allocation83_spill]] }
 0x2ad   : > { %v1803_v22 = vld [vmem:[%s1802_s25] sm:$0x1]  ;;  %1799 = vst [vmem:[%s4539_s14 + $0x27] sm:$0x1] %v1798_v49  ;;  %s5105_s9 = sld [smem:[#allocation85_spill]]  ;;  %s5108_s8 = sld [smem:[#allocation88_spill]] }
 0x2ae   : > { %v1808_v24 = vld [vmem:[%s1807_s21] sm:$0x1]  ;;  %1804 = vst [vmem:[%s4539_s14 + $0x28] sm:$0x1] %v1803_v22  ;;  %s1857_s25 = scalar_lea.vmem [#allocation2], %s5098_s28  ;;  %s5104_s21 = sld [smem:[#allocation84_spill]] }
 0x2af   : > { %1809 = vst [vmem:[%s4539_s14 + $0x29] sm:$0x1] %v1808_v24  ;;  %v1813_v16 = vld [vmem:[%s1812_s10] sm:$0x1]  ;;  %s1867_s0 = scalar_lea.vmem [#allocation2], %s5100_s22  ;;  %s5106_s10 = sld [smem:[#allocation86_spill]] }
 0x2b0   : > { %v1818_v52 = vld [vmem:[%s1817_s16] sm:$0x1]  ;;  %1814 = vst [vmem:[%s4539_s14 + $0x2a] sm:$0x1] %v1813_v16  ;;  %s1877_s26 = scalar_lea.vmem [#allocation2], %s5102_s23  ;;  %s5111_s22 = sld [smem:[#allocation91_spill]] }
 0x2b1   : > { %v1823_v30 = vld [vmem:[%s1822_s17] sm:$0x1]  ;;  %1819 = vst [vmem:[%s4539_s14 + $0x2b] sm:$0x1] %v1818_v52  ;;  %s1872_s16 = scalar_lea.vmem [#allocation2], %s5101_s24  ;;  %s5107_s17 = sld [smem:[#allocation87_spill]] }
 0x2b2   : > { %1824 = vst [vmem:[%s4539_s14 + $0x2c] sm:$0x1] %v1823_v30  ;;  %v1828_v14 = vld [vmem:[%s1827_s20] sm:$0x1]  ;;  %s1882_s2 = scalar_lea.vmem [#allocation2], %s5103_s29  ;;  %s5109_s20 = sld [smem:[#allocation89_spill]] }
 0x2b3   : > { %v1833_v27 = vld [vmem:[%s1832_s1] sm:$0x1]  ;;  %1829 = vst [vmem:[%s4539_s14 + $0x2d] sm:$0x1] %v1828_v14  ;;  %s1892_s28 = scalar_lea.vmem [#allocation2], %s5105_s9  ;;  %s1907_s24 = scalar_lea.vmem [#allocation2], %s5108_s8 }
 0x2b4   : > { %v1838_v60 = vld [vmem:[%s1837_s7] sm:$0x1]  ;;  %1834 = vst [vmem:[%s4539_s14 + $0x2e] sm:$0x1] %v1833_v27  ;;  %s1887_s1 = scalar_lea.vmem [#allocation2], %s5104_s21  ;;  %s5110_s7 = sld [smem:[#allocation90_spill]] }
 0x2b5   : > { %1839 = vst [vmem:[%s4539_s14 + $0x2f] sm:$0x1] %v1838_v60  ;;  %v1843_v55 = vld [vmem:[%s1842_s3] sm:$0x1]  ;;  %s1897_s27 = scalar_lea.vmem [#allocation2], %s5106_s10  ;;  %s5112_s3 = sld [smem:[#allocation92_spill]] }
 0x2b6   : > { %v1848_v34 = vld [vmem:[%s1847_s15] sm:$0x1]  ;;  %1844 = vst [vmem:[%s4539_s14 + $0x30] sm:$0x1] %v1843_v55  ;;  %s5114_s29 = sld [smem:[#allocation94_spill]]  ;;  %s1922_s21 = scalar_lea.vmem [#allocation2], %s5111_s22 }
 0x2b7   : > { %v1853_v23 = vld [vmem:[%s1852_s11] sm:$0x1]  ;;  %1849 = vst [vmem:[%s4539_s14 + $0x31] sm:$0x1] %v1848_v34  ;;  %s1902_s15 = scalar_lea.vmem [#allocation2], %s5107_s17  ;;  %s5113_s11 = sld [smem:[#allocation93_spill]] }
 0x2b8   : > { %1854 = vst [vmem:[%s4539_s14 + $0x32] sm:$0x1] %v1853_v23  ;;  %v1858_v48 = vld [vmem:[%s1857_s25] sm:$0x1]  ;;  %s1912_s23 = scalar_lea.vmem [#allocation2], %s5109_s20  ;;  %s5115_s25 = sld [smem:[#allocation95_spill]] }
 0x2b9   : > { %v1863_v41 = vld [vmem:[%s1862_s19] sm:$0x1]  ;;  %1859 = vst [vmem:[%s4539_s14 + $0x33] sm:$0x1] %v1858_v48  ;;  %s5117_s10 = sld [smem:[#allocation97_spill]]  ;;  %s5120_s20 = sld [smem:[#allocation100_spill]] }
 0x2ba   : > { %v1868_v62 = vld [vmem:[%s1867_s0] sm:$0x1]  ;;  %1864 = vst [vmem:[%s4539_s14 + $0x34] sm:$0x1] %v1863_v41  ;;  %s1917_s19 = scalar_lea.vmem [#allocation2], %s5110_s7  ;;  %s5116_s0 = sld [smem:[#allocation96_spill]] }
 0x2bb   : > { %1869 = vst [vmem:[%s4539_s14 + $0x35] sm:$0x1] %v1868_v62  ;;  %v1873_v6 = vld [vmem:[%s1872_s16] sm:$0x1]  ;;  %s1927_s9 = scalar_lea.vmem [#allocation2], %s5112_s3  ;;  %s5118_s16 = sld [smem:[#allocation98_spill]] }
 0x2bc   : > { %v1878_v21 = vld [vmem:[%s1877_s26] sm:$0x1]  ;;  %1874 = vst [vmem:[%s4539_s14 + $0x36] sm:$0x1] %v1873_v6  ;;  %s1937_s17 = scalar_lea.vmem [#allocation2], %s5114_s29  ;;  %s5123_s3 = sld [smem:[#allocation103_spill]] }
 0x2bd   : > { %v1883_v20 = vld [vmem:[%s1882_s2] sm:$0x1]  ;;  %1879 = vst [vmem:[%s4539_s14 + $0x37] sm:$0x1] %v1878_v21  ;;  %s1932_s26 = scalar_lea.vmem [#allocation2], %s5113_s11  ;;  %s5119_s2 = sld [smem:[#allocation99_spill]] }
 0x2be   : > { %1884 = vst [vmem:[%s4539_s14 + $0x38] sm:$0x1] %v1883_v20  ;;  %v1888_v45 = vld [vmem:[%s1887_s1] sm:$0x1]  ;;  %s1942_s8 = scalar_lea.vmem [#allocation2], %s5115_s25  ;;  %s5121_s1 = sld [smem:[#allocation101_spill]] }
 0x2bf   : > { %v1893_v11 = vld [vmem:[%s1892_s28] sm:$0x1]  ;;  %1889 = vst [vmem:[%s4539_s14 + $0x39] sm:$0x1] %v1888_v45  ;;  %s1952_s7 = scalar_lea.vmem [#allocation2], %s5117_s10  ;;  %s1967_s11 = scalar_lea.vmem [#allocation2], %s5120_s20 }
 0x2c0   : > { %v1898_v58 = vld [vmem:[%s1897_s27] sm:$0x1]  ;;  %1894 = vst [vmem:[%s4539_s14 + $0x3a] sm:$0x1] %v1893_v11  ;;  %s1947_s28 = scalar_lea.vmem [#allocation2], %s5116_s0  ;;  %s5122_s27 = sld [smem:[#allocation102_spill]] }
 0x2c1   : > { %1899 = vst [vmem:[%s4539_s14 + $0x3b] sm:$0x1] %v1898_v58  ;;  %v1903_v33 = vld [vmem:[%s1902_s15] sm:$0x1]  ;;  %s1957_s22 = scalar_lea.vmem [#allocation2], %s5118_s16  ;;  %s5124_s15 = sld [smem:[#allocation104_spill]] }
 0x2c2   : > { %v1908_v18 = vld [vmem:[%s1907_s24] sm:$0x1]  ;;  %1904 = vst [vmem:[%s4539_s14 + $0x3c] sm:$0x1] %v1903_v33  ;;  %s5126_s25 = sld [smem:[#allocation106_spill]]  ;;  %s1982_s0 = scalar_lea.vmem [#allocation2], %s5123_s3 }
 0x2c3   : > { %v1913_v8 = vld [vmem:[%s1912_s23] sm:$0x1]  ;;  %1909 = vst [vmem:[%s4539_s14 + $0x3d] sm:$0x1] %v1908_v18  ;;  %s1962_s24 = scalar_lea.vmem [#allocation2], %s5119_s2  ;;  %s5125_s23 = sld [smem:[#allocation105_spill]] }
 0x2c4   : > { %1914 = vst [vmem:[%s4539_s14 + $0x3e] sm:$0x1] %v1913_v8  ;;  %v1918_v17 = vld [vmem:[%s1917_s19] sm:$0x1]  ;;  %s1972_s29 = scalar_lea.vmem [#allocation2], %s5121_s1  ;;  %s5127_s19 = sld [smem:[#allocation107_spill]] }
 0x2c5   : > { %v1923_v57 = vld [vmem:[%s1922_s21] sm:$0x1]  ;;  %1919 = vst [vmem:[%s4539_s14 + $0x3f] sm:$0x1] %v1918_v17  ;;  %s5129_s16 = sld [smem:[#allocation109_spill]]  ;;  %s5132_s1 = sld [smem:[#allocation112_spill]] }
 0x2c6   : > { %v1928_v37 = vld [vmem:[%s1927_s9] sm:$0x1]  ;;  %1924 = vst [vmem:[%s4539_s14 + $0x40] sm:$0x1] %v1923_v57  ;;  %s1977_s21 = scalar_lea.vmem [#allocation2], %s5122_s27  ;;  %s5128_s9 = sld [smem:[#allocation108_spill]] }
 0x2c7   : > { %1929 = vst [vmem:[%s4539_s14 + $0x41] sm:$0x1] %v1928_v37  ;;  %v1933_v53 = vld [vmem:[%s1932_s26] sm:$0x1]  ;;  %s1987_s10 = scalar_lea.vmem [#allocation2], %s5124_s15  ;;  %s5130_s26 = sld [smem:[#allocation110_spill]] }
 0x2c8   : > { %v1938_v42 = vld [vmem:[%s1937_s17] sm:$0x1]  ;;  %1934 = vst [vmem:[%s4539_s14 + $0x42] sm:$0x1] %v1933_v53  ;;  %s1997_s2 = scalar_lea.vmem [#allocation2], %s5126_s25  ;;  %s2032_s15 = scalar_lea.vmem [#allocation2], %s4521_s12 }
 0x2c9   : > { %v1943_v44 = vld [vmem:[%s1942_s8] sm:$0x1]  ;;  %1939 = vst [vmem:[%s4539_s14 + $0x43] sm:$0x1] %v1938_v42  ;;  %s1992_s17 = scalar_lea.vmem [#allocation2], %s5125_s23  ;;  %s5131_s8 = sld [smem:[#allocation111_spill]] }
 0x2ca   : > { %1944 = vst [vmem:[%s4539_s14 + $0x44] sm:$0x1] %v1943_v44  ;;  %v1948_v19 = vld [vmem:[%s1947_s28] sm:$0x1]  ;;  %s2002_s20 = scalar_lea.vmem [#allocation2], %s5127_s19  ;;  %s2047_s23 = scalar_lea.vmem [#allocation2], %s4529_s4 }
 0x2cb   : > { %v1953_v36 = vld [vmem:[%s1952_s7] sm:$0x1]  ;;  %1949 = vst [vmem:[%s4539_s14 + $0x45] sm:$0x1] %v1948_v19  ;;  %s2012_s7 = scalar_lea.vmem [#allocation2], %s5129_s16  ;;  %s2027_s3 = scalar_lea.vmem [#allocation2], %s5132_s1 }
 0x2cc   : > { %v1958_v40 = vld [vmem:[%s1957_s22] sm:$0x1]  ;;  %1954 = vst [vmem:[%s4539_s14 + $0x46] sm:$0x1] %v1953_v36  ;;  %s2007_s28 = scalar_lea.vmem [#allocation2], %s5128_s9  ;;  %s2052_s12 = scalar_lea.vmem [#allocation2], %s4533_s13 }
 0x2cd   : > { %1959 = vst [vmem:[%s4539_s14 + $0x47] sm:$0x1] %v1958_v40  ;;  %v1963_v59 = vld [vmem:[%s1962_s24] sm:$0x1]  ;;  %s2017_s27 = scalar_lea.vmem [#allocation2], %s5130_s26  ;;  %s2037_s24 = scalar_lea.vmem [#allocation2], %s4523_s30 }
 0x2ce   : > { %v1968_v9 = vld [vmem:[%s1967_s11] sm:$0x1]  ;;  %1964 = vst [vmem:[%s4539_s14 + $0x48] sm:$0x1] %v1963_v59  ;;  %s2042_s11 = scalar_lea.vmem [#allocation2], %s4527_s5  ;;  %s2060_s25 = sadd.s32 92, %s4185_s18 }
 0x2cf   : > { %v1973_v61 = vld [vmem:[%s1972_s29] sm:$0x1]  ;;  %1969 = vst [vmem:[%s4539_s14 + $0x49] sm:$0x1] %v1968_v9  ;;  %s2022_s22 = scalar_lea.vmem [#allocation2], %s5131_s8  ;;  %s2056_s29 = sld [smem:[#allocation4 + %s2055_s6]] }
 0x2d0   : > { %1974 = vst [vmem:[%s4539_s14 + $0x4a] sm:$0x1] %v1973_v61  ;;  %v1978_v3 = vld [vmem:[%s1977_s21] sm:$0x1]  ;;  %s2061_s30 = sld [smem:[#allocation4 + %s2060_s25]]  ;;  %s2065_s19 = sadd.s32 93, %s4185_s18 }
 0x2d1   : > { %v1983_v7 = vld [vmem:[%s1982_s0] sm:$0x1]  ;;  %1979 = vst [vmem:[%s4539_s14 + $0x4b] sm:$0x1] %v1978_v3  ;;  %s2066_s5 = sld [smem:[#allocation4 + %s2065_s19]]  ;;  %s2070_s21 = sadd.s32 94, %s4185_s18 }
 0x2d2   : > { %v1988_v54 = vld [vmem:[%s1987_s10] sm:$0x1]  ;;  %1984 = vst [vmem:[%s4539_s14 + $0x4c] sm:$0x1] %v1983_v7  ;;  %s2071_s0 = sld [smem:[#allocation4 + %s2070_s21]]  ;;  %s2075_s9 = sadd.s32 95, %s4185_s18 }
 0x2d3   : > { %1989 = vst [vmem:[%s4539_s14 + $0x4d] sm:$0x1] %v1988_v54  ;;  %v1993_v43 = vld [vmem:[%s1992_s17] sm:$0x1]  ;;  %s2076_s4 = sld [smem:[#allocation4 + %s2075_s9]]  ;;  %s2080_s10 = sadd.s32 96, %s4185_s18 }
 0x2d4   : > { %v1998_v0 = vld [vmem:[%s1997_s2] sm:$0x1]  ;;  %1994 = vst [vmem:[%s4539_s14 + $0x4e] sm:$0x1] %v1993_v43  ;;  %s2081_s13 = sld [smem:[#allocation4 + %s2080_s10]]  ;;  %s2085_s16 = sadd.s32 97, %s4185_s18 }
 0x2d5   : > { %v2003_v4 = vld [vmem:[%s2002_s20] sm:$0x1]  ;;  %1999 = vst [vmem:[%s4539_s14 + $0x4f] sm:$0x1] %v1998_v0  ;;  %s2086_s26 = sld [smem:[#allocation4 + %s2085_s16]]  ;;  %s2057_s6 = scalar_lea.vmem [#allocation2], %s2056_s29 }
 0x2d6   : > { %2004 = vst [vmem:[%s4539_s14 + $0x50] sm:$0x1] %v2003_v4  ;;  %v2008_v35 = vld [vmem:[%s2007_s28] sm:$0x1]  ;;  %s2090_s17 = sadd.s32 98, %s4185_s18  ;;  %s2062_s2 = scalar_lea.vmem [#allocation2], %s2061_s30 }
 0x2d7   : > { %v2013_v47 = vld [vmem:[%s2012_s7] sm:$0x1]  ;;  %2009 = vst [vmem:[%s4539_s14 + $0x51] sm:$0x1] %v2008_v35  ;;  %s2091_s8 = sld [smem:[#allocation4 + %s2090_s17]]  ;;  %s2067_s20 = scalar_lea.vmem [#allocation2], %s2066_s5 }
 0x2d8   : > { %v2018_v63 = vld [vmem:[%s2017_s27] sm:$0x1]  ;;  %2014 = vst [vmem:[%s4539_s14 + $0x52] sm:$0x1] %v2013_v47  ;;  %s2095_s1 = sadd.s32 99, %s4185_s18  ;;  %s2072_s28 = scalar_lea.vmem [#allocation2], %s2071_s0 }
 0x2d9   : > { %2019 = vst [vmem:[%s4539_s14 + $0x53] sm:$0x1] %v2018_v63  ;;  %v2023_v50 = vld [vmem:[%s2022_s22] sm:$0x1]  ;;  %s2096_s7 = sld [smem:[#allocation4 + %s2095_s1]]  ;;  %s2077_s27 = scalar_lea.vmem [#allocation2], %s2076_s4 }
 0x2da   : > { %v2028_v29 = vld [vmem:[%s2027_s3] sm:$0x1]  ;;  %2024 = vst [vmem:[%s4539_s14 + $0x54] sm:$0x1] %v2023_v50  ;;  %s2100_s22 = sadd.s32 100, %s4185_s18  ;;  %s2082_s3 = scalar_lea.vmem [#allocation2], %s2081_s13 }
 0x2db   : > { %v2033_v2 = vld [vmem:[%s2032_s15] sm:$0x1]  ;;  %2029 = vst [vmem:[%s4539_s14 + $0x55] sm:$0x1] %v2028_v29  ;;  %s2101_s15 = sld [smem:[#allocation4 + %s2100_s22]]  ;;  %s2115_s30 = sadd.s32 103, %s4185_s18 }
 0x2dc   : > { %2034 = vst [vmem:[%s4539_s14 + $0x56] sm:$0x1] %v2033_v2  ;;  %v2038_v26 = vld [vmem:[%s2037_s24] sm:$0x1]  ;;  %s2087_s24 = scalar_lea.vmem [#allocation2], %s2086_s26  ;;  %s2116_s19 = sld [smem:[#allocation4 + %s2115_s30]] }
 0x2dd   : > { %v2043_v51 = vld [vmem:[%s2042_s11] sm:$0x1]  ;;  %2039 = vst [vmem:[%s4539_s14 + $0x57] sm:$0x1] %v2038_v26  ;;  %s2105_s11 = sadd.s32 101, %s4185_s18  ;;  %s2092_s29 = scalar_lea.vmem [#allocation2], %s2091_s8 }
 0x2de   : > { %2044 = vst [vmem:[%s4539_s14 + $0x58] sm:$0x1] %v2043_v51  ;;  %v2048_v38 = vld [vmem:[%s2047_s23] sm:$0x1]  ;;  %s2110_s23 = sadd.s32 102, %s4185_s18  ;;  %s2120_s21 = sadd.s32 104, %s4185_s18 }
 0x2df   : > { %v2053_v25 = vld [vmem:[%s2052_s12] sm:$0x1]  ;;  %2049 = vst [vmem:[%s4539_s14 + $0x59] sm:$0x1] %v2048_v38  ;;  %s2106_s12 = sld [smem:[#allocation4 + %s2105_s11]]  ;;  %s2097_s5 = scalar_lea.vmem [#allocation2], %s2096_s7 }
 0x2e0   : > { %2054 = vst [vmem:[%s4539_s14 + $0x5a] sm:$0x1] %v2053_v25  ;;  %v2058_v46 = vld [vmem:[%s2057_s6] sm:$0x1]  ;;  %s2111_s25 = sld [smem:[#allocation4 + %s2110_s23]]  ;;  %s2125_s0 = sadd.s32 105, %s4185_s18 }
 0x2e1   : > { %2059 = vst [vmem:[%s4539_s14 + $0x5b] sm:$0x1] %v2058_v46  ;;  %v2063_v28 = vld [vmem:[%s2062_s2] sm:$0x1]  ;;  %s2121_s9 = sld [smem:[#allocation4 + %s2120_s21]]  ;;  %s2102_s4 = scalar_lea.vmem [#allocation2], %s2101_s15 }
 0x2e2   : > { %2064 = vst [vmem:[%s4539_s14 + $0x5c] sm:$0x1] %v2063_v28  ;;  %v2068_v32 = vld [vmem:[%s2067_s20] sm:$0x1]  ;;  %s2126_s10 = sld [smem:[#allocation4 + %s2125_s0]]  ;;  %s2130_s13 = sadd.s32 106, %s4185_s18 }
 0x2e3   : > { %2069 = vst [vmem:[%s4539_s14 + $0x5d] sm:$0x1] %v2068_v32  ;;  %v2073_v13 = vld [vmem:[%s2072_s28] sm:$0x1]  ;;  %s2131_s16 = sld [smem:[#allocation4 + %s2130_s13]]  ;;  %s2135_s6 = sadd.s32 107, %s4185_s18 }
 0x2e4   : > { %2074 = vst [vmem:[%s4539_s14 + $0x5e] sm:$0x1] %v2073_v13  ;;  %v2078_v10 = vld [vmem:[%s2077_s27] sm:$0x1]  ;;  %s2136_s2 = sld [smem:[#allocation4 + %s2135_s6]]  ;;  %s2117_s8 = scalar_lea.vmem [#allocation2], %s2116_s19 }
 0x2e5   : > { %2079 = vst [vmem:[%s4539_s14 + $0x5f] sm:$0x1] %v2078_v10  ;;  %v2083_v1 = vld [vmem:[%s2082_s3] sm:$0x1]  ;;  %s2107_s26 = scalar_lea.vmem [#allocation2], %s2106_s12  ;;  %s2140_s20 = sadd.s32 108, %s4185_s18 }
 0x2e6   : > { %2084 = vst [vmem:[%s4539_s14 + $0x60] sm:$0x1] %v2083_v1  ;;  %v2088_v15 = vld [vmem:[%s2087_s24] sm:$0x1]  ;;  %s2112_s17 = scalar_lea.vmem [#allocation2], %s2111_s25  ;;  %s2145_s1 = sadd.s32 109, %s4185_s18 }
 0x2e7   : > { %2089 = vst [vmem:[%s4539_s14 + $0x61] sm:$0x1] %v2088_v15  ;;  %v2093_v31 = vld [vmem:[%s2092_s29] sm:$0x1]  ;;  %s2141_s28 = sld [smem:[#allocation4 + %s2140_s20]]  ;;  %s2122_s7 = scalar_lea.vmem [#allocation2], %s2121_s9 }
 0x2e8   : > { %2094 = vst [vmem:[%s4539_s14 + $0x62] sm:$0x1] %v2093_v31  ;;  %v2098_v12 = vld [vmem:[%s2097_s5] sm:$0x1]  ;;  %s2146_s27 = sld [smem:[#allocation4 + %s2145_s1]]  ;;  %s2127_s22 = scalar_lea.vmem [#allocation2], %s2126_s10 }
 0x2e9   : > { %2099 = vst [vmem:[%s4539_s14 + $0x63] sm:$0x1] %v2098_v12  ;;  %v2103_v56 = vld [vmem:[%s2102_s4] sm:$0x1]  ;;  %s2150_s3 = sadd.s32 110, %s4185_s18  ;;  %s2132_s15 = scalar_lea.vmem [#allocation2], %s2131_s16 }
 0x2ea   : > { %2104 = vst [vmem:[%s4539_s14 + $0x64] sm:$0x1] %v2103_v56  ;;  %v2108_v5 = vld [vmem:[%s2107_s26] sm:$0x1]  ;;  %s2151_s24 = sld [smem:[#allocation4 + %s2150_s3]]  ;;  %s2155_s11 = sadd.s32 111, %s4185_s18 }
 0x2eb   : > { %2109 = vst [vmem:[%s4539_s14 + $0x65] sm:$0x1] %v2108_v5  ;;  %v2113_v39 = vld [vmem:[%s2112_s17] sm:$0x1]  ;;  %s2156_s23 = sld [smem:[#allocation4 + %s2155_s11]]  ;;  %s2137_s12 = scalar_lea.vmem [#allocation2], %s2136_s2 }
 0x2ec   : > { %2114 = vst [vmem:[%s4539_s14 + $0x66] sm:$0x1] %v2113_v39  ;;  %v2118_v49 = vld [vmem:[%s2117_s8] sm:$0x1]  ;;  %s2160_s29 = sadd.s32 112, %s4185_s18  ;;  %s2165_s25 = sadd.s32 113, %s4185_s18 }
 0x2ed   : > { %2119 = vst [vmem:[%s4539_s14 + $0x67] sm:$0x1] %v2118_v49  ;;  %v2123_v22 = vld [vmem:[%s2122_s7] sm:$0x1]  ;;  %s2161_s30 = sld [smem:[#allocation4 + %s2160_s29]]  ;;  %s2142_s19 = scalar_lea.vmem [#allocation2], %s2141_s28 }
 0x2ee   : > { %2124 = vst [vmem:[%s4539_s14 + $0x68] sm:$0x1] %v2123_v22  ;;  %v2128_v24 = vld [vmem:[%s2127_s22] sm:$0x1]  ;;  %s2166_s5 = sld [smem:[#allocation4 + %s2165_s25]]  ;;  %s2147_s21 = scalar_lea.vmem [#allocation2], %s2146_s27 }
 0x2ef   : > { %2129 = vst [vmem:[%s4539_s14 + $0x69] sm:$0x1] %v2128_v24  ;;  %v2133_v16 = vld [vmem:[%s2132_s15] sm:$0x1]  ;;  %s2170_s0 = sadd.s32 114, %s4185_s18  ;;  %s2175_s9 = sadd.s32 115, %s4185_s18 }
 0x2f0   : > { %2134 = vst [vmem:[%s4539_s14 + $0x6a] sm:$0x1] %v2133_v16  ;;  %v2138_v52 = vld [vmem:[%s2137_s12] sm:$0x1]  ;;  %s2171_s4 = sld [smem:[#allocation4 + %s2170_s0]]  ;;  %s2152_s10 = scalar_lea.vmem [#allocation2], %s2151_s24 }
 0x2f1   : > { %2139 = vst [vmem:[%s4539_s14 + $0x6b] sm:$0x1] %v2138_v52  ;;  %v2143_v30 = vld [vmem:[%s2142_s19] sm:$0x1]  ;;  %s2176_s13 = sld [smem:[#allocation4 + %s2175_s9]]  ;;  %s2157_s16 = scalar_lea.vmem [#allocation2], %s2156_s23 }
 0x2f2   : > { %2144 = vst [vmem:[%s4539_s14 + $0x6c] sm:$0x1] %v2143_v30  ;;  %v2148_v14 = vld [vmem:[%s2147_s21] sm:$0x1]  ;;  %s2180_s26 = sadd.s32 116, %s4185_s18  ;;  %s2185_s6 = sadd.s32 117, %s4185_s18 }
 0x2f3   : > { %2149 = vst [vmem:[%s4539_s14 + $0x6d] sm:$0x1] %v2148_v14  ;;  %v2153_v27 = vld [vmem:[%s2152_s10] sm:$0x1]  ;;  %s2181_s17 = sld [smem:[#allocation4 + %s2180_s26]]  ;;  %s2162_s2 = scalar_lea.vmem [#allocation2], %s2161_s30 }
 0x2f4   : > { %2154 = vst [vmem:[%s4539_s14 + $0x6e] sm:$0x1] %v2153_v27  ;;  %v2158_v60 = vld [vmem:[%s2157_s16] sm:$0x1]  ;;  %s2186_s8 = sld [smem:[#allocation4 + %s2185_s6]]  ;;  %s2167_s20 = scalar_lea.vmem [#allocation2], %s2166_s5 }
 0x2f5   : > { %2159 = vst [vmem:[%s4539_s14 + $0x6f] sm:$0x1] %v2158_v60  ;;  %v2163_v55 = vld [vmem:[%s2162_s2] sm:$0x1]  ;;  %s2190_s1 = sadd.s32 118, %s4185_s18  ;;  %s2195_s28 = sadd.s32 119, %s4185_s18 }
 0x2f6   : > { %2164 = vst [vmem:[%s4539_s14 + $0x70] sm:$0x1] %v2163_v55  ;;  %v2168_v34 = vld [vmem:[%s2167_s20] sm:$0x1]  ;;  %s2191_s7 = sld [smem:[#allocation4 + %s2190_s1]]  ;;  %s2172_s27 = scalar_lea.vmem [#allocation2], %s2171_s4 }
 0x2f7   : > { %2169 = vst [vmem:[%s4539_s14 + $0x71] sm:$0x1] %v2168_v34  ;;  %v2173_v23 = vld [vmem:[%s2172_s27] sm:$0x1]  ;;  %s2196_s22 = sld [smem:[#allocation4 + %s2195_s28]]  ;;  %s2177_s3 = scalar_lea.vmem [#allocation2], %s2176_s13 }
 0x2f8   : > { %2174 = vst [vmem:[%s4539_s14 + $0x72] sm:$0x1] %v2173_v23  ;;  %v2178_v48 = vld [vmem:[%s2177_s3] sm:$0x1]  ;;  %s2200_s15 = sadd.s32 120, %s4185_s18  ;;  %s2205_s24 = sadd.s32 121, %s4185_s18 }
 0x2f9   : > { %2179 = vst [vmem:[%s4539_s14 + $0x73] sm:$0x1] %v2178_v48  ;;  %s2201_s11 = sld [smem:[#allocation4 + %s2200_s15]]  ;;  %s2182_s23 = scalar_lea.vmem [#allocation2], %s2181_s17 }
 0x2fa   : > { %v2183_v41 = vld [vmem:[%s2182_s23] sm:$0x1]  ;;  %s2206_s12 = sld [smem:[#allocation4 + %s2205_s24]]  ;;  %s2187_s29 = scalar_lea.vmem [#allocation2], %s2186_s8 }
 0x2fb   : > { %2184 = vst [vmem:[%s4539_s14 + $0x74] sm:$0x1] %v2183_v41  ;;  %v2188_v62 = vld [vmem:[%s2187_s29] sm:$0x1]  ;;  %s2210_s25 = sadd.s32 122, %s4185_s18  ;;  %s2215_s30 = sadd.s32 123, %s4185_s18 }
 0x2fc   : > { %2189 = vst [vmem:[%s4539_s14 + $0x75] sm:$0x1] %v2188_v62  ;;  %s2211_s19 = sld [smem:[#allocation4 + %s2210_s25]]  ;;  %s2192_s5 = scalar_lea.vmem [#allocation2], %s2191_s7 }
 0x2fd   : > { %v2193_v6 = vld [vmem:[%s2192_s5] sm:$0x1]  ;;  %s2216_s21 = sld [smem:[#allocation4 + %s2215_s30]]  ;;  %s2197_s0 = scalar_lea.vmem [#allocation2], %s2196_s22 }
 0x2fe   : > { %2194 = vst [vmem:[%s4539_s14 + $0x76] sm:$0x1] %v2193_v6  ;;  %v2198_v21 = vld [vmem:[%s2197_s0] sm:$0x1]  ;;  %s2220_s9 = sadd.s32 124, %s4185_s18  ;;  %s2225_s4 = sadd.s32 125, %s4185_s18 }
 0x2ff   : > { %2199 = vst [vmem:[%s4539_s14 + $0x77] sm:$0x1] %v2198_v21  ;;  %s2221_s10 = sld [smem:[#allocation4 + %s2220_s9]]  ;;  %s2202_s13 = scalar_lea.vmem [#allocation2], %s2201_s11 }
 0x300   : > { %s5133_s16 = sld [smem:[#allocation13_spill]]  ;;  %v2203_v20 = vld [vmem:[%s2202_s13] sm:$0x1]  ;;  %s2207_s6 = scalar_lea.vmem [#allocation2], %s2206_s12 }
 0x301   : > { %s2226_s26 = sld [smem:[#allocation4 + %s2225_s4]]  ;;  %2204 = vst [vmem:[%s4539_s14 + $0x78] sm:$0x1] %v2203_v20  ;;  %v2208_v45 = vld [vmem:[%s2207_s6] sm:$0x1]  ;;  %s2230_s17 = sadd.s32 126, %s4185_s18 }
 0x302   : > { %s2235_s2 = sadd.s32 127, %s4185_s18  ;;  %2209 = vst [vmem:[%s4539_s14 + $0x79] sm:$0x1] %v2208_v45  ;;  %s2231_s8 = sld [smem:[#allocation4 + %s2230_s17]] }
 0x303   : > { %s2212_s20 = scalar_lea.vmem [#allocation2], %s2211_s19  ;;  %s2236_s1 = sld [smem:[#allocation4 + %s2235_s2]] }
 0x304   : > { %v2213_v11 = vld [vmem:[%s2212_s20] sm:$0x1]  ;;  %s2217_s28 = scalar_lea.vmem [#allocation2], %s2216_s21  ;;  %s5134_s27 = sld [smem:[#allocation10_spill]] }
 0x305   : > { %2214 = vst [vmem:[%s4539_s14 + $0x7a] sm:$0x1] %v2213_v11  ;;  %v2218_v58 = vld [vmem:[%s2217_s28] sm:$0x1]  ;;  %s2222_s22 = scalar_lea.vmem [#allocation2], %s2221_s10  ;;  %s2254_s3 = sshll.u32 %s4539_s14, 4  ;;  %s4799_s3 = int_to_ptr.vmem [resolvable:$true] %s2254_s3 }
 0x306   : > { %s2509_s7 = sshll.u32 %s5133_s16, 11  ;;  %2219 = vst [vmem:[%s4539_s14 + $0x7b] sm:$0x1] %v2218_v58  ;;  %v2223_v33 = vld [vmem:[%s2222_s22] sm:$0x1]  ;;  %s5136_s23 = sld [smem:[#allocation118_spill]] }
 0x307   : > { %2224 = vst [vmem:[%s4539_s14 + $0x7c] sm:$0x1] %v2223_v33  ;;  %s2227_s18 = scalar_lea.vmem [#allocation2], %s2226_s26  ;;  %s2774_s5 = scalar_lea.vmem %s4799_s3, 2048 }
 0x308   : > { %v2228_v18 = vld [vmem:[%s2227_s18] sm:$0x1]  ;;  %s2232_s29 = scalar_lea.vmem [#allocation2], %s2231_s8  ;;  %p2775_p1 = scmp.ne.s32.totalorder %s4799_s3, %s2774_s5 }
 0x309   : > { %2229 = vst [vmem:[%s4539_s14 + $0x7d] sm:$0x1] %v2228_v18  ;;  %v2233_v8 = vld [vmem:[%s2232_s29] sm:$0x1]  ;;  %s2237_s25 = scalar_lea.vmem [#allocation2], %s2236_s1  ;;  %s2841_s21 = smov [#allocation5]  }
 0x30a   : > { %2234 = vst [vmem:[%s4539_s14 + $0x7e] sm:$0x1] %v2233_v8  ;;  %v2238_v17 = vld [vmem:[%s2237_s25] sm:$0x1]  ;;  %s5137_s30 = sand.u32 1, %s5134_s27   ;;  %p2776_p2 = pnand %p2775_p1, %p2920_p10 }
 0x30b   : > { %2239 = vst [vmem:[%s4539_s14 + $0x7f] sm:$0x1] %v2238_v17  ;;  %s4806_s19 = scalar_lea.sflag [#allocation6], %s5137_s30  ;;  %s2778_s0 = sshll.u32 %s2841_s21, 4  ;;  %s2779_s0 = int_to_ptr.vmem [resolvable:$false] %s2778_s0 }
 0x30c   : > { %s4797_s12 = scalar_lea.hbm %s5136_s23, %s2509_s7  ;;  %p2777_p3 = pneg %p2776_p2 }
 0x30d   : > { %s2780_s9 = scalar_lea.vmem %s2779_s0, 4096  ;;  %p2781_p4 = scmp.lt.s32.totalorder %s4799_s3, %s2779_s0 }
 0x30e   : > { %p2782_p5 = scmp.lt.s32.totalorder %s2780_s9, %s2774_s5 }
 0x310   : > { %p2783_p6 = por %p2782_p5, %p2781_p4 }
 0x312   : > { %p2784_p7 = pnand %p2783_p6, %p2777_p3 }
 0x314   : > { %2787 = shalt.err (!%p2784_p7)
}
 0x315   : > { %s2788_s14 = scalar_lea.hbm %s4797_s12, 2048  ;;  %s2792_s13 = scalar_lea.hbm %s5136_s23, 6144 }
 0x316   : > { %p2789_p8 = scmp.ne.s32.totalorder %s4797_s12, %s2788_s14  ;;  %p2793_p13 = scmp.lt.u32.totalorder %s4797_s12, %s5136_s23 }
 0x317   : > { %p2794_p0 = scmp.lt.u32.totalorder %s2792_s13, %s2788_s14  ;;  %p2796_p2 = scmp.lt.u32.totalorder %s2788_s14, %s4797_s12 }
 0x318   : > { %p2790_p9 = pnand %p2789_p8, %p2920_p10 }
 0x319   : > { %p2795_p1 = por %p2794_p0, %p2793_p13 }
 0x31a   : > { %p2791_p12 = pneg %p2790_p9 }
 0x31b   : > { %p2797_p3 = por %p2796_p2, %p2795_p1 }
 0x31d   : > { %p2798_p4 = pnand %p2797_p3, %p2791_p12 }
 0x31f   : > { %2801 = shalt.err (!%p2798_p4)
}
 0x320   : > { %s2842_s6 = smov 128   ;;  %s2843_s17 = smov 8  }
 0x321   : > { %2718 = dma.vmem_to_hbm [thread:$0]  (%p2920_p10), %s4799_s3, 2048, %s4797_s12, %s4806_s19, %s2842_s6, %s2842_s6, %s2843_s17  }
 0x322 PF: > { %s5138_s2 = sld [smem:[#allocation12_spill]]  ;;  %s5139_s8 = sld [smem:[#allocation9_spill]] }
 0x328   : > { %p2724_p5 = scmp.ge.s32.totalorder %s5138_s2, 2  ;;  %s2269_s1 = sand.u32 1, %s5139_s8  }
 0x329   : > { %s2270_s28 = scalar_lea.sflag [#allocation6], %s2269_s1 }
 0x32a   : > { %p2721_p6 = pnand %p2724_p5, %p2924_p11 }
 0x32c   : > { %2821 = dma.done.wait (!%p2721_p6), %s2270_s28, 2048  }
 0x32d   : > { %2823 = vsyncadd (!%p2721_p6), %s2270_s28, 4294965248  ;;  %s5141_s29 = sld [smem:[#allocation14_spill]]  ;;  %s5142_s27 = sld [smem:[#allocation10_spill]] }
 0x32e   : > { %s5143_s28 = sld [smem:[#allocation11_spill]]  ;;  %s5144_s0 = sld [smem:[#allocation15_spill]] }
 0x333   : > { %p22_p7 = scmp.ge.s32.totalorder %s5141_s29, 5  }
 0x335   :  { %24 = sbr.rel (!%p22_p7) target bundleno = 21 (0x15), region = 200 }
 0x33c   :  { %2275 = vsyncpa [#allocation6], 1 }
 0x33d   :  { %2277 = vsyncpa [#allocation6 + $0x1], 1 }

</bundles_post_ra>
